<compile_context>
chip_gen: v6e
topology: v6e:2x2x1
jax: 0.10.0
libtpu: 0.0.40
codegen_flags: <defaults>
</compile_context>

<pallas_src>
import jax
import jax.numpy as jnp
from jax.experimental import pallas as pl
from jax.experimental.pallas import tpu as pltpu


# --------------------------- in-kernel helpers ------------------------------

def _reflect_pad1(x):
    """ReflectionPad2d(1) on a (B, H, W, C) VMEM-resident value (H, W >= 2)."""
    H, W = x.shape[1], x.shape[2]
    x = jnp.concatenate([x[:, 1:2], x, x[:, H - 2:H - 1]], axis=1)
    x = jnp.concatenate([x[:, :, 1:2], x, x[:, :, W - 2:W - 1]], axis=2)
    return x


def _conv3x3_taps(xpad, w_ref, b_ref, H, W):
    """3x3 valid conv as 9 accumulated bf16 MXU dots with f32 accumulation.

    xpad : (B, H+2, W+2, Cin) bf16 value (already reflection-padded)
    w_ref: (9, Cin, Cout)     bf16 ref, tap-major order (kh*3 + kw)
    b_ref: (1, Cout)          f32 ref
    returns (B*H*W, Cout) f32, flat row order b-major then h then w.
    """
    B, Cin = xpad.shape[0], xpad.shape[3]
    Cout = w_ref.shape[2]
    M = B * H * W
    acc = jnp.zeros((M, Cout), jnp.float32)
    for kh in range(3):
        for kw in range(3):
            # NOTE: kw = 1, 2 slices are sublane-unaligned; negligible at this
            # size.  TODO(synk): pltpu.roll-based shifts if feature maps grow.
            patch = xpad[:, kh:kh + H, kw:kw + W, :].reshape(M, Cin)
            acc += jnp.dot(patch, w_ref[3 * kh + kw],
                           preferred_element_type=jnp.float32)
    return acc + b_ref[...].astype(jnp.float32)


def _pool2x2_flat(y_flat, B, H, W, C):
    """2x2 / stride-2 max pool on a (B*H*W, C) flat conv output -> (B,H/2,W/2,C)."""
    Ho, Wo = H // 2, W // 2
    # Pool along W: adjacent flat rows -> reduce over the sublane pair.
    yw = jnp.max(y_flat.reshape(B * H * Wo, 2, C), axis=1)
    # Pool along H: rows Wo apart -> elementwise max of the two half-slabs.
    yh = yw.reshape(B * Ho, 2, Wo, C)
    return jnp.maximum(yh[:, 0], yh[:, 1]).reshape(B, Ho, Wo, C)


# ------------------------------ fused kernel --------------------------------

def encoder_fused_kernel(x_ref, w1_ref, b1_ref, w2_ref, b2_ref, o_ref):
    """Fused conv1 -> pool -> conv2 -> pool for a block of Bblk images.

    x_ref : (Bblk, H, W, Cin)        unpadded NHWC feature block (bf16)
    w1_ref: (9, Cin, C1)             conv1 weights, tap-major (bf16)
    b1_ref: (1, C1)                  conv1 bias (f32)
    w2_ref: (9, C1, C1)              conv2 weights, tap-major (bf16)
    b2_ref: (1, C1)                  conv2 bias (f32)
    o_ref : (Bblk, H//4, W//4, C1)   (f32)
    """
    Bblk, H, W, _ = x_ref.shape
    C1 = o_ref.shape[3]
    H2, W2 = H // 2, W // 2

    # ---- conv1: in-kernel reflection pad + 9 accumulated MXU dots (M=Bblk*H*W)
    y1 = _conv3x3_taps(_reflect_pad1(x_ref[...]), w1_ref, b1_ref, H, W)

    # ---- pool1 (VMEM resident) ----
    y1 = _pool2x2_flat(y1, Bblk, H, W, C1)                 # (Bblk, H/2, W/2, C1)

    # ---- conv2: reflection pad in-kernel + 9 accumulated dots ----
    y2 = _conv3x3_taps(_reflect_pad1(y1.astype(jnp.bfloat16)),
                       w2_ref, b2_ref, H2, W2)

    # ---- pool2 + single lane-dense slab store ----
    o_ref[...] = _pool2x2_flat(y2, Bblk, H2, W2, C1).astype(o_ref.dtype)


# -------------------------------- wrapper -----------------------------------

# Explicit scoped-VMEM budget: above v5e's 16 MiB default, half of v7x's 64 MiB
# physical, far below v5e/v6e's 128 MiB physical.
_VMEM_LIMIT_BYTES = 32 * 1024 * 1024


def _num_tensorcores():
    """Per-JAX-device TensorCore count (v7x / v4 / v5p expose 2 per device)."""
    try:
        kind = jax.devices()[0].device_kind.lower()
    except Exception:
        return 1
    single_tc = ("v2", "v3", "v5e", "v5 lite", "v5lite", "v6e", "v6 lite", "v6lite")
    return 1 if any(s in kind for s in single_tc) else 2


def _choose_batch_block(B, H, W, n_cores):
    """Images per grid step: fold batch into the matmul M dim on single-TC
    chips (target M = Bblk*H*W >= 128) while keeping >= n_cores grid steps."""
    target = max(1, -(-128 // (H * W)))                    # ceil(128 / (H*W))
    divisors = [d for d in range(1, B + 1) if B % d == 0]
    bblk = max(d for d in divisors if d <= target)
    while bblk > 1 and (B // bblk) < n_cores:
        bblk = max(d for d in divisors if d < bblk)
    return bblk


def _vmem_bytes_estimate(Bblk, H, W, Cin, C1):
    """Rough per-core VMEM need, including in-kernel temporaries."""
    bf16, f32 = 2, 4
    M1, M2 = Bblk * H * W, Bblk * (H // 2) * (W // 2)
    io = (2 * Bblk * H * W * Cin * bf16                    # input block (double-buffered)
          + 2 * (9 * Cin * C1 + 9 * C1 * C1) * bf16        # weights (double-buffered)
          + 2 * Bblk * (H // 4) * (W // 4) * C1 * f32)     # output block (double-buffered)
    tmp = (Bblk * (H + 2) * (W + 2) * Cin * bf16           # conv1 padded input
           + 2 * M1 * Cin * bf16                           # live tap patches / relayouts
           + M1 * C1 * f32                                 # conv1 accumulator
           + 2 * M1 * C1 * f32                             # pooling temporaries
           + Bblk * (H // 2 + 2) * (W // 2 + 2) * C1 * bf16  # conv2 padded input
           + 2 * M2 * C1 * bf16 + M2 * C1 * f32)           # conv2 patches + accumulator
    return io + tmp


@jax.jit
def encoder_forward(feat_nchw, packed):
    """Encoder.forward starting from the ResNet last feature map (NCHW, f32)."""
    # NCHW -> NHWC (lane-dense channels) with the bf16 cast fused into the same
    # XLA prologue.  TODO(synk): if the backbone emits NHWC bf16, this collapses.
    x = jnp.transpose(feat_nchw, (0, 2, 3, 1)).astype(jnp.bfloat16)
    B, H, W, Cin = x.shape
    C1 = packed["w1"].shape[-1]

    assert H % 4 == 0 and W % 4 == 0 and H >= 4 and W >= 4, (
        "kernel assumes even, >=4 spatial dims (two MaxPool2d(2) + reflect "
        "pads); got %dx%d" % (H, W))

    n_cores = _num_tensorcores()
    Bblk = _choose_batch_block(B, H, W, n_cores)
    # TODO(synk): for B == 1 on dual-TC chips the second core idles; a K-split
    # of conv1 with a cross-core reduce would recover it.

    need = _vmem_bytes_estimate(Bblk, H, W, Cin, C1)
    assert need < int(0.9 * _VMEM_LIMIT_BYTES), (
        "feature block too large for the fused all-in-VMEM kernel "
        "(need ~%d MiB): switch to row-band tiling" % (need >> 20))

    Ho, Wo = H // 4, W // 4
    out = pl.pallas_call(
        encoder_fused_kernel,
        out_shape=jax.ShapeDtypeStruct((B, Ho, Wo, C1), jnp.float32),
        grid=(B // Bblk,),
        in_specs=[
            pl.BlockSpec((Bblk, H, W, Cin), lambda b: (b, 0, 0, 0)),
            # Constant index_maps -> the pipeline fetches the weights only once;
            # their extra double-buffer residency (~1.4 MB) is irrelevant under
            # the 32 MiB scoped budget, so single-buffering is not needed here.
            pl.BlockSpec((9, Cin, C1), lambda b: (0, 0, 0)),
            pl.BlockSpec((1, C1), lambda b: (0, 0)),
            pl.BlockSpec((9, C1, C1), lambda b: (0, 0, 0)),
            pl.BlockSpec((1, C1), lambda b: (0, 0)),
        ],
        out_specs=pl.BlockSpec((Bblk, Ho, Wo, C1), lambda b: (b, 0, 0, 0)),
        compiler_params=pltpu.CompilerParams(
            dimension_semantics=("parallel",),
            vmem_limit_bytes=_VMEM_LIMIT_BYTES),
    )(x, packed["w1"], packed["b1"], packed["w2"], packed["b2"])

    return jnp.transpose(out, (0, 3, 1, 2))                # NHWC -> NCHW


# ------------------------- deterministic parameters -------------------------

def init_encoder_params(key, c_enc, dtype=jnp.float32):
    """PyTorch-style uniform(-1/sqrt(fan_in), 1/sqrt(fan_in)) init (HWIO, f32)."""
    k1, k2, k3, k4 = jax.random.split(key, 4)

    def conv_init(kw, kb, cin, cout):
        bound = float(1.0 / (cin * 9) ** 0.5)
        w = jax.random.uniform(kw, (3, 3, cin, cout), dtype, -bound, bound)
        b = jax.random.uniform(kb, (1, cout), dtype, -bound, bound)
        return w, b

    w1, b1 = conv_init(k1, k2, c_enc, 128)   # Conv3x3(num_ch_enc[-1], 128)
    w2, b2 = conv_init(k3, k4, 128, 128)     # Conv3x3(128, 128)
    return dict(w1=w1, b1=b1, w2=w2, b2=b2)


def pack_encoder_params(params):
    """One-time repack for the kernel: HWIO f32 -> tap-major (9, Cin, Cout) bf16.

    Done once outside the jitted forward so no per-call f32->bf16 weight
    conversion traffic is paid; biases stay f32 for the f32-accumulate epilogue.
    """
    def pack(w):
        kh, kw, cin, cout = w.shape
        return w.reshape(kh * kw, cin, cout).astype(jnp.bfloat16)

    return dict(w1=pack(params["w1"]), b1=params["b1"].astype(jnp.float32),
                w2=pack(params["w2"]), b2=params["b2"].astype(jnp.float32))


# ----------------------------- plain-JAX reference ---------------------------

def _ref_conv3x3(x_nhwc, w, b):
    xp = jnp.pad(x_nhwc, ((0, 0), (1, 1), (1, 1), (0, 0)), mode="reflect")
    y = jax.lax.conv_general_dilated(
        xp, w, window_strides=(1, 1), padding="VALID",
        dimension_numbers=("NHWC", "HWIO", "NHWC"))
    return y + b[0][None, None, None, :]


def _ref_maxpool2(x):
    return jax.lax.reduce_window(
        x, -jnp.inf, jax.lax.max, (1, 2, 2, 1), (1, 2, 2, 1), "VALID")


# ---------------------------------- main ------------------------------------

if __name__ == "__main__":
    key = jax.random.PRNGKey(0)
    k_feat, k_params = jax.random.split(key)

    # resnet18: num_ch_enc[-1] == 512, spatial stride 32 -> 256x256 image gives 8x8.
    B, C_ENC, FH, FW = 2, 512, 8, 8
    feat = jax.random.normal(k_feat, (B, C_ENC, FH, FW), jnp.float32)
    params = init_encoder_params(k_params, C_ENC)
    packed = pack_encoder_params(params)       # cached bf16 weights (one-time)

    out = jax.block_until_ready(encoder_forward(feat, packed))
    assert out.shape == (B, 128, FH // 4, FW // 4), out.shape

    # correctness check against plain-JAX f32 reference (bf16 MXU path ->
    # relaxed tolerance).
    xr = jnp.transpose(feat, (0, 2, 3, 1))
    xr = _ref_maxpool2(_ref_conv3x3(xr, params["w1"], params["b1"]))
    xr = _ref_maxpool2(_ref_conv3x3(xr, params["w2"], params["b2"]))
    ref = jnp.transpose(xr, (0, 3, 1, 2))
    max_err = float(jnp.max(jnp.abs(out - ref)))
    assert jnp.allclose(out, ref, rtol=5e-2, atol=5e-2), max_err

    print("KERNEL_OK")
</pallas_src>

<mosaic_0001>
module attributes {stable_mosaic.version = 11 : i64} {
  func.func @encoder_fused_kernel(%arg0: i32, %arg1: memref<1x8x8x512xbf16, #tpu.memory_space<vmem>>, %arg2: memref<9x512x128xbf16, #tpu.memory_space<vmem>>, %arg3: memref<1x128xf32, #tpu.memory_space<vmem>>, %arg4: memref<9x128x128xbf16, #tpu.memory_space<vmem>>, %arg5: memref<1x128xf32, #tpu.memory_space<vmem>>, %arg6: memref<1x2x2x128xf32, #tpu.memory_space<vmem>>) attributes {dimension_semantics = [#tpu.dimension_semantics<parallel>], iteration_bounds = array<i64: 2>, scalar_prefetch = 0 : i64, scratch_operands = 0 : i64, tpu.core_type = #tpu.core_type<tc>, window_params = [{transform_indices = @transform_0, window_bounds = array<i64: 1, 8, 8, 512>}, {pipeline_mode = #tpu.pipeline_mode<synchronous>, transform_indices = @transform_1, window_bounds = array<i64: 9, 512, 128>}, {pipeline_mode = #tpu.pipeline_mode<synchronous>, transform_indices = @transform_2, window_bounds = array<i64: 1, 128>}, {pipeline_mode = #tpu.pipeline_mode<synchronous>, transform_indices = @transform_3, window_bounds = array<i64: 9, 128, 128>}, {pipeline_mode = #tpu.pipeline_mode<synchronous>, transform_indices = @transform_4, window_bounds = array<i64: 1, 128>}, {transform_indices = @transform_5, window_bounds = array<i64: 1, 2, 2, 128>}]} {
    %c0 = arith.constant 0 : index
    %c0_0 = arith.constant 0 : index
    %c0_1 = arith.constant 0 : index
    %c0_2 = arith.constant 0 : index
    %0 = vector.load %arg1[%c0, %c0_0, %c0_1, %c0_2] : memref<1x8x8x512xbf16, #tpu.memory_space<vmem>>, vector<1x8x8x512xbf16>
    %1 = vector.extract_strided_slice %0 {offsets = [0, 1, 0, 0], sizes = [1, 1, 8, 512], strides = [1, 1, 1, 1]} : vector<1x8x8x512xbf16> to vector<1x1x8x512xbf16>
    %2 = vector.extract_strided_slice %0 {offsets = [0, 6, 0, 0], sizes = [1, 1, 8, 512], strides = [1, 1, 1, 1]} : vector<1x8x8x512xbf16> to vector<1x1x8x512xbf16>
    %3 = tpu.concatenate %1, %0, %2 in 1 : vector<1x1x8x512xbf16>, vector<1x8x8x512xbf16>, vector<1x1x8x512xbf16> -> vector<1x10x8x512xbf16>
    %4 = vector.extract_strided_slice %3 {offsets = [0, 0, 1, 0], sizes = [1, 10, 1, 512], strides = [1, 1, 1, 1]} : vector<1x10x8x512xbf16> to vector<1x10x1x512xbf16>
    %5 = vector.extract_strided_slice %3 {offsets = [0, 0, 6, 0], sizes = [1, 10, 1, 512], strides = [1, 1, 1, 1]} : vector<1x10x8x512xbf16> to vector<1x10x1x512xbf16>
    %6 = tpu.concatenate %4, %3, %5 in 2 : vector<1x10x1x512xbf16>, vector<1x10x8x512xbf16>, vector<1x10x1x512xbf16> -> vector<1x10x10x512xbf16>
    %cst = arith.constant 0.000000e+00 : f32
    %7 = vector.broadcast %cst : f32 to vector<64x128xf32>
    %8 = vector.extract_strided_slice %6 {offsets = [0, 0, 0, 0], sizes = [1, 8, 8, 512], strides = [1, 1, 1, 1]} : vector<1x10x10x512xbf16> to vector<1x8x8x512xbf16>
    %9 = vector.shape_cast %8 : vector<1x8x8x512xbf16> to vector<64x512xbf16>
    %c0_3 = arith.constant 0 : index
    %c0_4 = arith.constant 0 : index
    %c0_5 = arith.constant 0 : index
    %10 = vector.load %arg2[%c0_3, %c0_4, %c0_5] : memref<9x512x128xbf16, #tpu.memory_space<vmem>>, vector<1x512x128xbf16>
    %11 = vector.shape_cast %10 : vector<1x512x128xbf16> to vector<512x128xbf16>
    %cst_6 = arith.constant dense<0.000000e+00> : vector<64x128xf32>
    %12 = tpu.matmul %9, %11, %cst_6 {dimension_numbers = #tpu.dot_dimension_numbers<[1], [0], [0], [1], [0, 0, 1, 1], [], []>} : vector<64x512xbf16>, vector<512x128xbf16>, vector<64x128xf32> -> vector<64x128xf32>
    %13 = arith.addf %7, %12 : vector<64x128xf32>
    %14 = vector.extract_strided_slice %6 {offsets = [0, 0, 1, 0], sizes = [1, 8, 8, 512], strides = [1, 1, 1, 1]} : vector<1x10x10x512xbf16> to vector<1x8x8x512xbf16>
    %15 = vector.shape_cast %14 : vector<1x8x8x512xbf16> to vector<64x512xbf16>
    %c1 = arith.constant 1 : index
    %c0_7 = arith.constant 0 : index
    %c0_8 = arith.constant 0 : index
    %16 = vector.load %arg2[%c1, %c0_7, %c0_8] : memref<9x512x128xbf16, #tpu.memory_space<vmem>>, vector<1x512x128xbf16>
    %17 = vector.shape_cast %16 : vector<1x512x128xbf16> to vector<512x128xbf16>
    %cst_9 = arith.constant dense<0.000000e+00> : vector<64x128xf32>
    %18 = tpu.matmul %15, %17, %cst_9 {dimension_numbers = #tpu.dot_dimension_numbers<[1], [0], [0], [1], [0, 0, 1, 1], [], []>} : vector<64x512xbf16>, vector<512x128xbf16>, vector<64x128xf32> -> vector<64x128xf32>
    %19 = arith.addf %13, %18 : vector<64x128xf32>
    %20 = vector.extract_strided_slice %6 {offsets = [0, 0, 2, 0], sizes = [1, 8, 8, 512], strides = [1, 1, 1, 1]} : vector<1x10x10x512xbf16> to vector<1x8x8x512xbf16>
    %21 = vector.shape_cast %20 : vector<1x8x8x512xbf16> to vector<64x512xbf16>
    %c2 = arith.constant 2 : index
    %c0_10 = arith.constant 0 : index
    %c0_11 = arith.constant 0 : index
    %22 = vector.load %arg2[%c2, %c0_10, %c0_11] : memref<9x512x128xbf16, #tpu.memory_space<vmem>>, vector<1x512x128xbf16>
    %23 = vector.shape_cast %22 : vector<1x512x128xbf16> to vector<512x128xbf16>
    %cst_12 = arith.constant dense<0.000000e+00> : vector<64x128xf32>
    %24 = tpu.matmul %21, %23, %cst_12 {dimension_numbers = #tpu.dot_dimension_numbers<[1], [0], [0], [1], [0, 0, 1, 1], [], []>} : vector<64x512xbf16>, vector<512x128xbf16>, vector<64x128xf32> -> vector<64x128xf32>
    %25 = arith.addf %19, %24 : vector<64x128xf32>
    %26 = vector.extract_strided_slice %6 {offsets = [0, 1, 0, 0], sizes = [1, 8, 8, 512], strides = [1, 1, 1, 1]} : vector<1x10x10x512xbf16> to vector<1x8x8x512xbf16>
    %27 = vector.shape_cast %26 : vector<1x8x8x512xbf16> to vector<64x512xbf16>
    %c3 = arith.constant 3 : index
    %c0_13 = arith.constant 0 : index
    %c0_14 = arith.constant 0 : index
    %28 = vector.load %arg2[%c3, %c0_13, %c0_14] : memref<9x512x128xbf16, #tpu.memory_space<vmem>>, vector<1x512x128xbf16>
    %29 = vector.shape_cast %28 : vector<1x512x128xbf16> to vector<512x128xbf16>
    %cst_15 = arith.constant dense<0.000000e+00> : vector<64x128xf32>
    %30 = tpu.matmul %27, %29, %cst_15 {dimension_numbers = #tpu.dot_dimension_numbers<[1], [0], [0], [1], [0, 0, 1, 1], [], []>} : vector<64x512xbf16>, vector<512x128xbf16>, vector<64x128xf32> -> vector<64x128xf32>
    %31 = arith.addf %25, %30 : vector<64x128xf32>
    %32 = vector.extract_strided_slice %6 {offsets = [0, 1, 1, 0], sizes = [1, 8, 8, 512], strides = [1, 1, 1, 1]} : vector<1x10x10x512xbf16> to vector<1x8x8x512xbf16>
    %33 = vector.shape_cast %32 : vector<1x8x8x512xbf16> to vector<64x512xbf16>
    %c4 = arith.constant 4 : index
    %c0_16 = arith.constant 0 : index
    %c0_17 = arith.constant 0 : index
    %34 = vector.load %arg2[%c4, %c0_16, %c0_17] : memref<9x512x128xbf16, #tpu.memory_space<vmem>>, vector<1x512x128xbf16>
    %35 = vector.shape_cast %34 : vector<1x512x128xbf16> to vector<512x128xbf16>
    %cst_18 = arith.constant dense<0.000000e+00> : vector<64x128xf32>
    %36 = tpu.matmul %33, %35, %cst_18 {dimension_numbers = #tpu.dot_dimension_numbers<[1], [0], [0], [1], [0, 0, 1, 1], [], []>} : vector<64x512xbf16>, vector<512x128xbf16>, vector<64x128xf32> -> vector<64x128xf32>
    %37 = arith.addf %31, %36 : vector<64x128xf32>
    %38 = vector.extract_strided_slice %6 {offsets = [0, 1, 2, 0], sizes = [1, 8, 8, 512], strides = [1, 1, 1, 1]} : vector<1x10x10x512xbf16> to vector<1x8x8x512xbf16>
    %39 = vector.shape_cast %38 : vector<1x8x8x512xbf16> to vector<64x512xbf16>
    %c5 = arith.constant 5 : index
    %c0_19 = arith.constant 0 : index
    %c0_20 = arith.constant 0 : index
    %40 = vector.load %arg2[%c5, %c0_19, %c0_20] : memref<9x512x128xbf16, #tpu.memory_space<vmem>>, vector<1x512x128xbf16>
    %41 = vector.shape_cast %40 : vector<1x512x128xbf16> to vector<512x128xbf16>
    %cst_21 = arith.constant dense<0.000000e+00> : vector<64x128xf32>
    %42 = tpu.matmul %39, %41, %cst_21 {dimension_numbers = #tpu.dot_dimension_numbers<[1], [0], [0], [1], [0, 0, 1, 1], [], []>} : vector<64x512xbf16>, vector<512x128xbf16>, vector<64x128xf32> -> vector<64x128xf32>
    %43 = arith.addf %37, %42 : vector<64x128xf32>
    %44 = vector.extract_strided_slice %6 {offsets = [0, 2, 0, 0], sizes = [1, 8, 8, 512], strides = [1, 1, 1, 1]} : vector<1x10x10x512xbf16> to vector<1x8x8x512xbf16>
    %45 = vector.shape_cast %44 : vector<1x8x8x512xbf16> to vector<64x512xbf16>
    %c6 = arith.constant 6 : index
    %c0_22 = arith.constant 0 : index
    %c0_23 = arith.constant 0 : index
    %46 = vector.load %arg2[%c6, %c0_22, %c0_23] : memref<9x512x128xbf16, #tpu.memory_space<vmem>>, vector<1x512x128xbf16>
    %47 = vector.shape_cast %46 : vector<1x512x128xbf16> to vector<512x128xbf16>
    %cst_24 = arith.constant dense<0.000000e+00> : vector<64x128xf32>
    %48 = tpu.matmul %45, %47, %cst_24 {dimension_numbers = #tpu.dot_dimension_numbers<[1], [0], [0], [1], [0, 0, 1, 1], [], []>} : vector<64x512xbf16>, vector<512x128xbf16>, vector<64x128xf32> -> vector<64x128xf32>
    %49 = arith.addf %43, %48 : vector<64x128xf32>
    %50 = vector.extract_strided_slice %6 {offsets = [0, 2, 1, 0], sizes = [1, 8, 8, 512], strides = [1, 1, 1, 1]} : vector<1x10x10x512xbf16> to vector<1x8x8x512xbf16>
    %51 = vector.shape_cast %50 : vector<1x8x8x512xbf16> to vector<64x512xbf16>
    %c7 = arith.constant 7 : index
    %c0_25 = arith.constant 0 : index
    %c0_26 = arith.constant 0 : index
    %52 = vector.load %arg2[%c7, %c0_25, %c0_26] : memref<9x512x128xbf16, #tpu.memory_space<vmem>>, vector<1x512x128xbf16>
    %53 = vector.shape_cast %52 : vector<1x512x128xbf16> to vector<512x128xbf16>
    %cst_27 = arith.constant dense<0.000000e+00> : vector<64x128xf32>
    %54 = tpu.matmul %51, %53, %cst_27 {dimension_numbers = #tpu.dot_dimension_numbers<[1], [0], [0], [1], [0, 0, 1, 1], [], []>} : vector<64x512xbf16>, vector<512x128xbf16>, vector<64x128xf32> -> vector<64x128xf32>
    %55 = arith.addf %49, %54 : vector<64x128xf32>
    %56 = vector.extract_strided_slice %6 {offsets = [0, 2, 2, 0], sizes = [1, 8, 8, 512], strides = [1, 1, 1, 1]} : vector<1x10x10x512xbf16> to vector<1x8x8x512xbf16>
    %57 = vector.shape_cast %56 : vector<1x8x8x512xbf16> to vector<64x512xbf16>
    %c8 = arith.constant 8 : index
    %c0_28 = arith.constant 0 : index
    %c0_29 = arith.constant 0 : index
    %58 = vector.load %arg2[%c8, %c0_28, %c0_29] : memref<9x512x128xbf16, #tpu.memory_space<vmem>>, vector<1x512x128xbf16>
    %59 = vector.shape_cast %58 : vector<1x512x128xbf16> to vector<512x128xbf16>
    %cst_30 = arith.constant dense<0.000000e+00> : vector<64x128xf32>
    %60 = tpu.matmul %57, %59, %cst_30 {dimension_numbers = #tpu.dot_dimension_numbers<[1], [0], [0], [1], [0, 0, 1, 1], [], []>} : vector<64x512xbf16>, vector<512x128xbf16>, vector<64x128xf32> -> vector<64x128xf32>
    %61 = arith.addf %55, %60 : vector<64x128xf32>
    %c0_31 = arith.constant 0 : index
    %c0_32 = arith.constant 0 : index
    %62 = vector.load %arg3[%c0_31, %c0_32] : memref<1x128xf32, #tpu.memory_space<vmem>>, vector<1x128xf32>
    %63 = vector.broadcast %62 : vector<1x128xf32> to vector<64x128xf32>
    %64 = arith.addf %61, %63 : vector<64x128xf32>
    %65 = vector.shape_cast %64 : vector<64x128xf32> to vector<32x2x128xf32>
    %cst_33 = arith.constant dense<0xFF800000> : vector<32x128xf32>
    %66 = vector.multi_reduction <maximumf>, %65, %cst_33 [1] : vector<32x2x128xf32> to vector<32x128xf32>
    %67 = vector.shape_cast %66 : vector<32x128xf32> to vector<4x2x4x128xf32>
    %68 = vector.extract_strided_slice %67 {offsets = [0, 0, 0, 0], sizes = [4, 1, 4, 128], strides = [1, 1, 1, 1]} : vector<4x2x4x128xf32> to vector<4x1x4x128xf32>
    %69 = vector.shape_cast %68 : vector<4x1x4x128xf32> to vector<4x4x128xf32>
    %70 = vector.extract_strided_slice %67 {offsets = [0, 1, 0, 0], sizes = [4, 1, 4, 128], strides = [1, 1, 1, 1]} : vector<4x2x4x128xf32> to vector<4x1x4x128xf32>
    %71 = vector.shape_cast %70 : vector<4x1x4x128xf32> to vector<4x4x128xf32>
    %72 = arith.maximumf %69, %71 : vector<4x4x128xf32>
    %73 = vector.shape_cast %72 : vector<4x4x128xf32> to vector<1x4x4x128xf32>
    %74 = arith.truncf %73 : vector<1x4x4x128xf32> to vector<1x4x4x128xbf16>
    %75 = vector.extract_strided_slice %74 {offsets = [0, 1, 0, 0], sizes = [1, 1, 4, 128], strides = [1, 1, 1, 1]} : vector<1x4x4x128xbf16> to vector<1x1x4x128xbf16>
    %76 = vector.extract_strided_slice %74 {offsets = [0, 2, 0, 0], sizes = [1, 1, 4, 128], strides = [1, 1, 1, 1]} : vector<1x4x4x128xbf16> to vector<1x1x4x128xbf16>
    %77 = tpu.concatenate %75, %74, %76 in 1 : vector<1x1x4x128xbf16>, vector<1x4x4x128xbf16>, vector<1x1x4x128xbf16> -> vector<1x6x4x128xbf16>
    %78 = vector.extract_strided_slice %77 {offsets = [0, 0, 1, 0], sizes = [1, 6, 1, 128], strides = [1, 1, 1, 1]} : vector<1x6x4x128xbf16> to vector<1x6x1x128xbf16>
    %79 = vector.extract_strided_slice %77 {offsets = [0, 0, 2, 0], sizes = [1, 6, 1, 128], strides = [1, 1, 1, 1]} : vector<1x6x4x128xbf16> to vector<1x6x1x128xbf16>
    %80 = tpu.concatenate %78, %77, %79 in 2 : vector<1x6x1x128xbf16>, vector<1x6x4x128xbf16>, vector<1x6x1x128xbf16> -> vector<1x6x6x128xbf16>
    %cst_34 = arith.constant 0.000000e+00 : f32
    %81 = vector.broadcast %cst_34 : f32 to vector<16x128xf32>
    %82 = vector.extract_strided_slice %80 {offsets = [0, 0, 0, 0], sizes = [1, 4, 4, 128], strides = [1, 1, 1, 1]} : vector<1x6x6x128xbf16> to vector<1x4x4x128xbf16>
    %83 = vector.shape_cast %82 : vector<1x4x4x128xbf16> to vector<16x128xbf16>
    %c0_35 = arith.constant 0 : index
    %c0_36 = arith.constant 0 : index
    %c0_37 = arith.constant 0 : index
    %84 = vector.load %arg4[%c0_35, %c0_36, %c0_37] : memref<9x128x128xbf16, #tpu.memory_space<vmem>>, vector<1x128x128xbf16>
    %85 = vector.shape_cast %84 : vector<1x128x128xbf16> to vector<128x128xbf16>
    %cst_38 = arith.constant dense<0.000000e+00> : vector<16x128xf32>
    %86 = tpu.matmul %83, %85, %cst_38 {dimension_numbers = #tpu.dot_dimension_numbers<[1], [0], [0], [1], [0, 0, 1, 1], [], []>} : vector<16x128xbf16>, vector<128x128xbf16>, vector<16x128xf32> -> vector<16x128xf32>
    %87 = arith.addf %81, %86 : vector<16x128xf32>
    %88 = vector.extract_strided_slice %80 {offsets = [0, 0, 1, 0], sizes = [1, 4, 4, 128], strides = [1, 1, 1, 1]} : vector<1x6x6x128xbf16> to vector<1x4x4x128xbf16>
    %89 = vector.shape_cast %88 : vector<1x4x4x128xbf16> to vector<16x128xbf16>
    %c1_39 = arith.constant 1 : index
    %c0_40 = arith.constant 0 : index
    %c0_41 = arith.constant 0 : index
    %90 = vector.load %arg4[%c1_39, %c0_40, %c0_41] : memref<9x128x128xbf16, #tpu.memory_space<vmem>>, vector<1x128x128xbf16>
    %91 = vector.shape_cast %90 : vector<1x128x128xbf16> to vector<128x128xbf16>
    %cst_42 = arith.constant dense<0.000000e+00> : vector<16x128xf32>
    %92 = tpu.matmul %89, %91, %cst_42 {dimension_numbers = #tpu.dot_dimension_numbers<[1], [0], [0], [1], [0, 0, 1, 1], [], []>} : vector<16x128xbf16>, vector<128x128xbf16>, vector<16x128xf32> -> vector<16x128xf32>
    %93 = arith.addf %87, %92 : vector<16x128xf32>
    %94 = vector.extract_strided_slice %80 {offsets = [0, 0, 2, 0], sizes = [1, 4, 4, 128], strides = [1, 1, 1, 1]} : vector<1x6x6x128xbf16> to vector<1x4x4x128xbf16>
    %95 = vector.shape_cast %94 : vector<1x4x4x128xbf16> to vector<16x128xbf16>
    %c2_43 = arith.constant 2 : index
    %c0_44 = arith.constant 0 : index
    %c0_45 = arith.constant 0 : index
    %96 = vector.load %arg4[%c2_43, %c0_44, %c0_45] : memref<9x128x128xbf16, #tpu.memory_space<vmem>>, vector<1x128x128xbf16>
    %97 = vector.shape_cast %96 : vector<1x128x128xbf16> to vector<128x128xbf16>
    %cst_46 = arith.constant dense<0.000000e+00> : vector<16x128xf32>
    %98 = tpu.matmul %95, %97, %cst_46 {dimension_numbers = #tpu.dot_dimension_numbers<[1], [0], [0], [1], [0, 0, 1, 1], [], []>} : vector<16x128xbf16>, vector<128x128xbf16>, vector<16x128xf32> -> vector<16x128xf32>
    %99 = arith.addf %93, %98 : vector<16x128xf32>
    %100 = vector.extract_strided_slice %80 {offsets = [0, 1, 0, 0], sizes = [1, 4, 4, 128], strides = [1, 1, 1, 1]} : vector<1x6x6x128xbf16> to vector<1x4x4x128xbf16>
    %101 = vector.shape_cast %100 : vector<1x4x4x128xbf16> to vector<16x128xbf16>
    %c3_47 = arith.constant 3 : index
    %c0_48 = arith.constant 0 : index
    %c0_49 = arith.constant 0 : index
    %102 = vector.load %arg4[%c3_47, %c0_48, %c0_49] : memref<9x128x128xbf16, #tpu.memory_space<vmem>>, vector<1x128x128xbf16>
    %103 = vector.shape_cast %102 : vector<1x128x128xbf16> to vector<128x128xbf16>
    %cst_50 = arith.constant dense<0.000000e+00> : vector<16x128xf32>
    %104 = tpu.matmul %101, %103, %cst_50 {dimension_numbers = #tpu.dot_dimension_numbers<[1], [0], [0], [1], [0, 0, 1, 1], [], []>} : vector<16x128xbf16>, vector<128x128xbf16>, vector<16x128xf32> -> vector<16x128xf32>
    %105 = arith.addf %99, %104 : vector<16x128xf32>
    %106 = vector.extract_strided_slice %80 {offsets = [0, 1, 1, 0], sizes = [1, 4, 4, 128], strides = [1, 1, 1, 1]} : vector<1x6x6x128xbf16> to vector<1x4x4x128xbf16>
    %107 = vector.shape_cast %106 : vector<1x4x4x128xbf16> to vector<16x128xbf16>
    %c4_51 = arith.constant 4 : index
    %c0_52 = arith.constant 0 : index
    %c0_53 = arith.constant 0 : index
    %108 = vector.load %arg4[%c4_51, %c0_52, %c0_53] : memref<9x128x128xbf16, #tpu.memory_space<vmem>>, vector<1x128x128xbf16>
    %109 = vector.shape_cast %108 : vector<1x128x128xbf16> to vector<128x128xbf16>
    %cst_54 = arith.constant dense<0.000000e+00> : vector<16x128xf32>
    %110 = tpu.matmul %107, %109, %cst_54 {dimension_numbers = #tpu.dot_dimension_numbers<[1], [0], [0], [1], [0, 0, 1, 1], [], []>} : vector<16x128xbf16>, vector<128x128xbf16>, vector<16x128xf32> -> vector<16x128xf32>
    %111 = arith.addf %105, %110 : vector<16x128xf32>
    %112 = vector.extract_strided_slice %80 {offsets = [0, 1, 2, 0], sizes = [1, 4, 4, 128], strides = [1, 1, 1, 1]} : vector<1x6x6x128xbf16> to vector<1x4x4x128xbf16>
    %113 = vector.shape_cast %112 : vector<1x4x4x128xbf16> to vector<16x128xbf16>
    %c5_55 = arith.constant 5 : index
    %c0_56 = arith.constant 0 : index
    %c0_57 = arith.constant 0 : index
    %114 = vector.load %arg4[%c5_55, %c0_56, %c0_57] : memref<9x128x128xbf16, #tpu.memory_space<vmem>>, vector<1x128x128xbf16>
    %115 = vector.shape_cast %114 : vector<1x128x128xbf16> to vector<128x128xbf16>
    %cst_58 = arith.constant dense<0.000000e+00> : vector<16x128xf32>
    %116 = tpu.matmul %113, %115, %cst_58 {dimension_numbers = #tpu.dot_dimension_numbers<[1], [0], [0], [1], [0, 0, 1, 1], [], []>} : vector<16x128xbf16>, vector<128x128xbf16>, vector<16x128xf32> -> vector<16x128xf32>
    %117 = arith.addf %111, %116 : vector<16x128xf32>
    %118 = vector.extract_strided_slice %80 {offsets = [0, 2, 0, 0], sizes = [1, 4, 4, 128], strides = [1, 1, 1, 1]} : vector<1x6x6x128xbf16> to vector<1x4x4x128xbf16>
    %119 = vector.shape_cast %118 : vector<1x4x4x128xbf16> to vector<16x128xbf16>
    %c6_59 = arith.constant 6 : index
    %c0_60 = arith.constant 0 : index
    %c0_61 = arith.constant 0 : index
    %120 = vector.load %arg4[%c6_59, %c0_60, %c0_61] : memref<9x128x128xbf16, #tpu.memory_space<vmem>>, vector<1x128x128xbf16>
    %121 = vector.shape_cast %120 : vector<1x128x128xbf16> to vector<128x128xbf16>
    %cst_62 = arith.constant dense<0.000000e+00> : vector<16x128xf32>
    %122 = tpu.matmul %119, %121, %cst_62 {dimension_numbers = #tpu.dot_dimension_numbers<[1], [0], [0], [1], [0, 0, 1, 1], [], []>} : vector<16x128xbf16>, vector<128x128xbf16>, vector<16x128xf32> -> vector<16x128xf32>
    %123 = arith.addf %117, %122 : vector<16x128xf32>
    %124 = vector.extract_strided_slice %80 {offsets = [0, 2, 1, 0], sizes = [1, 4, 4, 128], strides = [1, 1, 1, 1]} : vector<1x6x6x128xbf16> to vector<1x4x4x128xbf16>
    %125 = vector.shape_cast %124 : vector<1x4x4x128xbf16> to vector<16x128xbf16>
    %c7_63 = arith.constant 7 : index
    %c0_64 = arith.constant 0 : index
    %c0_65 = arith.constant 0 : index
    %126 = vector.load %arg4[%c7_63, %c0_64, %c0_65] : memref<9x128x128xbf16, #tpu.memory_space<vmem>>, vector<1x128x128xbf16>
    %127 = vector.shape_cast %126 : vector<1x128x128xbf16> to vector<128x128xbf16>
    %cst_66 = arith.constant dense<0.000000e+00> : vector<16x128xf32>
    %128 = tpu.matmul %125, %127, %cst_66 {dimension_numbers = #tpu.dot_dimension_numbers<[1], [0], [0], [1], [0, 0, 1, 1], [], []>} : vector<16x128xbf16>, vector<128x128xbf16>, vector<16x128xf32> -> vector<16x128xf32>
    %129 = arith.addf %123, %128 : vector<16x128xf32>
    %130 = vector.extract_strided_slice %80 {offsets = [0, 2, 2, 0], sizes = [1, 4, 4, 128], strides = [1, 1, 1, 1]} : vector<1x6x6x128xbf16> to vector<1x4x4x128xbf16>
    %131 = vector.shape_cast %130 : vector<1x4x4x128xbf16> to vector<16x128xbf16>
    %c8_67 = arith.constant 8 : index
    %c0_68 = arith.constant 0 : index
    %c0_69 = arith.constant 0 : index
    %132 = vector.load %arg4[%c8_67, %c0_68, %c0_69] : memref<9x128x128xbf16, #tpu.memory_space<vmem>>, vector<1x128x128xbf16>
    %133 = vector.shape_cast %132 : vector<1x128x128xbf16> to vector<128x128xbf16>
    %cst_70 = arith.constant dense<0.000000e+00> : vector<16x128xf32>
    %134 = tpu.matmul %131, %133, %cst_70 {dimension_numbers = #tpu.dot_dimension_numbers<[1], [0], [0], [1], [0, 0, 1, 1], [], []>} : vector<16x128xbf16>, vector<128x128xbf16>, vector<16x128xf32> -> vector<16x128xf32>
    %135 = arith.addf %129, %134 : vector<16x128xf32>
    %c0_71 = arith.constant 0 : index
    %c0_72 = arith.constant 0 : index
    %136 = vector.load %arg5[%c0_71, %c0_72] : memref<1x128xf32, #tpu.memory_space<vmem>>, vector<1x128xf32>
    %137 = vector.broadcast %136 : vector<1x128xf32> to vector<16x128xf32>
    %138 = arith.addf %135, %137 : vector<16x128xf32>
    %139 = vector.shape_cast %138 : vector<16x128xf32> to vector<8x2x128xf32>
    %cst_73 = arith.constant dense<0xFF800000> : vector<8x128xf32>
    %140 = vector.multi_reduction <maximumf>, %139, %cst_73 [1] : vector<8x2x128xf32> to vector<8x128xf32>
    %141 = vector.shape_cast %140 : vector<8x128xf32> to vector<2x2x2x128xf32>
    %142 = vector.extract_strided_slice %141 {offsets = [0, 0, 0, 0], sizes = [2, 1, 2, 128], strides = [1, 1, 1, 1]} : vector<2x2x2x128xf32> to vector<2x1x2x128xf32>
    %143 = vector.shape_cast %142 : vector<2x1x2x128xf32> to vector<2x2x128xf32>
    %144 = vector.extract_strided_slice %141 {offsets = [0, 1, 0, 0], sizes = [2, 1, 2, 128], strides = [1, 1, 1, 1]} : vector<2x2x2x128xf32> to vector<2x1x2x128xf32>
    %145 = vector.shape_cast %144 : vector<2x1x2x128xf32> to vector<2x2x128xf32>
    %146 = arith.maximumf %143, %145 : vector<2x2x128xf32>
    %147 = vector.shape_cast %146 : vector<2x2x128xf32> to vector<1x2x2x128xf32>
    %c0_74 = arith.constant 0 : index
    %c0_75 = arith.constant 0 : index
    %c0_76 = arith.constant 0 : index
    %c0_77 = arith.constant 0 : index
    %148 = vector.load %arg6[%c0_74, %c0_75, %c0_76, %c0_77] : memref<1x2x2x128xf32, #tpu.memory_space<vmem>>, vector<1x2x2x128xf32>
    tpu.vector_store %arg6[%c0_74, %c0_75, %c0_76, %c0_77], %147 {strides = array<i32>} : memref<1x2x2x128xf32, #tpu.memory_space<vmem>>, vector<1x2x2x128xf32>,
    return
  }
  func.func @transform_0(%arg0: i32) -> (i32, i32, i32, i32) {
    %c0_i32 = arith.constant 0 : i32
    %c0_i32_0 = arith.constant 0 : i32
    %c0_i32_1 = arith.constant 0 : i32
    %c0_i32_2 = arith.constant 0 : i32
    return %arg0, %c0_i32, %c0_i32_0, %c0_i32_1 : i32, i32, i32, i32
  }
  func.func @transform_1(%arg0: i32) -> (i32, i32, i32) {
    %c0_i32 = arith.constant 0 : i32
    %c0_i32_0 = arith.constant 0 : i32
    %c0_i32_1 = arith.constant 0 : i32
    %c0_i32_2 = arith.constant 0 : i32
    return %c0_i32, %c0_i32_0, %c0_i32_1 : i32, i32, i32
  }
  func.func @transform_2(%arg0: i32) -> (i32, i32) {
    %c0_i32 = arith.constant 0 : i32
    %c0_i32_0 = arith.constant 0 : i32
    %c0_i32_1 = arith.constant 0 : i32
    return %c0_i32, %c0_i32_0 : i32, i32
  }
  func.func @transform_3(%arg0: i32) -> (i32, i32, i32) {
    %c0_i32 = arith.constant 0 : i32
    %c0_i32_0 = arith.constant 0 : i32
    %c0_i32_1 = arith.constant 0 : i32
    %c0_i32_2 = arith.constant 0 : i32
    return %c0_i32, %c0_i32_0, %c0_i32_1 : i32, i32, i32
  }
  func.func @transform_4(%arg0: i32) -> (i32, i32) {
    %c0_i32 = arith.constant 0 : i32
    %c0_i32_0 = arith.constant 0 : i32
    %c0_i32_1 = arith.constant 0 : i32
    return %c0_i32, %c0_i32_0 : i32, i32
  }
  func.func @transform_5(%arg0: i32) -> (i32, i32, i32, i32) {
    %c0_i32 = arith.constant 0 : i32
    %c0_i32_0 = arith.constant 0 : i32
    %c0_i32_1 = arith.constant 0 : i32
    %c0_i32_2 = arith.constant 0 : i32
    return %arg0, %c0_i32, %c0_i32_0, %c0_i32_1 : i32, i32, i32, i32
  }
}

</mosaic_0001>

<bundles_post_ra>
// kernel: encoder_forward.1
= control target key start
LH: loop header
LB: loop body
LE: loop exit
PB: predicated region body
PF: predicated region fallthrough
CT: control target
= control target key end

     0   :  { %10 = vsyncpa [#allocation3], 0  ;;  %s11230_s0 = inlined_call_operand.vmem [shape: bf16[2,8,8,512], index: 0, kind: input, shape index: {}]   ;;  %s11231_s1 = inlined_call_operand.hbm [shape: bf16[9,512,128], index: 1, kind: input, shape index: {}]   ;;  %s11232_s2 = inlined_call_operand.hbm [shape: f32[1,128], index: 2, kind: input, shape index: {}]   ;;  %s11233_s3 = inlined_call_operand.hbm [shape: bf16[9,128,128], index: 3, kind: input, shape index: {}]   ;;  %s11234_s4 = inlined_call_operand.hbm [shape: f32[1,128], index: 4, kind: input, shape index: {}]   ;;  %s11235_s5 = inlined_call_operand.hbm [shape: f32[2,2,2,128], index: 5, kind: output, shape index: {}]  }
   0x1   :  { %11 = vsyncpa [#allocation6], 0 }
   0x2   :  { %12 = vsyncpa [#allocation9], 0 }
   0x3   :  { %13 = vsyncpa [#allocation4], 0 }
   0x4   :  { %15 = vsyncpa [#allocation4 + $0x1], 0  ;;  %s9309_s18 = smov 0   ;;  %s9311_s19 = smov 0  }
   0x5   :  { %s9313_s20 = smov 0   ;;  %s9315_s21 = smov 0  }
   0x6 LB: > { %s9330_s22 = sadd.s32 4294967295, %s9265_s21   ;;  %s7053_s23 = sadd.s32 4294967294, %s9265_s21   ;;  %s9265_s21 = sphi %s9315_s21, %s11500_s21   ;;  %s9261_s20 = sphi %s9313_s20, %s11499_s20   ;;  %s9257_s19 = sphi %s9311_s19, %s11498_s19   ;;  %s9253_s18 = sphi %s9309_s18, %s11497_s18  }
   0x7   : > { %s9334_s24 = sadd.s32 1, %s9265_s21   ;;  %s138_s25 = sadd.s32 1, %s9261_s20 }
   0x8   : > { %s135_s26 = ssub.s32 %s9265_s21, %s9334_s24  ;;  %p148_p0 = scmp.ne.s32.totalorder %s9261_s20, %s9257_s19 }
   0x9   : > { %p136_p1 = scmp.eq.s32.totalorder %s135_s26, 0  ;;  %p149_p2 = scmp.eq.s32.totalorder %s9330_s22, 1 }
   0xa   : > { %p154_p3 = scmp.ne.s32.totalorder %s9257_s19, %s9253_s18  ;;  %p155_p4 = scmp.eq.s32.totalorder %s7053_s23, 1 }
   0xb   : > { %s9345_s27 = scalar_select %p136_p1, %s9261_s20, %s138_s25  }
   0xc   : > { %p9347_p5 = por %p149_p2, %p148_p0  ;;  %p9351_p6 = por %p155_p4, %p154_p3 }
   0xd   : > { %p7054_p7 = scmp.ge.s32.totalorder %s9265_s21, 1  ;;  %p162_p8 = scmp.lt.s32.totalorder %s9265_s21, 3 }
   0xe   : > { %p8645_p9 = scmp.eq.s32.totalorder %s9330_s22, 0  ;;  %s9267_s6 = smov [#allocation5]  }
   0xf   : > { %p9358_p10 = pnand %p7054_p7, %p162_p8  ;;  %s188_s7 = sshll.u32 %s9267_s6, 4  ;;  %s189_s7 = int_to_ptr.vmem [resolvable:$true] %s188_s7 }
  0x10   : > { %s9268_s8 = smov [#allocation2]   ;;  %s9269_s11 = smov [#allocation7]  }
  0x11   : > { %p8628_p11 = pneg %p9358_p10  ;;  %s174_s9 = sshll.u32 %s9268_s8, 4  ;;  %s9370_s9 = int_to_ptr.vmem [resolvable:$true] %s174_s9 }
  0x12   : > { %s198_s12 = sshll.u32 %s9269_s11, 4  ;;  %s9100_s13 = scalar_lea.vmem %s189_s7, 16  ;;  %s199_s12 = int_to_ptr.vmem [resolvable:$true] %s198_s12 }
  0x13   : > { %p9366_p12 = pnand %p8645_p9, %p8628_p11  ;;  %p9101_p0 = scmp.ne.s32.totalorder %s189_s7, %s9100_s13 }
  0x14   : > { %s9107_s14 = scalar_lea.vmem %s189_s7, 32  ;;  %p9108_p3 = scmp.lt.s32.totalorder %s189_s7, %s189_s7 }
  0x15   : > { %p9091_p13 = pneg %p9366_p12  ;;  %p9109_p4 = scmp.lt.s32.totalorder %s9107_s14, %s9100_s13 }
  0x17   : > { %p9103_p1 = pnand %p9101_p0, %p9091_p13  ;;  %p9110_p7 = por %p9109_p4, %p9108_p3 }
  0x19   : > { %p9104_p2 = pneg %p9103_p1 }
  0x1b   : > { %p9111_p8 = pnand %p9110_p7, %p9104_p2 }
  0x1d   : > { %9114 = shalt.err (!%p9111_p8)
}
  0x1e   : > { %8634 = dma.hbm_to_vmem [thread:$0]  (!%p9366_p12), %s11232_s2, 16, %s189_s7, [#allocation6]  }
  0x1f   : > { %s9126_s17 = scalar_lea.vmem %s9370_s9, 36864  ;;  %p9134_p3 = scmp.lt.s32.totalorder %s9370_s9, %s9370_s9 }
  0x20   : > { %p9127_p11 = scmp.ne.s32.totalorder %s9370_s9, %s9126_s17  ;;  %p9135_p2 = scmp.lt.s32.totalorder %s9126_s17, %s9126_s17 }
  0x22   : > { %p9129_p0 = pnand %p9127_p11, %p9091_p13  ;;  %p9136_p4 = por %p9135_p2, %p9134_p3 }
  0x24   : > { %p9130_p1 = pneg %p9129_p0 }
  0x26   : > { %p9137_p7 = pnand %p9136_p4, %p9130_p1 }
  0x28   : > { %9140 = shalt.err (!%p9137_p7)
}
  0x29   : > { %s9270_s23 = smov 64   ;;  %s9271_s25 = smov 4  }
  0x2a   : > { %8631 = dma.hbm_to_vmem [thread:$0]  (!%p9366_p12), %s11231_s1, 36864, %s9370_s9, [#allocation3], %s9270_s23, %s9270_s23, %s9271_s25  }
  0x2b   : > { %s9152_s7 = scalar_lea.vmem %s199_s12, 9216  ;;  %p9160_p3 = scmp.lt.s32.totalorder %s199_s12, %s199_s12 }
  0x2c   : > { %p9153_p8 = scmp.ne.s32.totalorder %s199_s12, %s9152_s7  ;;  %p9161_p1 = scmp.lt.s32.totalorder %s9152_s7, %s9152_s7 }
  0x2e   : > { %p9155_p11 = pnand %p9153_p8, %p9091_p13  ;;  %p9162_p2 = por %p9161_p1, %p9160_p3 }
  0x30   : > { %p9156_p0 = pneg %p9155_p11 }
  0x32   : > { %p9163_p4 = pnand %p9162_p2, %p9156_p0 }
  0x34   : > { %9166 = shalt.err (!%p9163_p4)
}
  0x35   : > { %8637 = dma.hbm_to_vmem [thread:$0]  (!%p9366_p12), %s11233_s3, 9216, %s199_s12, [#allocation6], %s9270_s23, %s9270_s23, %s9271_s25  }
  0x36   : > { %s9272_s9 = smov [#allocation8]  }
  0x37   : > { %s212_s13 = sshll.u32 %s9272_s9, 4  ;;  %s213_s13 = int_to_ptr.vmem [resolvable:$true] %s212_s13 }
  0x38   : > { %s9178_s14 = scalar_lea.vmem %s213_s13, 16  ;;  %s9185_s15 = scalar_lea.vmem %s213_s13, 32 }
  0x39   : > { %p9179_p7 = scmp.ne.s32.totalorder %s213_s13, %s9178_s14  ;;  %p9186_p3 = scmp.lt.s32.totalorder %s213_s13, %s213_s13 }
  0x3a   : > { %p9187_p0 = scmp.lt.s32.totalorder %s9185_s15, %s9178_s14 }
  0x3b   : > { %p9181_p8 = pnand %p9179_p7, %p9091_p13 }
  0x3c   : > { %p9188_p1 = por %p9187_p0, %p9186_p3 }
  0x3d   : > { %p9182_p11 = pneg %p9181_p8 }
  0x3f   : > { %p9189_p2 = pnand %p9188_p1, %p9182_p11 }
  0x41   : > { %9192 = shalt.err (!%p9189_p2)
}
  0x42   : > { %8640 = dma.hbm_to_vmem [thread:$0]  (!%p9366_p12), %s11234_s4, 16, %s213_s13, [#allocation9]  }
  0x43   : > { %233 = sbr.rel (%p9358_p10) target bundleno = 1117 (0x45d), region = 40 }
  0x48   : > { %9236 = dma.done.wait (%p8645_p9), [#allocation3], 36864  }
  0x49   : > { %9238 = vsyncadd (%p8645_p9), [#allocation3], 4294930432 }
  0x4a   : > { %9240 = dma.done.wait (%p8645_p9), [#allocation6], 9232  }
  0x4b   : > { %9242 = vsyncadd (%p8645_p9), [#allocation6], 4294958064 }
  0x4c   : > { %9244 = dma.done.wait (%p8645_p9), [#allocation9], 16  }
  0x4d   : > { %9246 = vsyncadd (%p8645_p9), [#allocation9], 4294967280  ;;  %v8697_v0 = vld [vmem:[#allocation2 + $0x178] sm:$0xff]   ;;  %v8701_v4 = vld [vmem:[#allocation2 + $0x170] sm:$0xff]   ;;  %p273_p9 = scmp.lt.s32.totalorder %s9330_s22, 1  ;;  %vm727_vm1 = vcmask 1040384  }
  0x4e   : > { %v8698_v1 = vld [vmem:[#allocation2 + $0x1f8] sm:$0xff]   ;;  %7629 = vmatprep.subr.bf16.mxu0 %v8697_v0  ;;  %v8702_v5 = vld [vmem:[#allocation2 + $0x1f0] sm:$0xff]   ;;  %v8705_v8 = vld [vmem:[#allocation2 + $0x168] sm:$0xff]   ;;  %vm728_vm0 = vsmask.f32 256  ;;  %vm762_vm2 = vcmask 1044480  }
  0x4f   : > { %v8699_v2 = vld [vmem:[#allocation2 + $0x138] sm:$0xff]   ;;  %7669 = vmatprep.subr.bf16.mxu1 %v8698_v1  ;;  %v8703_v6 = vld [vmem:[#allocation2 + $0x130] sm:$0xff]   ;;  %v8706_v9 = vld [vmem:[#allocation2 + $0x1e8] sm:$0xff]   ;;  %s274_s30 = scalar_select %p273_p9, %s9330_s22, 1  ;;  %vm763_vm3 = vsmask.f32 4352 }
  0x50   : > { %v8700_v3 = vld [vmem:[#allocation2 + $0x1b8] sm:$0xff]   ;;  %7630 = vmatpush3.bf16.msra.mxu0 %v8699_v2  ;;  %v8704_v7 = vld [vmem:[#allocation2 + $0x1b0] sm:$0xff]   ;;  %v8707_v10 = vld [vmem:[#allocation2 + $0x128] sm:$0xff]   ;;  %v11327_v62 = vmov 0  ;;  %vm973_vm6 = vsmask.f32 3328 }
  0x51   : > { %7670 = vmatpush3.bf16.msra.mxu1 %v8700_v3  ;;  %7631 = vmatprep.subr.bf16.mxu0 %v8701_v4  ;;  %v8708_v11 = vld [vmem:[#allocation2 + $0x1a8] sm:$0xff]   ;;  %v8709_v12 = vld [vmem:[#allocation2 + $0x160] sm:$0xff]   ;;  %v8713_v16 = vld [vmem:[#allocation2 + $0x158] sm:$0xff]   ;;  %s7627_s10 = sshll.u32 %s274_s30, 7  ;;  %v11330_v3 = vmov 0  ;;  %vm1973_vm9 = vcmask 1042432  }
  0x52   : > { %7671 = vmatprep.subr.bf16.mxu1 %v8702_v5  ;;  %v8710_v13 = vld [vmem:[#allocation2 + $0x1e0] sm:$0xff]   ;;  %v8714_v17 = vld [vmem:[#allocation2 + $0x1d8] sm:$0xff]   ;;  %v8717_v20 = vld [vmem:[#allocation2 + $0x150] sm:$0xff]   ;;  %s9430_s25 = scalar_lea.vmem %s11230_s0, %s7627_s10  ;;  %vm974_vm7 = vsmask.f32 7440  ;;  %vm1974_vm10 = vcmask 1046532  }
  0x53   : > { %v8711_v14 = vld [vmem:[#allocation2 + $0x120] sm:$0xff]   ;;  %v8715_v18 = vld [vmem:[#allocation2 + $0x118] sm:$0xff]   ;;  %v8718_v21 = vld [vmem:[#allocation2 + $0x1d0] sm:$0xff]   ;;  %vm9274_vm12 = vmmov 0   ;;  %vm5228_vm13 = vcmask 1041408   ;;  %vm5519_vm14 = vcmask 1042434  }
  0x54   : > { %7632 = vmatpush3.bf16.msra.mxu0 %v8703_v6  ;;  %v8712_v15 = vld [vmem:[#allocation2 + $0x1a0] sm:$0xff]   ;;  %v8716_v19 = vld [vmem:[#allocation2 + $0x198] sm:$0xff]   ;;  %v8719_v22 = vld [vmem:[#allocation2 + $0x110] sm:$0xff]   ;;  %vm5522_vm15 = vcmask 1043459   ;;  %s270_s26 = sand.u32 1, %s9257_s19   ;;  %s7628_s7 = sshll.u32 %s9330_s22, 6 }
  0x55   : > { %7672 = vmatpush3.bf16.msra.mxu1 %v8704_v7  ;;  %7633 = vmatprep.subr.bf16.mxu0 %v8705_v8  ;;  %v8720_v23 = vld [vmem:[#allocation2 + $0x190] sm:$0xff]   ;;  %v8721_v24 = vld [vmem:[#allocation2 + $0x148] sm:$0xff]   ;;  %v8725_v28 = vld [vmem:[#allocation2 + $0x140] sm:$0xff]   ;;  %s7065_s6 = sshll.u32 %s270_s26, 2  ;;  %s11183_s14 = scalar_lea.hbm %s11235_s5, %s7628_s7 }
  0x56   : > { %7673 = vmatprep.subr.bf16.mxu1 %v8706_v9  ;;  %v8722_v25 = vld [vmem:[#allocation2 + $0x1c8] sm:$0xff]   ;;  %v8726_v29 = vld [vmem:[#allocation2 + $0x1c0] sm:$0xff]   ;;  %v281_v33 = vld [vmem:[%s9430_s25 + $0x10] sm:$0xff]  ;;  %s272_s8 = scalar_lea.vmem [#allocation10], %s7065_s6  ;;  %s11190_s22 = scalar_lea.sflag [#allocation4], %s270_s26 }
  0x57   : > { %v8723_v26 = vld [vmem:[#allocation2 + $0x108] sm:$0xff]   ;;  %v8727_v30 = vld [vmem:[#allocation2 + $0x100] sm:$0xff]   ;;  %v7068_v35 = vcombine.low %v281_v33, %v281_v33  ;;  %v7069_v36 = vcombine.high %v281_v33, %v281_v33  ;;  %v282_v39 = vld [vmem:[%s9430_s25 + $0x18] sm:$0xff]  ;;  %s6950_s11 = sshll.u32 %s272_s8, 4  ;;  %s9276_s16 = smov [#allocation10]   ;;  %s11185_s11 = int_to_ptr.vmem [resolvable:$true] %s6950_s11 }
  0x58   : > { %7634 = vmatpush3.bf16.msra.mxu0 %v8707_v10  ;;  %v8724_v27 = vld [vmem:[#allocation2 + $0x188] sm:$0xff]   ;;  %v8728_v31 = vld [vmem:[#allocation2 + $0x180] sm:$0xff]   ;;  %v9436_v40 = vcombine.low %v282_v39, %v282_v39  ;;  %v9438_v41 = vcombine.high %v282_v39, %v282_v39  ;;  %v8737_v44 = vld [vmem:[#allocation2 + $0x78] sm:$0xff]   ;;  %s9193_s15 = scalar_lea.vmem %s11185_s11, 64  ;;  %s9197_s17 = sshll.u32 %s9276_s16, 4  ;;  %s9198_s17 = int_to_ptr.vmem [resolvable:$false] %s9197_s17 }
  0x59   : > { %7674 = vmatpush3.bf16.msra.mxu1 %v8708_v11  ;;  %7635 = vmatprep.subr.bf16.mxu0 %v8709_v12  ;;  %v279_v32 = vld [vmem:[%s9430_s25] sm:$0xff]  ;;  %v280_v34 = vld [vmem:[%s9430_s25 + $0x8] sm:$0xff]  ;;  %v376_v45 = vshrl.u32 %v7068_v35, 16  ;;  %v379_v46 = vshrl.u32 %v7069_v36, 16  ;;  %v8738_v49 = vld [vmem:[#allocation2 + $0xf8] sm:$0xff]   ;;  %v504_v50 = vshll.u32 %v7068_v35, 16  ;;  %p9194_p10 = scmp.ne.s32.totalorder %s11185_s11, %s9193_s15  ;;  %p9200_p4 = scmp.lt.s32.totalorder %s11185_s11, %s9198_s17 }
  0x5a   : > { %7675 = vmatprep.subr.bf16.mxu1 %v8710_v13  ;;  %v7072_v37 = vcombine.low %v279_v32, %v279_v32  ;;  %v7073_v38 = vcombine.high %v279_v32, %v279_v32  ;;  %v9440_v42 = vcombine.low %v280_v34, %v280_v34  ;;  %v9442_v43 = vcombine.high %v280_v34, %v280_v34  ;;  %vm9446_vm4 = vmand %vm727_vm1, %vm728_vm0  ;;  %s9199_s30 = scalar_lea.vmem %s9198_s17, 128 }
  0x5b   : > { %v508_v51 = vshll.u32 %v7069_v36, 16  ;;  %v503_v54 = vrot.slane %v376_v45, 7  ;;  %v507_v55 = vrot.slane %v379_v46, 7  ;;  %v663_v58 = vrot.slane %v504_v50, 7  ;;  %vm9452_vm5 = vmand %vm762_vm2, %vm763_vm3  ;;  %p9195_p12 = pnand %p9194_p10, %p9347_p5  ;;  %p9201_p7 = scmp.lt.s32.totalorder %s9199_s30, %s9193_s15 }
  0x5c   : > { %7636 = vmatpush3.bf16.msra.mxu0 %v8711_v14  ;;  %v388_v47 = vshrl.u32 %v7072_v37, 16  ;;  %v391_v48 = vshrl.u32 %v7073_v38, 16  ;;  %v520_v52 = vshll.u32 %v7072_v37, 16  ;;  %v524_v53 = vshll.u32 %v7073_v38, 16  ;;  %vm9512_vm8 = vmor %vm973_vm6, %vm974_vm7 }
  0x5d   : > { %7676 = vmatpush3.bf16.msra.mxu1 %v8712_v15  ;;  %7637 = vmatprep.subr.bf16.mxu0 %v8713_v16  ;;  %v664_v59 = vrot.slane %v508_v51, 7  ;;  %v11328_v62 = vsel %vm9446_vm4, 4294967295, %v11327_v62  ;;  %v506_v63 = vor.u32 %v504_v50, %v503_v54  ;;  %v510_v0 = vor.u32 %v508_v51, %v507_v55  ;;  %vm9995_vm11 = vmor %vm1973_vm9, %vm1974_vm10  ;;  %p9196_p13 = pneg %p9195_p12  ;;  %p9202_p8 = por %p9201_p7, %p9200_p4 }
  0x5e   : > { %7677 = vmatprep.subr.bf16.mxu1 %v8714_v17  ;;  %v519_v56 = vrot.slane %v388_v47, 7  ;;  %v523_v57 = vrot.slane %v391_v48, 7  ;;  %v667_v60 = vrot.slane %v520_v52, 7  ;;  %v668_v61 = vrot.slane %v524_v53, 7  ;;  %11329 = vst [vmem:[#allocation15_spill] sm:$0xff] %v11328_v62 }
  0x5f   : > { %v11331_v3 = vsel %vm9452_vm5, 4294967295, %v11330_v3  ;;  %v382_v4 = vshrl.u32 %v9436_v40, 16  ;;  %v385_v5 = vshrl.u32 %v9438_v41, 16  ;;  %v394_v6 = vshrl.u32 %v9440_v42, 16  ;;  %p9203_p11 = pnand %p9202_p8, %p9196_p13 }
  0x60   : > { %7638 = vmatpush3.bf16.msra.mxu0 %v8715_v18  ;;  %v522_v1 = vor.u32 %v520_v52, %v519_v56  ;;  %v526_v2 = vor.u32 %v524_v53, %v523_v57  ;;  %11332 = vst [vmem:[#allocation16_spill] sm:$0xff] %v11331_v3  ;;  %v397_v7 = vshrl.u32 %v9442_v43, 16  ;;  %v730_v8 = vsel %vm9446_vm4, %v376_v45, %v506_v63 }
  0x61   : > { %7678 = vmatpush3.bf16.msra.mxu1 %v8716_v19  ;;  %7639 = vmatprep.subr.bf16.mxu0 %v8717_v20  ;;  %v731_v9 = vsel %vm9446_vm4, %v379_v46, %v510_v0  ;;  %v9470_v12 = vsel %vm9452_vm5, %v730_v8, %v663_v58  ;;  %v511_v20 = vrot.slane %v382_v4, 7  ;;  %v527_v38 = vrot.slane %v394_v6, 7 }
  0x62   : > { %7679 = vmatprep.subr.bf16.mxu1 %v8718_v21  ;;  %v734_v10 = vsel %vm9446_vm4, %v388_v47, %v522_v1  ;;  %v735_v11 = vsel %vm9446_vm4, %v391_v48, %v526_v2  ;;  %v9474_v13 = vsel %vm9452_vm5, %v731_v9, %v664_v59  ;;  %v512_v21 = vshll.u32 %v9436_v40, 16  ;;  %v283_v2 = vld [vmem:[%s9430_s25 + $0x20] sm:$0xff] }
  0x63   : > { %v9478_v14 = vsel %vm9452_vm5, %v734_v10, %v667_v60  ;;  %v9482_v15 = vsel %vm9452_vm5, %v735_v11, %v668_v61  ;;  %v9486_v16 = vcombine.low %v9470_v12, %v9474_v13  ;;  %v9490_v17 = vcombine.high %v9470_v12, %v9474_v13 }
  0x64   : > { %7640 = vmatpush3.bf16.msra.mxu0 %v8719_v22  ;;  %v9494_v18 = vcombine.low %v9478_v14, %v9482_v15  ;;  %v9498_v19 = vcombine.high %v9478_v14, %v9482_v15  ;;  %v515_v22 = vrot.slane %v385_v5, 7  ;;  %v528_v39 = vshll.u32 %v9440_v42, 16 }
  0x65   : > { %7680 = vmatpush3.bf16.msra.mxu1 %v8720_v23  ;;  %7641 = vmatprep.subr.bf16.mxu0 %v8721_v24  ;;  %v516_v23 = vshll.u32 %v9438_v41, 16  ;;  %v977_v24 = vshrl.u32 %v9486_v16, 16  ;;  %v531_v41 = vrot.slane %v397_v7, 7  ;;  %v665_v45 = vrot.slane %v512_v21, 7 }
  0x66   : > { %7681 = vmatprep.subr.bf16.mxu1 %v8722_v25  ;;  %v980_v25 = vshll.u32 %v9486_v16, 16  ;;  %v11333_v46 = vmov 0  ;;  %v530_v48 = vor.u32 %v528_v39, %v527_v38  ;;  %v669_v50 = vrot.slane %v528_v39, 7  ;;  %v8749_v39 = vld [vmem:[#allocation2 + $0x68] sm:$0xff]  }
  0x67   : > { %v979_v32 = vrot.slane %v977_v24, 4  ;;  %v11334_v46 = vsel %vm9512_vm8, 4294967295, %v11333_v46  ;;  %v8743_v24 = vld [vmem:[#allocation2 + $0x30] sm:$0xff]   ;;  %vm5525_vm0 = vcmask 1044484   ;;  %vm5580_vm2 = vsmask.f32 2304 }
  0x68   : > { %7642 = vmatpush3.bf16.msra.mxu0 %v8723_v26  ;;  %v986_v26 = vshll.u32 %v9490_v17, 16  ;;  %v982_v33 = vrot.slane %v980_v25, 5  ;;  %11335 = vst [vmem:[#allocation17_spill] sm:$0xff] %v11334_v46  ;;  %v736_v55 = vsel %vm9446_vm4, %v394_v6, %v530_v48  ;;  %v7076_v25 = vcombine.low %v283_v2, %v283_v2  ;;  %vm10839_vm3 = vmand %vm1973_vm9, %vm5580_vm2 }
  0x69   : > { %7682 = vmatpush3.bf16.msra.mxu1 %v8724_v27  ;;  %7643 = vmatprep.subr.bf16.mxu0 %v8725_v28  ;;  %v1005_v27 = vshrl.u32 %v9494_v18, 16  ;;  %v1008_v28 = vshll.u32 %v9494_v18, 16  ;;  %v9538_v60 = vsel %vm9452_vm5, %v736_v55, %v669_v50  ;;  %vm5630_vm6 = vsmask.f32 3336  ;;  %vm5910_vm2 = vmor %vm727_vm1, %vm5519_vm14 }
  0x6a   : > { %7683 = vmatprep.subr.bf16.mxu1 %v8726_v29  ;;  %v1014_v29 = vshll.u32 %v9498_v19, 16  ;;  %v988_v34 = vrot.slane %v986_v26, 5  ;;  %v983_v40 = vor.u32 %v982_v33, %v979_v32  ;;  %vm5632_vm7 = vsmask.f32 5392 }
  0x6b   : > { %v1007_v35 = vrot.slane %v1005_v27, 4  ;;  %v1010_v36 = vrot.slane %v1008_v28, 5 }
  0x6c   : > { %7644 = vmatpush3.bf16.msra.mxu0 %v8727_v30  ;;  %v514_v30 = vor.u32 %v512_v21, %v511_v20  ;;  %v1016_v37 = vrot.slane %v1014_v29, 5  ;;  %v984_v51 = vrot.slane %v983_v40, 4  ;;  %v8741_v20 = vld [vmem:[#allocation2 + $0x70] sm:$0xff]   ;;  %v7077_v29 = vcombine.high %v283_v2, %v283_v2 }
  0x6d   : > { %7684 = vmatpush3.bf16.msra.mxu1 %v8728_v31  ;;  %7709 = vmatprep.subr.bf16.mxu0 %v8737_v44  ;;  %v518_v31 = vor.u32 %v516_v23, %v515_v22  ;;  %v532_v44 = vshll.u32 %v9442_v43, 16  ;;  %v1011_v47 = vor.u32 %v1010_v36, %v1007_v35 }
  0x6e   : > { %7749 = vmatprep.subr.bf16.mxu1 %v8738_v49  ;;  %v666_v49 = vrot.slane %v516_v23, 7  ;;  %v732_v42 = vsel %vm9446_vm4, %v382_v4, %v514_v30  ;;  %v9528_v57 = vsel %vm9512_vm8, %v984_v51, %v988_v34  ;;  %v284_v30 = vld [vmem:[%s9430_s25 + $0x28] sm:$0xff]  ;;  %v400_v34 = vshrl.u32 %v7076_v25, 16 }
  0x6f   : > { %v534_v52 = vor.u32 %v532_v44, %v531_v41  ;;  %v670_v53 = vrot.slane %v532_v44, 7  ;;  %v1012_v54 = vrot.slane %v1011_v47, 4  ;;  %v733_v43 = vsel %vm9446_vm4, %v385_v5, %v518_v31  ;;  %11336 = vst [vmem:[#allocation18_spill] sm:$0xff] %v9528_v57  ;;  %v8751_v47 = vld [vmem:[#allocation2 + $0x28] sm:$0xff]  }
  0x70   : > { %v9524_v56 = vsel %vm9452_vm5, %v732_v42, %v665_v45  ;;  %v9534_v59 = vsel %vm9452_vm5, %v733_v43, %v666_v49  ;;  %v403_v36 = vshrl.u32 %v7077_v29, 16  ;;  %v540_v38 = vshll.u32 %v7077_v29, 16  ;;  %v8753_v43 = vld [vmem:[#allocation2 + $0x60] sm:$0xff]  }
  0x71   : > { %v737_v58 = vsel %vm9446_vm4, %v397_v7, %v534_v52  ;;  %v9542_v61 = vsel %vm9512_vm8, %v1012_v54, %v1016_v37  ;;  %v9550_v0 = vcombine.low %v9524_v56, %v9534_v59  ;;  %v9554_v1 = vcombine.high %v9524_v56, %v9534_v59  ;;  %v8739_v7 = vld [vmem:[#allocation2 + $0x38] sm:$0xff]   ;;  %v8755_v29 = vld [vmem:[#allocation2 + $0x20] sm:$0xff]  }
  0x72   : > { %11337 = vst [vmem:[#allocation19_spill] sm:$0xff] %v9542_v61  ;;  %v9546_v63 = vsel %vm9452_vm5, %v737_v58, %v670_v53  ;;  %v7129_v4 = vcombine.high %v9528_v57, %v9542_v61  ;;  %v7128_v11 = vcombine.low %v9528_v57, %v9542_v61  ;;  %v536_v37 = vshll.u32 %v7076_v25, 16  ;;  %v8740_v58 = vld [vmem:[#allocation2 + $0xb8] sm:$0xff]  }
  0x73   : > { %11338 = vst [vmem:[#allocation20_spill] sm:$0xff] %v9550_v0  ;;  %11339 = vst [vmem:[#allocation21_spill] sm:$0xff] %v9554_v1  ;;  %v9561_v5 = vcombine.low %v9538_v60, %v9546_v63  ;;  %v9565_v6 = vcombine.high %v9538_v60, %v9546_v63  ;;  %v991_v8 = vshrl.u32 %v9550_v0, 16  ;;  %v994_v9 = vshll.u32 %v9550_v0, 16 }
  0x74   : > { %v1000_v10 = vshll.u32 %v9554_v1, 16  ;;  %1521 = vmatprep.mubr.bf16.mxu0 %v7129_v4  ;;  %v535_v41 = vrot.slane %v400_v34, 7  ;;  %v7078_v44 = vcombine.low %v284_v30, %v284_v30  ;;  %v7079_v45 = vcombine.high %v284_v30, %v284_v30 }
  0x75   : > { %11340 = vst [vmem:[#allocation22_spill] sm:$0xff] %v9561_v5  ;;  %11341 = vst [vmem:[#allocation23_spill] sm:$0xff] %v9565_v6  ;;  %v1019_v21 = vshrl.u32 %v9561_v5, 16  ;;  %v1022_v22 = vshll.u32 %v9561_v5, 16  ;;  %v1028_v23 = vshll.u32 %v9565_v6, 16  ;;  %v993_v26 = vrot.slane %v991_v8, 4  ;;  %1522 = vmatmul.mubr.bf16.vlgmr.msra.gmra.mxu0 %v7128_v11 }
  0x76   : > { %v996_v27 = vrot.slane %v994_v9, 5  ;;  %v1002_v28 = vrot.slane %v1000_v10, 5  ;;  %7710 = vmatpush3.bf16.msra.mxu0 %v8739_v7  ;;  %v539_v49 = vrot.slane %v403_v36, 7  ;;  %v671_v50 = vrot.slane %v536_v37, 7  ;;  %v8742_v9 = vld [vmem:[#allocation2 + $0xf0] sm:$0xff]  }
  0x77   : > { %v1021_v31 = vrot.slane %v1019_v21, 4  ;;  %v1024_v32 = vrot.slane %v1022_v22, 5  ;;  %v1030_v33 = vrot.slane %v1028_v23, 5  ;;  %7711 = vmatprep.subr.bf16.mxu0 %v8741_v20  ;;  %v672_v51 = vrot.slane %v540_v38, 7  ;;  %v285_v21 = vld [vmem:[%s9430_s25 + $0x30] sm:$0xff] }
  0x78   : > { %v997_v35 = vor.u32 %v996_v27, %v993_v26  ;;  %v538_v53 = vor.u32 %v536_v37, %v535_v41  ;;  %v406_v42 = vshrl.u32 %v7078_v44, 16  ;;  %v409_v54 = vshrl.u32 %v7079_v45, 16 }
  0x79   : > { %v1025_v40 = vor.u32 %v1024_v32, %v1021_v31  ;;  %v542_v2 = vor.u32 %v540_v38, %v539_v49  ;;  %v544_v4 = vshll.u32 %v7078_v44, 16  ;;  %v548_v7 = vshll.u32 %v7079_v45, 16 }
  0x7a   : > { %v998_v48 = vrot.slane %v997_v35, 4  ;;  %7712 = vmatpush3.bf16.msra.mxu0 %v8743_v24  ;;  %v738_v10 = vsel %vm9446_vm4, %v400_v34, %v538_v53  ;;  %v543_v11 = vrot.slane %v406_v42, 7  ;;  %v547_v20 = vrot.slane %v409_v54, 7  ;;  %v287_v34 = vld [vmem:[%s9430_s25 + $0x40] sm:$0xff]  ;;  %v8765_v35 = vld [vmem:[#allocation2 + $0x58] sm:$0xff]  }
  0x7b   : > { %v1026_v52 = vrot.slane %v1025_v40, 4  ;;  %7713 = vmatprep.subr.bf16.mxu0 %v8749_v39  ;;  %v739_v24 = vsel %vm9446_vm4, %v403_v36, %v542_v2  ;;  %v9595_v25 = vsel %vm9452_vm5, %v738_v10, %v671_v50  ;;  %v673_v32 = vrot.slane %v544_v4, 7  ;;  %v8744_v36 = vld [vmem:[#allocation2 + $0xb0] sm:$0xff]   ;;  %v8767_v53 = vld [vmem:[#allocation2 + $0x18] sm:$0xff]   ;;  %v8752_v2 = vld [vmem:[#allocation2 + $0xa8] sm:$0xff]  }
  0x7c   : > { %v9578_v55 = vsel %vm9512_vm8, %v998_v48, %v1002_v28  ;;  %v9599_v26 = vsel %vm9452_vm5, %v739_v24, %v672_v51  ;;  %v546_v27 = vor.u32 %v544_v4, %v543_v11  ;;  %v550_v28 = vor.u32 %v548_v7, %v547_v20  ;;  %v8750_v48 = vld [vmem:[#allocation2 + $0xe8] sm:$0xff]   ;;  %v8769_v4 = vld [vmem:[#allocation2 + $0x50] sm:$0xff]  }
  0x7d   : > { %11342 = vst [vmem:[#allocation24_spill] sm:$0xff] %v9578_v55  ;;  %v9582_v8 = vsel %vm9512_vm8, %v1026_v52, %v1030_v33  ;;  %v9603_v30 = vcombine.low %v9595_v25, %v9599_v26  ;;  %v9607_v31 = vcombine.high %v9595_v25, %v9599_v26  ;;  %v674_v33 = vrot.slane %v548_v7, 7 }
  0x7e   : > { %11343 = vst [vmem:[#allocation25_spill] sm:$0xff] %v9582_v8  ;;  %v7131_v22 = vcombine.high %v9578_v55, %v9582_v8  ;;  %v7130_v23 = vcombine.low %v9578_v55, %v9582_v8  ;;  %7714 = vmatpush3.bf16.msra.mxu0 %v8751_v47  ;;  %v740_v37 = vsel %vm9446_vm4, %v406_v42, %v546_v27 }
  0x7f   : > { %11344 = vst [vmem:[#allocation26_spill] sm:$0xff] %v9603_v30  ;;  %11345 = vst [vmem:[#allocation27_spill] sm:$0xff] %v9607_v31  ;;  %7715 = vmatprep.subr.bf16.mxu0 %v8753_v43  ;;  %v741_v38 = vsel %vm9446_vm4, %v409_v54, %v550_v28  ;;  %v9614_v39 = vcombine.low %v285_v21, %v285_v21  ;;  %v9616_v40 = vcombine.high %v285_v21, %v285_v21  ;;  %v8771_v21 = vld [vmem:[#allocation2 + $0x10] sm:$0xff]   ;;  %v8781_v28 = vld [vmem:[#allocation2 + $0x48] sm:$0xff]  }
  0x80   : > { %1586 = vmatprep.mubr.bf16.mxu1 %v7131_v22  ;;  %v1033_v41 = vshrl.u32 %v9603_v30, 16  ;;  %v1036_v44 = vshll.u32 %v9603_v30, 16  ;;  %v1042_v45 = vshll.u32 %v9607_v31, 16  ;;  %v9623_v47 = vsel %vm9452_vm5, %v740_v37, %v673_v32 }
  0x81   : > { %1587 = vmatmul.mubr.bf16.vlgmr.msra.gmra.mxu1 %v7130_v23  ;;  %11346 = vst [vmem:[#allocation28_spill] sm:$0xff] %v9623_v47  ;;  %v9627_v49 = vsel %vm9452_vm5, %v741_v38, %v674_v33  ;;  %v9629_v50 = vcombine.low %v287_v34, %v287_v34  ;;  %v9631_v51 = vcombine.high %v287_v34, %v287_v34  ;;  %v412_v52 = vshrl.u32 %v9614_v39, 16 }
  0x82   : > { %7750 = vmatpush3.bf16.msra.mxu1 %v8740_v58  ;;  %11347 = vst [vmem:[#allocation29_spill] sm:$0xff] %v9627_v49  ;;  %7716 = vmatpush3.bf16.msra.mxu0 %v8755_v29  ;;  %v1035_v42 = vrot.slane %v1033_v41, 4  ;;  %v1038_v54 = vrot.slane %v1036_v44, 5  ;;  %v1044_v43 = vrot.slane %v1042_v45, 5  ;;  %v9636_v58 = vcombine.low %v9623_v47, %v9627_v49 }
  0x83   : > { %7751 = vmatprep.subr.bf16.mxu1 %v8742_v9  ;;  %7717 = vmatprep.subr.bf16.mxu0 %v8765_v35  ;;  %v9640_v7 = vcombine.high %v9623_v47, %v9627_v49  ;;  %v8754_v9 = vld [vmem:[#allocation2 + $0xe0] sm:$0xff]   ;;  %v415_v10 = vshrl.u32 %v9616_v40, 16  ;;  %v424_v11 = vshrl.u32 %v9629_v50, 16  ;;  %v427_v20 = vshrl.u32 %v9631_v51, 16 }
  0x84   : > { %11348 = vst [vmem:[#allocation30_spill] sm:$0xff] %v9636_v58  ;;  %v1039_v22 = vor.u32 %v1038_v54, %v1035_v42  ;;  %v1047_v23 = vshrl.u32 %v9636_v58, 16  ;;  %v1050_v24 = vshll.u32 %v9636_v58, 16  ;;  %v551_v27 = vrot.slane %v412_v52, 7  ;;  %v289_v58 = vld [vmem:[%s9430_s25 + $0x50] sm:$0xff] }
  0x85   : > { %11349 = vst [vmem:[#allocation31_spill] sm:$0xff] %v9640_v7  ;;  %v1056_v29 = vshll.u32 %v9640_v7, 16  ;;  %v552_v32 = vshll.u32 %v9614_v39, 16  ;;  %v555_v33 = vrot.slane %v415_v10, 7  ;;  %v556_v34 = vshll.u32 %v9616_v40, 16  ;;  %v8756_v40 = vld [vmem:[#allocation2 + $0xa0] sm:$0xff]  }
  0x86   : > { %7752 = vmatpush3.bf16.msra.mxu1 %v8744_v36  ;;  %7718 = vmatpush3.bf16.msra.mxu0 %v8767_v53  ;;  %v1040_v35 = vrot.slane %v1039_v22, 4  ;;  %v1049_v37 = vrot.slane %v1047_v23, 4  ;;  %v1052_v38 = vrot.slane %v1050_v24, 5  ;;  %v567_v36 = vrot.slane %v424_v11, 7  ;;  %v8766_v24 = vld [vmem:[#allocation2 + $0xd8] sm:$0xff]  }
  0x87   : > { %7753 = vmatprep.subr.bf16.mxu1 %v8750_v48  ;;  %7719 = vmatprep.subr.bf16.mxu0 %v8769_v4  ;;  %v1058_v41 = vrot.slane %v1056_v29, 5  ;;  %v554_v44 = vor.u32 %v552_v32, %v551_v27  ;;  %v558_v45 = vor.u32 %v556_v34, %v555_v33  ;;  %v568_v42 = vshll.u32 %v9629_v50, 16 }
  0x88   : > { %v9653_v48 = vsel %vm9512_vm8, %v1040_v35, %v1044_v43  ;;  %v1053_v39 = vor.u32 %v1052_v38, %v1049_v37  ;;  %v571_v53 = vrot.slane %v427_v20, 7  ;;  %v572_v54 = vshll.u32 %v9631_v51, 16  ;;  %v286_v43 = vld [vmem:[%s9430_s25 + $0x38] sm:$0xff]  ;;  %v288_v35 = vld [vmem:[%s9430_s25 + $0x48] sm:$0xff] }
  0x89   : > { %11350 = vst [vmem:[#allocation32_spill] sm:$0xff] %v9653_v48  ;;  %v9658_v4 = vcombine.high %v9528_v57, %v9653_v48  ;;  %v9662_v22 = vcombine.low %v9528_v57, %v9653_v48  ;;  %v570_v50 = vor.u32 %v568_v42, %v567_v36  ;;  %v675_v23 = vrot.slane %v552_v32, 7  ;;  %v8783_v51 = vld [vmem:[#allocation2 + $0x8] sm:$0xff]   ;;  %v8785_v36 = vld [vmem:[#allocation2 + $0x40] sm:$0xff]  }
  0x8a   : > { %7754 = vmatpush3.bf16.msra.mxu1 %v8752_v2  ;;  %7720 = vmatpush3.bf16.msra.mxu0 %v8771_v21  ;;  %v1054_v2 = vrot.slane %v1053_v39, 4  ;;  %v574_v27 = vor.u32 %v572_v54, %v571_v53  ;;  %v676_v29 = vrot.slane %v556_v34, 7  ;;  %v679_v33 = vrot.slane %v568_v42, 7  ;;  %v8768_v21 = vld [vmem:[#allocation2 + $0x98] sm:$0xff]   ;;  %v8787_v53 = vld [vmem:[#allocation2] sm:$0xff]  }
  0x8b   : > { %11351 = vst [vmem:[#allocation33_spill] sm:$0xff] %v9658_v4  ;;  %11352 = vst [vmem:[#allocation34_spill] sm:$0xff] %v9662_v22  ;;  %7755 = vmatprep.subr.bf16.mxu1 %v8754_v9  ;;  %7721 = vmatprep.subr.bf16.mxu0 %v8781_v28  ;;  %v680_v37 = vrot.slane %v572_v54, 7  ;;  %v742_v38 = vsel %vm9446_vm4, %v412_v52, %v554_v44  ;;  %v743_v9 = vsel %vm9446_vm4, %v415_v10, %v558_v45 }
  0x8c   : > { %1529 = vmatprep.mubr.bf16.mxu0 %v9658_v4  ;;  %v746_v32 = vsel %vm9446_vm4, %v424_v11, %v570_v50  ;;  %v9675_v34 = vsel %vm9512_vm8, %v1054_v2, %v1058_v41  ;;  %v747_v28 = vsel %vm9446_vm4, %v427_v20, %v574_v27  ;;  %v9682_v52 = vsel %vm9452_vm5, %v742_v38, %v675_v23  ;;  %v8770_v20 = vld [vmem:[#allocation2 + $0xd0] sm:$0xff]   ;;  %v8789_v27 = vld [vmem:[#allocation2 + $0x278] sm:$0xff]   ;;  %v8782_v38 = vld [vmem:[#allocation2 + $0xc8] sm:$0xff]  }
  0x8d   : > { %11353 = vst [vmem:[#allocation35_spill] sm:$0xff] %v9675_v34  ;;  %1530 = vmatmul.mubr.bf16.gmra.mxu0 %v9662_v22  ;;  %v9686_v10 = vcombine.high %v9578_v55, %v9675_v34  ;;  %v9690_v11 = vcombine.low %v9578_v55, %v9675_v34  ;;  %v9694_v41 = vsel %vm9452_vm5, %v743_v9, %v676_v29  ;;  %v8772_v2 = vld [vmem:[#allocation2 + $0x90] sm:$0xff]  }
  0x8e   : > { %7756 = vmatpush3.bf16.msra.mxu1 %v8756_v40  ;;  %v9698_v44 = vsel %vm9452_vm5, %v746_v32, %v679_v33  ;;  %v9702_v45 = vsel %vm9452_vm5, %v747_v28, %v680_v37  ;;  %v9706_v42 = vcombine.low %v9682_v52, %v9694_v41  ;;  %v9710_v39 = vcombine.high %v9682_v52, %v9694_v41 }
  0x8f   : > { %11354 = vst [vmem:[#allocation36_spill] sm:$0xff] %v9686_v10  ;;  %11355 = vst [vmem:[#allocation37_spill] sm:$0xff] %v9690_v11  ;;  %7757 = vmatprep.subr.bf16.mxu1 %v8766_v24  ;;  %v9712_v40 = vcombine.low %v286_v43, %v286_v43  ;;  %7722 = vmatpush3.bf16.msra.mxu0 %v8783_v51  ;;  %v9717_v54 = vcombine.low %v9698_v44, %v9702_v45 }
  0x90   : > { %11356 = vst [vmem:[#allocation38_spill] sm:$0xff] %v9698_v44  ;;  %1594 = vmatprep.mubr.bf16.mxu1 %v9686_v10  ;;  %v9721_v50 = vcombine.high %v9698_v44, %v9702_v45  ;;  %v7083_v23 = vcombine.high %v286_v43, %v286_v43  ;;  %v7086_v24 = vcombine.low %v288_v35, %v288_v35  ;;  %v1061_v29 = vshrl.u32 %v9706_v42, 16 }
  0x91   : > { %1595 = vmatmul.mubr.bf16.gmra.mxu1 %v9690_v11  ;;  %v1064_v33 = vshll.u32 %v9706_v42, 16  ;;  %v1070_v51 = vshll.u32 %v9710_v39, 16  ;;  %v7087_v37 = vcombine.high %v288_v35, %v288_v35  ;;  %7723 = vmatprep.subr.bf16.mxu0 %v8785_v36  ;;  %v1089_v9 = vshrl.u32 %v9717_v54, 16 }
  0x92   : > { %v1092_v32 = vshll.u32 %v9717_v54, 16  ;;  %v1098_v43 = vshll.u32 %v9721_v50, 16  ;;  %v418_v28 = vshrl.u32 %v9712_v40, 16  ;;  %7758 = vmatpush3.bf16.msra.mxu1 %v8768_v21  ;;  %v1063_v10 = vrot.slane %v1061_v29, 4 }
  0x93   : > { %v1066_v11 = vrot.slane %v1064_v33, 5  ;;  %v1072_v22 = vrot.slane %v1070_v51, 5  ;;  %v421_v4 = vshrl.u32 %v7083_v23, 16  ;;  %7759 = vmatprep.subr.bf16.mxu1 %v8770_v20  ;;  %7724 = vmatpush3.bf16.msra.mxu0 %v8787_v53  ;;  %v1091_v34 = vrot.slane %v1089_v9, 4  ;;  %v8784_v33 = vld [vmem:[#allocation2 + $0x88] sm:$0xff]  }
  0x94   : > { %v1094_v8 = vrot.slane %v1092_v32, 5  ;;  %v1100_v35 = vrot.slane %v1098_v43, 5  ;;  %v430_v55 = vshrl.u32 %v7086_v24, 16  ;;  %7789 = vmatprep.subr.bf16.mxu0 %v8789_v27  ;;  %v433_v48 = vshrl.u32 %v7087_v37, 16  ;;  %v8786_v32 = vld [vmem:[#allocation2 + $0xc0] sm:$0xff]  }
  0x95   : > { %v1067_v36 = vor.u32 %v1066_v11, %v1063_v10  ;;  %v559_v61 = vrot.slane %v418_v28, 7  ;;  %v560_v57 = vshll.u32 %v9712_v40, 16  ;;  %v563_v7 = vrot.slane %v421_v4, 7 }
  0x96   : > { %v1095_v47 = vor.u32 %v1094_v8, %v1091_v34  ;;  %v564_v21 = vshll.u32 %v7083_v23, 16  ;;  %v575_v29 = vrot.slane %v430_v55, 7  ;;  %7760 = vmatpush3.bf16.msra.mxu1 %v8772_v2  ;;  %v576_v53 = vshll.u32 %v7086_v24, 16 }
  0x97   : > { %v1068_v51 = vrot.slane %v1067_v36, 4  ;;  %v562_v20 = vor.u32 %v560_v57, %v559_v61  ;;  %v579_v9 = vrot.slane %v433_v48, 7  ;;  %7761 = vmatprep.subr.bf16.mxu1 %v8782_v38  ;;  %v580_v11 = vshll.u32 %v7087_v37, 16 }
  0x98   : > { %v1096_v27 = vrot.slane %v1095_v47, 4  ;;  %v566_v10 = vor.u32 %v564_v21, %v563_v7  ;;  %v677_v43 = vrot.slane %v560_v57, 7  ;;  %v578_v34 = vor.u32 %v576_v53, %v575_v29  ;;  %v291_v7 = vld [vmem:[%s9430_s25 + $0x60] sm:$0xff] }
  0x99   : > { %v9735_v8 = vsel %vm9512_vm8, %v1068_v51, %v1072_v22  ;;  %v678_v40 = vrot.slane %v564_v21, 7  ;;  %v681_v23 = vrot.slane %v576_v53, 7  ;;  %v582_v24 = vor.u32 %v580_v11, %v579_v9 }
  0x9a   : > { %11357 = vst [vmem:[#allocation39_spill] sm:$0xff] %v9735_v8  ;;  %v9739_v61 = vsel %vm9512_vm8, %v1096_v27, %v1100_v35  ;;  %v682_v2 = vrot.slane %v580_v11, 7  ;;  %v744_v47 = vsel %vm9446_vm4, %v418_v28, %v562_v20  ;;  %7762 = vmatpush3.bf16.msra.mxu1 %v8784_v33  ;;  %v745_v22 = vsel %vm9446_vm4, %v421_v4, %v566_v10  ;;  %v8788_v35 = vld [vmem:[#allocation2 + $0x80] sm:$0xff]   ;;  %v8790_v4 = vld [vmem:[#allocation2 + $0x2f8] sm:$0xff]  }
  0x9b   : > { %11358 = vst [vmem:[#allocation40_spill] sm:$0xff] %v9739_v61  ;;  %v9746_v57 = vcombine.high %v9735_v8, %v9739_v61  ;;  %v748_v37 = vsel %vm9446_vm4, %v430_v55, %v578_v34  ;;  %v9754_v38 = vsel %vm9452_vm5, %v744_v47, %v677_v43  ;;  %7763 = vmatprep.subr.bf16.mxu1 %v8786_v32 }
  0x9c   : > { %11360 = vst [vmem:[#allocation42_spill] sm:$0xff] %v9754_v38  ;;  %v749_v28 = vsel %vm9446_vm4, %v433_v48, %v582_v24  ;;  %v9760_v36 = vsel %vm9452_vm5, %v745_v22, %v678_v40  ;;  %v9764_v21 = vsel %vm9452_vm5, %v748_v37, %v681_v23  ;;  %v9768_v55 = vcombine.low %v9735_v8, %v9739_v61 }
  0x9d   : > { %11359 = vst [vmem:[#allocation41_spill] sm:$0xff] %v9746_v57  ;;  %11361 = vst [vmem:[#allocation43_spill] sm:$0xff] %v9760_v36  ;;  %1537 = vmatprep.mubr.bf16.mxu0 %v9746_v57  ;;  %v9773_v29 = vsel %vm9452_vm5, %v749_v28, %v682_v2  ;;  %v9777_v48 = vcombine.low %v9754_v38, %v9760_v36  ;;  %v9781_v33 = vcombine.high %v9754_v38, %v9760_v36 }
  0x9e   : > { %11362 = vst [vmem:[#allocation44_spill] sm:$0xff] %v9764_v21  ;;  %11363 = vst [vmem:[#allocation45_spill] sm:$0xff] %v9768_v55  ;;  %v7088_v51 = vcombine.low %v289_v58, %v289_v58  ;;  %v9785_v20 = vcombine.low %v9764_v21, %v9773_v29  ;;  %v9789_v53 = vcombine.high %v9764_v21, %v9773_v29  ;;  %1538 = vmatmul.mubr.bf16.gmra.mxu0 %v9768_v55 }
  0x9f   : > { %11364 = vst [vmem:[#allocation46_spill] sm:$0xff] %v9773_v29  ;;  %v7089_v9 = vcombine.high %v289_v58, %v289_v58  ;;  %v7092_v32 = vcombine.low %v291_v7, %v291_v7  ;;  %v1075_v27 = vshrl.u32 %v9777_v48, 16  ;;  %v1078_v10 = vshll.u32 %v9777_v48, 16  ;;  %7764 = vmatpush3.bf16.msra.mxu1 %v8788_v35 }
  0xa0   : > { %11365 = vst [vmem:[#allocation47_spill] sm:$0xff] %v9785_v20  ;;  %11366 = vst [vmem:[#allocation48_spill] sm:$0xff] %v9789_v53  ;;  %v1084_v11 = vshll.u32 %v9781_v33, 16  ;;  %v7093_v43 = vcombine.high %v291_v7, %v291_v7  ;;  %v1103_v34 = vshrl.u32 %v9785_v20, 16  ;;  %v1106_v40 = vshll.u32 %v9785_v20, 16  ;;  %7829 = vmatprep.subr.bf16.mxu1 %v8790_v4 }
  0xa1   : > { %v1112_v23 = vshll.u32 %v9789_v53, 16  ;;  %v436_v24 = vshrl.u32 %v7088_v51, 16  ;;  %v1077_v2 = vrot.slane %v1075_v27, 4  ;;  %v1080_v47 = vrot.slane %v1078_v10, 5 }
  0xa2   : > { %v1086_v58 = vrot.slane %v1084_v11, 5  ;;  %v439_v22 = vshrl.u32 %v7089_v9, 16  ;;  %v1105_v37 = vrot.slane %v1103_v34, 4  ;;  %v1108_v28 = vrot.slane %v1106_v40, 5 }
  0xa3   : > { %v1114_v55 = vrot.slane %v1112_v23, 5  ;;  %v448_v57 = vshrl.u32 %v7092_v32, 16  ;;  %v1081_v8 = vor.u32 %v1080_v47, %v1077_v2  ;;  %v451_v61 = vshrl.u32 %v7093_v43, 16 }
  0xa4   : > { %v583_v7 = vrot.slane %v436_v24, 7  ;;  %v584_v35 = vshll.u32 %v7088_v51, 16  ;;  %v1109_v36 = vor.u32 %v1108_v28, %v1105_v37  ;;  %v587_v29 = vrot.slane %v439_v22, 7 }
  0xa5   : > { %v588_v31 = vshll.u32 %v7089_v9, 16  ;;  %v599_v30 = vrot.slane %v448_v57, 7  ;;  %v1082_v6 = vrot.slane %v1081_v8, 4  ;;  %v600_v4 = vshll.u32 %v7092_v32, 16 }
  0xa6   : > { %v586_v5 = vor.u32 %v584_v35, %v583_v7  ;;  %v603_v27 = vrot.slane %v451_v61, 7  ;;  %v1110_v10 = vrot.slane %v1109_v36, 4  ;;  %v604_v34 = vshll.u32 %v7093_v43, 16 }
  0xa7   : > { %v590_v11 = vor.u32 %v588_v31, %v587_v29  ;;  %v683_v40 = vrot.slane %v584_v35, 7  ;;  %v9800_v23 = vsel %vm9512_vm8, %v1082_v6, %v1086_v58  ;;  %v602_v2 = vor.u32 %v600_v4, %v599_v30  ;;  %v290_v29 = vld [vmem:[%s9430_s25 + $0x58] sm:$0xff] }
  0xa8   : > { %11367 = vst [vmem:[#allocation49_spill] sm:$0xff] %v9800_v23  ;;  %v684_v51 = vrot.slane %v588_v31, 7  ;;  %v687_v47 = vrot.slane %v600_v4, 7  ;;  %v9804_v9 = vsel %vm9512_vm8, %v1110_v10, %v1114_v55  ;;  %v606_v8 = vor.u32 %v604_v34, %v603_v27  ;;  %v292_v55 = vld [vmem:[%s9430_s25 + $0x68] sm:$0xff] }
  0xa9   : > { %11368 = vst [vmem:[#allocation50_spill] sm:$0xff] %v9804_v9  ;;  %v688_v37 = vrot.slane %v604_v34, 7  ;;  %v750_v36 = vsel %vm9446_vm4, %v436_v24, %v586_v5  ;;  %v9811_v32 = vcombine.high %v9800_v23, %v9804_v9  ;;  %v9815_v6 = vcombine.low %v9800_v23, %v9804_v9 }
  0xaa   : > { %v751_v30 = vsel %vm9446_vm4, %v439_v22, %v590_v11  ;;  %v754_v31 = vsel %vm9446_vm4, %v448_v57, %v602_v2  ;;  %v755_v43 = vsel %vm9446_vm4, %v451_v61, %v606_v8  ;;  %v9826_v5 = vsel %vm9452_vm5, %v750_v36, %v683_v40 }
  0xab   : > { %11369 = vst [vmem:[#allocation51_spill] sm:$0xff] %v9811_v32  ;;  %11370 = vst [vmem:[#allocation52_spill] sm:$0xff] %v9815_v6  ;;  %v9830_v24 = vsel %vm9452_vm5, %v751_v30, %v684_v51  ;;  %v9834_v58 = vsel %vm9452_vm5, %v754_v31, %v687_v47  ;;  %1602 = vmatprep.mubr.bf16.mxu1 %v9811_v32  ;;  %v9839_v57 = vsel %vm9452_vm5, %v755_v43, %v688_v37 }
  0xac   : > { %11371 = vst [vmem:[#allocation53_spill] sm:$0xff] %v9826_v5  ;;  %11372 = vst [vmem:[#allocation54_spill] sm:$0xff] %v9834_v58  ;;  %v9843_v61 = vcombine.low %v9826_v5, %v9830_v24  ;;  %v9847_v22 = vcombine.high %v9826_v5, %v9830_v24  ;;  %v7090_v28 = vcombine.low %v290_v29, %v290_v29  ;;  %1603 = vmatmul.mubr.bf16.gmra.mxu1 %v9815_v6 }
  0xad   : > { %11373 = vst [vmem:[#allocation55_spill] sm:$0xff] %v9839_v57  ;;  %v9852_v7 = vcombine.low %v9834_v58, %v9839_v57  ;;  %v9856_v35 = vcombine.high %v9834_v58, %v9839_v57  ;;  %v7091_v4 = vcombine.high %v290_v29, %v290_v29  ;;  %v7094_v27 = vcombine.low %v292_v55, %v292_v55 }
  0xae   : > { %11374 = vst [vmem:[#allocation56_spill] sm:$0xff] %v9843_v61  ;;  %11375 = vst [vmem:[#allocation57_spill] sm:$0xff] %v9847_v22  ;;  %v1117_v10 = vshrl.u32 %v9843_v61, 16  ;;  %v1120_v11 = vshll.u32 %v9843_v61, 16  ;;  %v1126_v34 = vshll.u32 %v9847_v22, 16  ;;  %v7095_v40 = vcombine.high %v292_v55, %v292_v55 }
  0xaf   : > { %11376 = vst [vmem:[#allocation58_spill] sm:$0xff] %v9852_v7  ;;  %11377 = vst [vmem:[#allocation59_spill] sm:$0xff] %v9856_v35  ;;  %v1145_v2 = vshrl.u32 %v9852_v7, 16  ;;  %v1148_v51 = vshll.u32 %v9852_v7, 16  ;;  %v1154_v47 = vshll.u32 %v9856_v35, 16  ;;  %v442_v8 = vshrl.u32 %v7090_v28, 16 }
  0xb0   : > { %v1119_v37 = vrot.slane %v1117_v10, 4  ;;  %v1122_v36 = vrot.slane %v1120_v11, 5  ;;  %v1128_v30 = vrot.slane %v1126_v34, 5  ;;  %v445_v31 = vshrl.u32 %v7091_v4, 16 }
  0xb1   : > { %v1147_v29 = vrot.slane %v1145_v2, 4  ;;  %v1150_v43 = vrot.slane %v1148_v51, 5  ;;  %v1156_v6 = vrot.slane %v1154_v47, 5  ;;  %v454_v32 = vshrl.u32 %v7094_v27, 16 }
  0xb2   : > { %v1123_v23 = vor.u32 %v1122_v36, %v1119_v37  ;;  %v457_v9 = vshrl.u32 %v7095_v40, 16  ;;  %v591_v61 = vrot.slane %v442_v8, 7  ;;  %v592_v22 = vshll.u32 %v7090_v28, 16 }
  0xb3   : > { %v1151_v55 = vor.u32 %v1150_v43, %v1147_v29  ;;  %v595_v5 = vrot.slane %v445_v31, 7  ;;  %v596_v58 = vshll.u32 %v7091_v4, 16  ;;  %v607_v1 = vrot.slane %v454_v32, 7 }
  0xb4   : > { %v1124_v7 = vrot.slane %v1123_v23, 4  ;;  %v594_v0 = vor.u32 %v592_v22, %v591_v61  ;;  %v608_v35 = vshll.u32 %v7094_v27, 16  ;;  %v611_v53 = vrot.slane %v457_v9, 7 }
  0xb5   : > { %v1152_v10 = vrot.slane %v1151_v55, 4  ;;  %v598_v11 = vor.u32 %v596_v58, %v595_v5  ;;  %v612_v34 = vshll.u32 %v7095_v40, 16  ;;  %v685_v20 = vrot.slane %v592_v22, 7 }
  0xb6   : > { %v9866_v2 = vsel %vm9512_vm8, %v1124_v7, %v1128_v30  ;;  %v610_v51 = vor.u32 %v608_v35, %v607_v1  ;;  %v686_v47 = vrot.slane %v596_v58, 7  ;;  %v689_v37 = vrot.slane %v608_v35, 7 }
  0xb7   : > { %v9870_v28 = vsel %vm9512_vm8, %v1152_v10, %v1156_v6  ;;  %v614_v4 = vor.u32 %v612_v34, %v611_v53  ;;  %v690_v23 = vrot.slane %v612_v34, 7  ;;  %v752_v61 = vsel %vm9446_vm4, %v442_v8, %v594_v0  ;;  %v8791_v34 = vld [vmem:[#allocation2 + $0x238] sm:$0xff]  }
  0xb8   : > { %11378 = vst [vmem:[#allocation60_spill] sm:$0xff] %v9870_v28  ;;  %v9876_v5 = vcombine.high %v9866_v2, %v9870_v28  ;;  %v753_v22 = vsel %vm9446_vm4, %v445_v31, %v598_v11  ;;  %v756_v1 = vsel %vm9446_vm4, %v454_v32, %v610_v51  ;;  %v9884_v58 = vsel %vm9452_vm5, %v752_v61, %v685_v20 }
  0xb9   : > { %v757_v53 = vsel %vm9446_vm4, %v457_v9, %v614_v4  ;;  %v9890_v0 = vsel %vm9452_vm5, %v753_v22, %v686_v47  ;;  %v9894_v6 = vsel %vm9452_vm5, %v756_v1, %v689_v37  ;;  %v9898_v7 = vcombine.low %v9866_v2, %v9870_v28 }
  0xba   : > { %11379 = vst [vmem:[#allocation61_spill] sm:$0xff] %v9876_v5  ;;  %1545 = vmatprep.mubr.bf16.mxu0 %v9876_v5  ;;  %v9903_v20 = vsel %vm9452_vm5, %v757_v53, %v690_v23  ;;  %v9907_v9 = vcombine.low %v9884_v58, %v9890_v0  ;;  %v9911_v32 = vcombine.high %v9884_v58, %v9890_v0  ;;  %v8793_v23 = vld [vmem:[#allocation2 + $0x270] sm:$0xff]  }
  0xbb   : > { %11380 = vst [vmem:[#allocation62_spill] sm:$0xff] %v9898_v7  ;;  %v7177_v35 = vcombine.low %v9474_v13, %v9482_v15  ;;  %v9917_v27 = vcombine.low %v9894_v6, %v9903_v20  ;;  %v9921_v40 = vcombine.high %v9894_v6, %v9903_v20  ;;  %1546 = vmatmul.mubr.bf16.gmra.mxu0 %v9898_v7  ;;  %v7231_v7 = vrot.slane %v9777_v48, 9  ;;  %v8794_v5 = vld [vmem:[#allocation2 + $0x2f0] sm:$0xff]   ;;  %v11395_v48 = vld [vmem:[#allocation21_spill] sm:$0xff] }
  0xbc   : > { %v1131_v8 = vshrl.u32 %v9907_v9, 16  ;;  %v1134_v36 = vshll.u32 %v9907_v9, 16  ;;  %v1140_v30 = vshll.u32 %v9911_v32, 16  ;;  %v7176_v11 = vcombine.low %v9470_v12, %v9478_v14 }
  0xbd   : > { %1875 = vmatprep.mubr.bf16.mxu0 %v7177_v35  ;;  %v1159_v31 = vshrl.u32 %v9917_v27, 16  ;;  %v1162_v29 = vshll.u32 %v9917_v27, 16  ;;  %v1168_v43 = vshll.u32 %v9921_v40, 16  ;;  %v9934_v22 = vcombine.low %v9474_v13, %v9599_v26 }
  0xbe   : > { %v1133_v55 = vrot.slane %v1131_v8, 4  ;;  %v1136_v10 = vrot.slane %v1134_v36, 5  ;;  %v1142_v51 = vrot.slane %v1140_v30, 5  ;;  %v9938_v53 = vcombine.low %v9754_v38, %v9764_v21  ;;  %v8795_v30 = vld [vmem:[#allocation2 + $0x230] sm:$0xff]  }
  0xbf   : > { %v1161_v47 = vrot.slane %v1159_v31, 4  ;;  %v1164_v37 = vrot.slane %v1162_v29, 5  ;;  %v1170_v4 = vrot.slane %v1168_v43, 5  ;;  %11381 = vst [vmem:[#allocation63_spill] sm:$0xff] %v9934_v22  ;;  %v8797_v29 = vld [vmem:[#allocation2 + $0x268] sm:$0xff]   ;;  %v1982_v28 = vrot.slane %v11395_v48, 5 }
  0xc0   : > { %v1137_v61 = vor.u32 %v1136_v10, %v1133_v55  ;;  %v7179_v10 = vcombine.low %v9534_v59, %v9546_v63 }
  0xc1   : > { %v1165_v1 = vor.u32 %v1164_v37, %v1161_v47  ;;  %v9966_v47 = vcombine.low %v9694_v41, %v9702_v45  ;;  %v7178_v37 = vcombine.low %v9524_v56, %v9538_v60 }
  0xc2   : > { %v1138_v35 = vrot.slane %v1137_v61, 4  ;;  %v7224_v61 = vrot.slane %v9486_v16, 9  ;;  %v2002_v16 = vrot.slane %v9710_v39, 5 }
  0xc3   : > { %v1166_v8 = vrot.slane %v1165_v1, 4  ;;  %1876 = vmatmul.mubr.bf16.vlgmr.msra.gmra.mxu0 %v7176_v11  ;;  %v9961_v11 = vcombine.low %v9470_v12, %v9595_v25  ;;  %11386 = vst [vmem:[#allocation68_spill] sm:$0xff] %v9966_v47  ;;  %v7230_v1 = vrot.slane %v9706_v42, 9  ;;  %v7232_v42 = vrot.slane %v9717_v54, 9 }
  0xc4   : > { %v9942_v36 = vsel %vm9512_vm8, %v1138_v35, %v1142_v51  ;;  %7790 = vmatpush3.bf16.msra.mxu0 %v8791_v34  ;;  %1883 = vmatprep.mubr.bf16.mxu0 %v9934_v22  ;;  %v8799_v34 = vld [vmem:[#allocation2 + $0x228] sm:$0xff]   ;;  %v8801_v51 = vld [vmem:[#allocation2 + $0x260] sm:$0xff]   ;;  %v9980_v35 = vcombine.low %v9682_v52, %v9698_v44  ;;  %v8807_v22 = vld [vmem:[#allocation2 + $0x218] sm:$0xff]  }
  0xc5   : > { %v9947_v31 = vsel %vm9512_vm8, %v1166_v8, %v1170_v4  ;;  %7791 = vmatprep.subr.bf16.mxu0 %v8793_v23  ;;  %11385 = vst [vmem:[#allocation67_spill] sm:$0xff] %v9961_v11  ;;  %v9973_v4 = vcombine.low %v9534_v59, %v9627_v49  ;;  %v8803_v23 = vld [vmem:[#allocation2 + $0x220] sm:$0xff]   ;;  %v8805_v8 = vld [vmem:[#allocation2 + $0x258] sm:$0xff]   ;;  %v11403_v49 = vld [vmem:[#allocation31_spill] sm:$0xff] }
  0xc6   : > { %11382 = vst [vmem:[#allocation64_spill] sm:$0xff] %v9947_v31  ;;  %v9951_v43 = vcombine.high %v9942_v36, %v9947_v31  ;;  %v9955_v55 = vcombine.low %v9942_v36, %v9947_v31  ;;  %11388 = vst [vmem:[#allocation70_spill] sm:$0xff] %v9980_v35 }
  0xc7   : > { %11387 = vst [vmem:[#allocation69_spill] sm:$0xff] %v9973_v4 }
  0xc8   : > { %11383 = vst [vmem:[#allocation65_spill] sm:$0xff] %v9951_v43  ;;  %11384 = vst [vmem:[#allocation66_spill] sm:$0xff] %v9955_v55  ;;  %1610 = vmatprep.mubr.bf16.mxu1 %v9951_v43  ;;  %7792 = vmatpush3.bf16.msra.mxu0 %v8795_v30  ;;  %v9984_v30 = vcombine.low %v9830_v24, %v9839_v57  ;;  %v2010_v43 = vrot.slane %v9721_v50, 5  ;;  %v11394_v50 = vld [vmem:[#allocation20_spill] sm:$0xff]  ;;  %v11402_v57 = vld [vmem:[#allocation30_spill] sm:$0xff] }
  0xc9   : > { %1611 = vmatmul.mubr.bf16.gmra.mxu1 %v9955_v55  ;;  %7793 = vmatprep.subr.bf16.mxu0 %v8797_v29  ;;  %v1978_v29 = vrot.slane %v9490_v17, 5  ;;  %v8792_v55 = vld [vmem:[#allocation2 + $0x2b8] sm:$0xff]   ;;  %v7225_v31 = vrot.slane %v11394_v50, 9  ;;  %v11398_v50 = vld [vmem:[#allocation23_spill] sm:$0xff]  ;;  %v7229_v44 = vrot.slane %v11402_v57, 9 }
  0xca   : > { %1940 = vmatprep.mubr.bf16.mxu1 %v7179_v10  ;;  %11389 = vst [vmem:[#allocation71_spill] sm:$0xff] %v9984_v30  ;;  %v7226_v10 = vrot.slane %v9494_v18, 9  ;;  %v1986_v18 = vrot.slane %v9498_v19, 5  ;;  %v10011_v46 = vsel %vm9995_vm11, %v7232_v42, %v2010_v43  ;;  %v8809_v19 = vld [vmem:[#allocation2 + $0x250] sm:$0xff]   ;;  %v11397_v43 = vld [vmem:[#allocation22_spill] sm:$0xff]  ;;  %v1990_v48 = vrot.slane %v11398_v50, 5 }
  0xcb   : > { %1884 = vmatmul.mubr.bf16.gmra.mxu0 %v9961_v11  ;;  %v11393_v11 = vld [vmem:[#allocation48_spill] sm:$0xff]  ;;  %v7227_v42 = vrot.slane %v11397_v43, 9 }
  0xcc   : > { %7794 = vmatpush3.bf16.msra.mxu0 %v8799_v34  ;;  %1891 = vmatprep.mubr.bf16.mxu0 %v9966_v47  ;;  %v2006_v34 = vrot.slane %v9781_v33, 5  ;;  %v11392_v47 = vld [vmem:[#allocation47_spill] sm:$0xff]  ;;  %v2014_v54 = vrot.slane %v11393_v11, 5  ;;  %v10048_v50 = vsel %vm9995_vm11, %v7226_v10, %v1986_v18  ;;  %v11405_v10 = vld [vmem:[#allocation28_spill] sm:$0xff] }
  0xcd   : > { %7795 = vmatprep.subr.bf16.mxu0 %v8801_v51  ;;  %v7233_v39 = vrot.slane %v11392_v47, 9  ;;  %v10007_v51 = vsel %vm9995_vm11, %v7230_v1, %v2002_v16  ;;  %v8796_v16 = vld [vmem:[#allocation2 + $0x2b0] sm:$0xff]   ;;  %v10060_v57 = vcombine.low %v9524_v56, %v11405_v10  ;;  %v8955_v17 = vld [vmem:[#allocation2 + $0x738] sm:$0xff]  }
  0xce   : > { %v10015_v33 = vcombine.high %v10007_v51, %v10011_v46  ;;  %v10019_v11 = vsel %vm9995_vm11, %v7231_v7, %v2006_v34  ;;  %v10027_v1 = vcombine.low %v10007_v51, %v10011_v46  ;;  %v10041_v34 = vsel %vm9995_vm11, %v7224_v61, %v1978_v29  ;;  %v8798_v61 = vld [vmem:[#allocation2 + $0x2e8] sm:$0xff]   ;;  %v11410_v10 = vld [vmem:[#allocation40_spill] sm:$0xff] }
  0xcf   : > { %v10023_v47 = vsel %vm9995_vm11, %v7233_v39, %v2014_v54  ;;  %v11400_v39 = vld [vmem:[#allocation26_spill] sm:$0xff]  ;;  %v11401_v54 = vld [vmem:[#allocation27_spill] sm:$0xff] }
  0xd0   : > { %11396 = vst [vmem:[#allocation47_spill] sm:$0xff] %v10027_v1  ;;  %7796 = vmatpush3.bf16.msra.mxu0 %v8803_v23  ;;  %v10033_v38 = vcombine.high %v10019_v11, %v10023_v47  ;;  %v10037_v7 = vcombine.low %v10019_v11, %v10023_v47  ;;  %v7228_v23 = vrot.slane %v11400_v39, 9  ;;  %v1994_v43 = vrot.slane %v11401_v54, 5  ;;  %v8800_v29 = vld [vmem:[#allocation2 + $0x2a8] sm:$0xff]   ;;  %v8811_v39 = vld [vmem:[#allocation2 + $0x210] sm:$0xff]   ;;  %v11408_v54 = vld [vmem:[#allocation53_spill] sm:$0xff] }
  0xd1   : > { %1941 = vmatmul.mubr.bf16.vlgmr.msra.gmra.mxu1 %v7178_v37  ;;  %7797 = vmatprep.subr.bf16.mxu0 %v8805_v8  ;;  %v1998_v37 = vrot.slane %v11403_v49, 5  ;;  %v11404_v8 = vld [vmem:[#allocation46_spill] sm:$0xff]  ;;  %v11406_v49 = vld [vmem:[#allocation43_spill] sm:$0xff] }
  0xd2   : > { %11399 = vst [vmem:[#allocation48_spill] sm:$0xff] %v10033_v38  ;;  %7830 = vmatpush3.bf16.msra.mxu1 %v8792_v55  ;;  %1948 = vmatprep.mubr.bf16.mxu1 %v9973_v4  ;;  %v10064_v18 = vcombine.low %v11406_v49, %v11404_v8  ;;  %v8802_v55 = vld [vmem:[#allocation2 + $0x2e0] sm:$0xff]   ;;  %v10078_v4 = vsel %vm9995_vm11, %v7227_v42, %v1990_v48  ;;  %v8815_v8 = vld [vmem:[#allocation2 + $0x208] sm:$0xff]  }
  0xd3   : > { %7831 = vmatprep.subr.bf16.mxu1 %v8794_v5  ;;  %1892 = vmatmul.mubr.bf16.gmra.mxu0 %v9980_v35  ;;  %v11407_v5 = vld [vmem:[#allocation54_spill] sm:$0xff]  ;;  %v10086_v21 = vsel %vm9995_vm11, %v7229_v44, %v1998_v37  ;;  %v11412_v48 = vld [vmem:[#allocation57_spill] sm:$0xff] }
  0xd4   : > { %7798 = vmatpush3.bf16.msra.mxu0 %v8807_v22  ;;  %1899 = vmatprep.mubr.bf16.mxu0 %v9984_v30  ;;  %v10068_v3 = vcombine.low %v11408_v54, %v11407_v5  ;;  %v8813_v35 = vld [vmem:[#allocation2 + $0x248] sm:$0xff]   ;;  %v7239_v22 = vcombine.high %v10041_v34, %v10048_v50  ;;  %v10074_v30 = vsel %vm9995_vm11, %v7225_v31, %v1982_v28  ;;  %v8806_v54 = vld [vmem:[#allocation2 + $0x2d8] sm:$0xff]  }
  0xd5   : > { %7799 = vmatprep.subr.bf16.mxu0 %v8809_v19  ;;  %v10082_v19 = vsel %vm9995_vm11, %v7228_v23, %v1994_v43  ;;  %v11411_v31 = vld [vmem:[#allocation50_spill] sm:$0xff]  ;;  %v2018_v23 = vrot.slane %v11412_v48, 5  ;;  %v7235_v43 = vrot.slane %v9907_v9, 9  ;;  %v8821_v44 = vld [vmem:[#allocation2 + $0x378] sm:$0xff]  }
  0xd6   : > { %7832 = vmatpush3.bf16.msra.mxu1 %v8796_v16  ;;  %v11409_v16 = vld [vmem:[#allocation56_spill] sm:$0xff]  ;;  %v8804_v48 = vld [vmem:[#allocation2 + $0x2a0] sm:$0xff]   ;;  %v8816_v9 = vld [vmem:[#allocation2 + $0x288] sm:$0xff]  }
  0xd7   : > { %7833 = vmatprep.subr.bf16.mxu1 %v8798_v61  ;;  %v7234_v5 = vrot.slane %v11409_v16, 9  ;;  %v8817_v61 = vld [vmem:[#allocation2 + $0x240] sm:$0xff]   ;;  %v2022_v16 = vrot.slane %v9911_v32, 5  ;;  %v8808_v32 = vld [vmem:[#allocation2 + $0x298] sm:$0xff]  }
  0xd8   : > { %7800 = vmatpush3.bf16.msra.mxu0 %v8811_v39  ;;  %v10121_v39 = vcombine.low %v9890_v0, %v9903_v20  ;;  %v11414_v37 = vld [vmem:[#allocation58_spill] sm:$0xff] }
  0xd9   : > { %1949 = vmatmul.mubr.bf16.gmra.mxu1 %v10060_v57  ;;  %7801 = vmatprep.subr.bf16.mxu0 %v8813_v35  ;;  %v10125_v35 = vsel %vm9995_vm11, %v7234_v5, %v2018_v23  ;;  %v8810_v5 = vld [vmem:[#allocation2 + $0x2d0] sm:$0xff]   ;;  %v7238_v23 = vcombine.low %v10041_v34, %v10048_v50  ;;  %v7236_v42 = vrot.slane %v11414_v37, 9 }
  0xda   : > { %7834 = vmatpush3.bf16.msra.mxu1 %v8800_v29  ;;  %1956 = vmatprep.mubr.bf16.mxu1 %v10064_v18  ;;  %v8819_v29 = vld [vmem:[#allocation2 + $0x200] sm:$0xff]  }
  0xdb   : > { %7835 = vmatprep.subr.bf16.mxu1 %v8802_v55  ;;  %1900 = vmatmul.mubr.bf16.gmra.mxu0 %v10068_v3  ;;  %v10129_v55 = vsel %vm9995_vm11, %v7235_v43, %v2022_v16  ;;  %v8823_v43 = vld [vmem:[#allocation2 + $0x338] sm:$0xff]   ;;  %v10143_v16 = vcombine.high %v10041_v34, %v10082_v19 }
  0xdc   : > { %7802 = vmatpush3.bf16.msra.mxu0 %v8815_v8  ;;  %2381 = vmatprep.mubr.bf16.mxu0 %v7239_v22  ;;  %v8812_v22 = vld [vmem:[#allocation2 + $0x290] sm:$0xff]   ;;  %v8829_v8 = vld [vmem:[#allocation2 + $0x368] sm:$0xff]  }
  0xdd   : > { %7803 = vmatprep.subr.bf16.mxu0 %v8817_v61  ;;  %11413 = vst [vmem:[#allocation20_spill] sm:$0xff] %v10143_v16  ;;  %v8827_v61 = vld [vmem:[#allocation2 + $0x330] sm:$0xff]  }
  0xde   : > { %7836 = vmatpush3.bf16.msra.mxu1 %v8804_v48  ;;  %v8825_v48 = vld [vmem:[#allocation2 + $0x370] sm:$0xff]  }
  0xdf   : > { %7837 = vmatprep.subr.bf16.mxu1 %v8806_v54  ;;  %v8814_v54 = vld [vmem:[#allocation2 + $0x2c8] sm:$0xff]  }
  0xe0   : > { %7804 = vmatpush3.bf16.msra.mxu0 %v8819_v29  ;;  %v10150_v29 = vcombine.low %v9884_v58, %v9894_v6 }
  0xe1   : > { %1957 = vmatmul.mubr.bf16.gmra.mxu1 %v9938_v53  ;;  %7869 = vmatprep.subr.bf16.mxu0 %v8821_v44  ;;  %v8818_v44 = vld [vmem:[#allocation2 + $0x2c0] sm:$0xff]  }
  0xe2   : > { %7838 = vmatpush3.bf16.msra.mxu1 %v8808_v32  ;;  %1964 = vmatprep.mubr.bf16.mxu1 %v10121_v39  ;;  %v7241_v32 = vcombine.high %v10074_v30, %v10078_v4 }
  0xe3   : > { %7839 = vmatprep.subr.bf16.mxu1 %v8810_v5  ;;  %2382 = vmatmul.mubr.bf16.vlgmr.msra.gmra.mxu0 %v7238_v23  ;;  %v10156_v5 = vcombine.low %v10041_v34, %v10082_v19  ;;  %v8831_v23 = vld [vmem:[#allocation2 + $0x328] sm:$0xff]  }
  0xe4   : > { %7870 = vmatpush3.bf16.msra.mxu0 %v8823_v43  ;;  %2389 = vmatprep.mubr.bf16.mxu0 %v10143_v16  ;;  %v8833_v43 = vld [vmem:[#allocation2 + $0x360] sm:$0xff]   ;;  %v8822_v16 = vld [vmem:[#allocation2 + $0x3f8] sm:$0xff]  }
  0xe5   : > { %7871 = vmatprep.subr.bf16.mxu0 %v8825_v48  ;;  %v11415_v48 = vld [vmem:[#allocation59_spill] sm:$0xff] }
  0xe6   : > { %7840 = vmatpush3.bf16.msra.mxu1 %v8812_v22  ;;  %v2026_v28 = vrot.slane %v11415_v48, 5  ;;  %v8820_v22 = vld [vmem:[#allocation2 + $0x280] sm:$0xff]  }
  0xe7   : > { %7841 = vmatprep.subr.bf16.mxu1 %v8814_v54  ;;  %v8835_v54 = vld [vmem:[#allocation2 + $0x320] sm:$0xff]  }
  0xe8   : > { %7872 = vmatpush3.bf16.msra.mxu0 %v8827_v61  ;;  %v7240_v61 = vcombine.low %v10074_v30, %v10078_v4  ;;  %v10167_v37 = vsel %vm9995_vm11, %v7236_v42, %v2026_v28  ;;  %v8828_v28 = vld [vmem:[#allocation2 + $0x3b0] sm:$0xff]   ;;  %v8830_v42 = vld [vmem:[#allocation2 + $0x3e8] sm:$0xff]  }
  0xe9   : > { %1965 = vmatmul.mubr.bf16.gmra.mxu1 %v10150_v29  ;;  %7873 = vmatprep.subr.bf16.mxu0 %v8829_v8  ;;  %v8837_v8 = vld [vmem:[#allocation2 + $0x358] sm:$0xff]   ;;  %v10175_v48 = vcombine.high %v10125_v35, %v10167_v37 }
  0xea   : > { %7842 = vmatpush3.bf16.msra.mxu1 %v8816_v9  ;;  %2446 = vmatprep.mubr.bf16.mxu1 %v7241_v32  ;;  %v8824_v9 = vld [vmem:[#allocation2 + $0x3b8] sm:$0xff]   ;;  %v8826_v32 = vld [vmem:[#allocation2 + $0x3f0] sm:$0xff]  }
  0xeb   : > { %7843 = vmatprep.subr.bf16.mxu1 %v8818_v44  ;;  %2390 = vmatmul.mubr.bf16.gmra.mxu0 %v10156_v5  ;;  %v10171_v44 = vcombine.high %v10074_v30, %v10086_v21  ;;  %11417 = vst [vmem:[#allocation22_spill] sm:$0xff] %v10175_v48 }
  0xec   : > { %7874 = vmatpush3.bf16.msra.mxu0 %v8831_v23  ;;  %2397 = vmatprep.mubr.bf16.mxu0 %v10015_v33  ;;  %v8839_v23 = vld [vmem:[#allocation2 + $0x318] sm:$0xff]  }
  0xed   : > { %7875 = vmatprep.subr.bf16.mxu0 %v8833_v43  ;;  %11416 = vst [vmem:[#allocation21_spill] sm:$0xff] %v10171_v44  ;;  %v8841_v43 = vld [vmem:[#allocation2 + $0x350] sm:$0xff]  }
  0xee   : > { %7844 = vmatpush3.bf16.msra.mxu1 %v8820_v22  ;;  %v10182_v22 = vcombine.low %v10074_v30, %v10086_v21 }
  0xef   : > { %7909 = vmatprep.subr.bf16.mxu1 %v8822_v16  ;;  %v8843_v16 = vld [vmem:[#allocation2 + $0x310] sm:$0xff]  }
  0xf0   : > { %7876 = vmatpush3.bf16.msra.mxu0 %v8835_v54  ;;  %v8832_v54 = vld [vmem:[#allocation2 + $0x3a8] sm:$0xff]  }
  0xf1   : > { %2447 = vmatmul.mubr.bf16.vlgmr.msra.gmra.mxu1 %v7240_v61  ;;  %7877 = vmatprep.subr.bf16.mxu0 %v8837_v8  ;;  %v8845_v61 = vld [vmem:[#allocation2 + $0x348] sm:$0xff]   ;;  %v8834_v8 = vld [vmem:[#allocation2 + $0x3e0] sm:$0xff]  }
  0xf2   : > { %7910 = vmatpush3.bf16.msra.mxu1 %v8824_v9  ;;  %2454 = vmatprep.mubr.bf16.mxu1 %v10171_v44  ;;  %v7237_v9 = vrot.slane %v9917_v27, 9  ;;  %v7287_v44 = vcombine.low %v9482_v15, %v9474_v13  ;;  %v8853_v13 = vld [vmem:[#allocation2 + $0x478] sm:$0xff]  }
  0xf3   : > { %7911 = vmatprep.subr.bf16.mxu1 %v8826_v32  ;;  %2398 = vmatmul.mubr.bf16.gmra.mxu0 %v10027_v1  ;;  %v2030_v32 = vrot.slane %v9921_v40, 5  ;;  %v293_v1 = vld [vmem:[%s9430_s25 + $0x70] sm:$0xff]  ;;  %v8838_v40 = vld [vmem:[#allocation2 + $0x3d8] sm:$0xff]  }
  0xf4   : > { %7878 = vmatpush3.bf16.msra.mxu0 %v8839_v23  ;;  %2405 = vmatprep.mubr.bf16.mxu0 %v10175_v48  ;;  %v10188_v23 = vcombine.low %v10125_v35, %v10167_v37  ;;  %v8847_v48 = vld [vmem:[#allocation2 + $0x308] sm:$0xff]   ;;  %v7097_v27 = vcombine.high %v293_v1, %v293_v1  ;;  %v8840_v15 = vld [vmem:[#allocation2 + $0x398] sm:$0xff]  }
  0xf5   : > { %7879 = vmatprep.subr.bf16.mxu0 %v8841_v43  ;;  %v8849_v43 = vld [vmem:[#allocation2 + $0x340] sm:$0xff]  }
  0xf6   : > { %7912 = vmatpush3.bf16.msra.mxu1 %v8828_v28  ;;  %11418 = vst [vmem:[#allocation23_spill] sm:$0xff] %v10188_v23  ;;  %v8836_v28 = vld [vmem:[#allocation2 + $0x3a0] sm:$0xff]  }
  0xf7   : > { %7913 = vmatprep.subr.bf16.mxu1 %v8830_v42  ;;  %v10197_v42 = vsel %vm9995_vm11, %v7237_v9, %v2030_v32  ;;  %v7286_v9 = vcombine.low %v9478_v14, %v9470_v12  ;;  %v8844_v32 = vld [vmem:[#allocation2 + $0x390] sm:$0xff]   ;;  %v8848_v14 = vld [vmem:[#allocation2 + $0x388] sm:$0xff]  }
  0xf8   : > { %7880 = vmatpush3.bf16.msra.mxu0 %v8843_v16  ;;  %v8851_v16 = vld [vmem:[#allocation2 + $0x300] sm:$0xff]   ;;  %v8859_v12 = vld [vmem:[#allocation2 + $0x430] sm:$0xff]  }
  0xf9   : > { %2455 = vmatmul.mubr.bf16.gmra.mxu1 %v10182_v22  ;;  %7881 = vmatprep.subr.bf16.mxu0 %v8845_v61  ;;  %v463_v61 = vshrl.u32 %v7097_v27, 16 }
  0xfa   : > { %7914 = vmatpush3.bf16.msra.mxu1 %v8832_v54  ;;  %2462 = vmatprep.mubr.bf16.mxu1 %v10033_v38  ;;  %v10202_v54 = vcombine.high %v10129_v55, %v10197_v42  ;;  %v620_v38 = vshll.u32 %v7097_v27, 16  ;;  %v7289_v27 = vcombine.low %v9546_v63, %v9534_v59  ;;  %v8852_v63 = vld [vmem:[#allocation2 + $0x380] sm:$0xff]  }
  0xfb   : > { %7915 = vmatprep.subr.bf16.mxu1 %v8834_v8  ;;  %2406 = vmatmul.mubr.bf16.gmra.mxu0 %v10188_v23  ;;  %v8842_v8 = vld [vmem:[#allocation2 + $0x3d0] sm:$0xff]   ;;  %v8855_v23 = vld [vmem:[#allocation2 + $0x438] sm:$0xff]  }
  0xfc   : > { %7882 = vmatpush3.bf16.msra.mxu0 %v8847_v48  ;;  %2816 = vmatprep.mubr.bf16.mxu0 %v7287_v44  ;;  %11419 = vst [vmem:[#allocation26_spill] sm:$0xff] %v10202_v54  ;;  %v7291_v44 = vcombine.low %v9599_v26, %v9694_v41  ;;  %v8846_v48 = vld [vmem:[#allocation2 + $0x3c8] sm:$0xff]   ;;  %v10214_v41 = vcombine.low %v10129_v55, %v10197_v42 }
  0xfd   : > { %7883 = vmatprep.subr.bf16.mxu0 %v8849_v43  ;;  %v8857_v43 = vld [vmem:[#allocation2 + $0x470] sm:$0xff]   ;;  %v8861_v26 = vld [vmem:[#allocation2 + $0x468] sm:$0xff]  }
  0xfe   : > { %7916 = vmatpush3.bf16.msra.mxu1 %v8836_v28  ;;  %v10209_v28 = vcombine.low %v293_v1, %v293_v1  ;;  %11420 = vst [vmem:[#allocation27_spill] sm:$0xff] %v10214_v41 }
  0xff   : > { %7917 = vmatprep.subr.bf16.mxu1 %v8838_v40  ;;  %v619_v40 = vrot.slane %v463_v61, 7 }
 0x100   : > { %7884 = vmatpush3.bf16.msra.mxu0 %v8851_v16  ;;  %v294_v16 = vld [vmem:[%s9430_s25 + $0x78] sm:$0xff]  ;;  %v460_v1 = vshrl.u32 %v10209_v28, 16 }
 0x101   : > { %2463 = vmatmul.mubr.bf16.gmra.mxu1 %v10037_v7  ;;  %7949 = vmatprep.subr.bf16.mxu0 %v8853_v13  ;;  %v8850_v13 = vld [vmem:[#allocation2 + $0x3c0] sm:$0xff]  }
 0x102   : > { %7918 = vmatpush3.bf16.msra.mxu1 %v8840_v15  ;;  %2470 = vmatprep.mubr.bf16.mxu1 %v10202_v54  ;;  %v622_v15 = vor.u32 %v620_v38, %v619_v40  ;;  %v616_v54 = vshll.u32 %v10209_v28, 16  ;;  %v615_v59 = vrot.slane %v460_v1, 7  ;;  %v7288_v28 = vcombine.low %v9538_v60, %v9524_v56  ;;  %v11425_v60 = vld [vmem:[#allocation55_spill] sm:$0xff]  ;;  %v11438_v40 = vld [vmem:[#allocation25_spill] sm:$0xff] }
 0x103   : > { %7919 = vmatprep.subr.bf16.mxu1 %v8842_v8  ;;  %2817 = vmatmul.mubr.bf16.vlgmr.msra.gmra.mxu0 %v7286_v9  ;;  %v8863_v8 = vld [vmem:[#allocation2 + $0x428] sm:$0xff]   ;;  %v8865_v9 = vld [vmem:[#allocation2 + $0x460] sm:$0xff]   ;;  %v10242_v56 = vcombine.low %v294_v16, %v294_v16 }
 0x104   : > { %7950 = vmatpush3.bf16.msra.mxu0 %v8855_v23  ;;  %2824 = vmatprep.mubr.bf16.mxu0 %v7291_v44  ;;  %v7290_v23 = vcombine.low %v9595_v25, %v9682_v52  ;;  %v7295_v44 = vcombine.low %v9702_v45, %v9830_v24  ;;  %v759_v25 = vsel %vm9446_vm4, %v463_v61, %v622_v15  ;;  %v8854_v52 = vld [vmem:[#allocation2 + $0x4f8] sm:$0xff]   ;;  %v8867_v45 = vld [vmem:[#allocation2 + $0x420] sm:$0xff]   ;;  %v8858_v61 = vld [vmem:[#allocation2 + $0x4f0] sm:$0xff]  }
 0x105   : > { %7951 = vmatprep.subr.bf16.mxu0 %v8857_v43  ;;  %v10224_v43 = vcombine.high %v294_v16, %v294_v16  ;;  %v11424_v15 = vld [vmem:[#allocation38_spill] sm:$0xff]  ;;  %v466_v16 = vshrl.u32 %v10242_v56, 16 }
 0x106   : > { %7920 = vmatpush3.bf16.msra.mxu1 %v8844_v32  ;;  %v692_v32 = vrot.slane %v620_v38, 7  ;;  %v8869_v38 = vld [vmem:[#allocation2 + $0x458] sm:$0xff]  }
 0x107   : > { %7921 = vmatprep.subr.bf16.mxu1 %v8846_v48  ;;  %v8856_v48 = vld [vmem:[#allocation2 + $0x4b8] sm:$0xff]   ;;  %v469_v24 = vshrl.u32 %v10224_v43, 16 }
 0x108   : > { %7952 = vmatpush3.bf16.msra.mxu0 %v8859_v12  ;;  %v10235_v12 = vsel %vm9452_vm5, %v759_v25, %v692_v32  ;;  %v8860_v25 = vld [vmem:[#allocation2 + $0x4b0] sm:$0xff]  }
 0x109   : > { %2471 = vmatmul.mubr.bf16.gmra.mxu1 %v10214_v41  ;;  %7953 = vmatprep.subr.bf16.mxu0 %v8861_v26  ;;  %v11422_v26 = vld [vmem:[#allocation29_spill] sm:$0xff]  ;;  %v627_v32 = vrot.slane %v469_v24, 7 }
 0x10a   : > { %7922 = vmatpush3.bf16.msra.mxu1 %v8848_v14  ;;  %2881 = vmatprep.mubr.bf16.mxu1 %v7289_v27  ;;  %v618_v14 = vor.u32 %v616_v54, %v615_v59  ;;  %v11423_v27 = vld [vmem:[#allocation53_spill] sm:$0xff]  ;;  %v691_v59 = vrot.slane %v616_v54, 7 }
 0x10b   : > { %7923 = vmatprep.subr.bf16.mxu1 %v8850_v13  ;;  %2825 = vmatmul.mubr.bf16.gmra.mxu0 %v7290_v23  ;;  %v7293_v13 = vcombine.low %v11422_v26, %v11406_v49  ;;  %v7294_v23 = vcombine.low %v11424_v15, %v11423_v27  ;;  %v11428_v27 = vld [vmem:[#allocation54_spill] sm:$0xff] }
 0x10c   : > { %7954 = vmatpush3.bf16.msra.mxu0 %v8863_v8  ;;  %2832 = vmatprep.mubr.bf16.mxu0 %v7295_v44  ;;  %v8871_v8 = vld [vmem:[#allocation2 + $0x418] sm:$0xff]   ;;  %v628_v44 = vshll.u32 %v10224_v43, 16  ;;  %v758_v49 = vsel %vm9446_vm4, %v460_v1, %v618_v14  ;;  %v8864_v43 = vld [vmem:[#allocation2 + $0x4a8] sm:$0xff]   ;;  %v8866_v14 = vld [vmem:[#allocation2 + $0x4e0] sm:$0xff]  }
 0x10d   : > { %7955 = vmatprep.subr.bf16.mxu0 %v8865_v9  ;;  %v7299_v9 = vcombine.low %v11425_v60, %v10235_v12  ;;  %v10251_v54 = vsel %vm9452_vm5, %v758_v49, %v691_v59  ;;  %v11429_v59 = vld [vmem:[#allocation18_spill] sm:$0xff]  ;;  %v11430_v49 = vld [vmem:[#allocation19_spill] sm:$0xff] }
 0x10e   : > { %7924 = vmatpush3.bf16.msra.mxu1 %v8852_v63  ;;  %v8873_v63 = vld [vmem:[#allocation2 + $0x450] sm:$0xff]   ;;  %v630_v26 = vor.u32 %v628_v44, %v627_v32  ;;  %v7298_v15 = vcombine.low %v11428_v27, %v10251_v54  ;;  %v8883_v32 = vld [vmem:[#allocation2 + $0x408] sm:$0xff]  }
 0x10f   : > { %7989 = vmatprep.subr.bf16.mxu1 %v8854_v52  ;;  %v8862_v52 = vld [vmem:[#allocation2 + $0x4e8] sm:$0xff]  }
 0x110   : > { %7956 = vmatpush3.bf16.msra.mxu0 %v8867_v45  ;;  %v8875_v45 = vld [vmem:[#allocation2 + $0x410] sm:$0xff]  }
 0x111   : > { %2882 = vmatmul.mubr.bf16.vlgmr.msra.gmra.mxu1 %v7288_v28  ;;  %7957 = vmatprep.subr.bf16.mxu0 %v8869_v38  ;;  %v11426_v28 = vld [vmem:[#allocation42_spill] sm:$0xff]  ;;  %v11427_v38 = vld [vmem:[#allocation28_spill] sm:$0xff] }
 0x112   : > { %7990 = vmatpush3.bf16.msra.mxu1 %v8856_v48  ;;  %2889 = vmatprep.mubr.bf16.mxu1 %v7293_v13  ;;  %v7292_v1 = vcombine.low %v11427_v38, %v11426_v28  ;;  %v8881_v48 = vld [vmem:[#allocation2 + $0x448] sm:$0xff]   ;;  %v694_v13 = vrot.slane %v628_v44, 7  ;;  %v8885_v44 = vld [vmem:[#allocation2 + $0x440] sm:$0xff]   ;;  %v8872_v38 = vld [vmem:[#allocation2 + $0x498] sm:$0xff]  }
 0x113   : > { %7991 = vmatprep.subr.bf16.mxu1 %v8858_v61  ;;  %2833 = vmatmul.mubr.bf16.gmra.mxu0 %v7294_v23  ;;  %v624_v61 = vshll.u32 %v10242_v56, 16  ;;  %v623_v23 = vrot.slane %v466_v16, 7  ;;  %v11431_v56 = vld [vmem:[#allocation46_spill] sm:$0xff] }
 0x114   : > { %7958 = vmatpush3.bf16.msra.mxu0 %v8871_v8  ;;  %2840 = vmatprep.mubr.bf16.mxu0 %v7299_v9  ;;  %v8868_v8 = vld [vmem:[#allocation2 + $0x4a0] sm:$0xff]   ;;  %v761_v9 = vsel %vm9446_vm4, %v469_v24, %v630_v26 }
 0x115   : > { %7959 = vmatprep.subr.bf16.mxu0 %v8873_v63  ;;  %v7339_v63 = vcombine.high %v11430_v49, %v11429_v59  ;;  %v10271_v24 = vsel %vm9452_vm5, %v761_v9, %v694_v13  ;;  %v626_v26 = vor.u32 %v624_v61, %v623_v23  ;;  %v8887_v28 = vld [vmem:[#allocation2 + $0x400] sm:$0xff]   ;;  %v7338_v13 = vcombine.low %v11430_v49, %v11429_v59  ;;  %v8891_v23 = vld [vmem:[#allocation2 + $0x538] sm:$0xff]  }
 0x116   : > { %7992 = vmatpush3.bf16.msra.mxu1 %v8860_v25  ;;  %v10264_v25 = vcombine.low %v10251_v54, %v10235_v12  ;;  %v10283_v9 = vcombine.high %v10251_v54, %v10235_v12 }
 0x117   : > { %7993 = vmatprep.subr.bf16.mxu1 %v8862_v52  ;;  %v11432_v52 = vcombine.low %v11431_v56, %v9890_v0  ;;  %v8874_v0 = vld [vmem:[#allocation2 + $0x4d0] sm:$0xff]   ;;  %v693_v56 = vrot.slane %v624_v61, 7 }
 0x118   : > { %7960 = vmatpush3.bf16.msra.mxu0 %v8875_v45  ;;  %v8870_v45 = vld [vmem:[#allocation2 + $0x4d8] sm:$0xff]   ;;  %v2940_v62 = vshll.u32 %v10283_v9, 16 }
 0x119   : > { %2890 = vmatmul.mubr.bf16.gmra.mxu1 %v7292_v1  ;;  %7961 = vmatprep.subr.bf16.mxu0 %v8881_v48  ;;  %v8889_v1 = vld [vmem:[#allocation2 + $0x578] sm:$0xff]   ;;  %v2934_v48 = vshll.u32 %v10264_v25, 16 }
 0x11a   : > { %7994 = vmatpush3.bf16.msra.mxu1 %v8864_v43  ;;  %2897 = vmatprep.mubr.bf16.mxu1 %v11432_v52  ;;  %v2931_v43 = vshrl.u32 %v10264_v25, 16  ;;  %v11435_v52 = vld [vmem:[#allocation44_spill] sm:$0xff] }
 0x11b   : > { %7995 = vmatprep.subr.bf16.mxu1 %v8866_v14  ;;  %2841 = vmatmul.mubr.bf16.gmra.mxu0 %v7298_v15  ;;  %v7301_v14 = vcombine.low %v9903_v20, %v10271_v24  ;;  %v760_v15 = vsel %vm9446_vm4, %v466_v16, %v626_v26  ;;  %v11436_v61 = vcombine.low %v11435_v52, %v9884_v58  ;;  %v2936_v49 = vrot.slane %v2934_v48, 5  ;;  %v8882_v26 = vld [vmem:[#allocation2 + $0x4c8] sm:$0xff]   ;;  %v11437_v48 = vld [vmem:[#allocation24_spill] sm:$0xff] }
 0x11c   : > { %7962 = vmatpush3.bf16.msra.mxu0 %v8883_v32  ;;  %3283 = vmatprep.mubr.bf16.mxu0 %v7339_v63  ;;  %v8893_v32 = vld [vmem:[#allocation2 + $0x570] sm:$0xff]   ;;  %v2933_v59 = vrot.slane %v2931_v43, 4  ;;  %v10292_v16 = vsel %vm9452_vm5, %v760_v15, %v693_v56  ;;  %v8884_v43 = vld [vmem:[#allocation2 + $0x488] sm:$0xff]   ;;  %v8886_v56 = vld [vmem:[#allocation2 + $0x4c0] sm:$0xff]   ;;  %vm5629_vm5 = vsmask.f32 1280 }
 0x11d   : > { %7963 = vmatprep.subr.bf16.mxu0 %v8885_v44  ;;  %v11434_v63 = vld [vmem:[#allocation32_spill] sm:$0xff]  ;;  %v7300_v58 = vcombine.low %v9894_v6, %v10292_v16  ;;  %v8888_v15 = vld [vmem:[#allocation2 + $0x480] sm:$0xff]   ;;  %vm5631_vm9 = vmor %vm5629_vm5, %vm5630_vm6  ;;  %vm5913_vm5 = vcmask 1046534  }
 0x11e   : > { %7996 = vmatpush3.bf16.msra.mxu1 %v8868_v8  ;;  %v11433_v8 = vld [vmem:[#allocation39_spill] sm:$0xff]  ;;  %vm10941_vm10 = vmor %vm5631_vm9, %vm5632_vm7 }
 0x11f   : > { %7997 = vmatprep.subr.bf16.mxu1 %v8870_v45  ;;  %v7343_v44 = vcombine.high %v11434_v63, %v11433_v8  ;;  %v8876_v45 = vld [vmem:[#allocation2 + $0x490] sm:$0xff]   ;;  %vm10977_vm6 = vmor %vm5910_vm2, %vm5525_vm0 }
 0x120   : > { %7964 = vmatpush3.bf16.msra.mxu0 %v8887_v28  ;;  %v8895_v28 = vld [vmem:[#allocation2 + $0x530] sm:$0xff]   ;;  %vm10992_vm1 = vmor %vm10977_vm6, %vm5913_vm5 }
 0x121   : > { %2898 = vmatmul.mubr.bf16.gmra.mxu1 %v11436_v61  ;;  %8029 = vmatprep.subr.bf16.mxu0 %v8889_v1  ;;  %v8897_v1 = vld [vmem:[#allocation2 + $0x568] sm:$0xff]   ;;  %v8890_v61 = vld [vmem:[#allocation2 + $0x5f8] sm:$0xff]  }
 0x122   : > { %7998 = vmatpush3.bf16.msra.mxu1 %v8872_v38  ;;  %2905 = vmatprep.mubr.bf16.mxu1 %v7301_v14  ;;  %v2937_v38 = vor.u32 %v2936_v49, %v2933_v59  ;;  %v7341_v14 = vcombine.high %v11438_v40, %v11437_v48 }
 0x123   : > { %7999 = vmatprep.subr.bf16.mxu1 %v8874_v0  ;;  %3284 = vmatmul.mubr.bf16.vlgmr.msra.gmra.mxu0 %v7338_v13  ;;  %v10301_v0 = vcombine.low %v10292_v16, %v10271_v24  ;;  %v7342_v13 = vcombine.low %v11434_v63, %v11433_v8  ;;  %v8903_v8 = vld [vmem:[#allocation2 + $0x520] sm:$0xff]   ;;  %v11439_v63 = vcombine.high %v11410_v10, %v9866_v2 }
 0x124   : > { %8030 = vmatpush3.bf16.msra.mxu0 %v8891_v23  ;;  %3291 = vmatprep.mubr.bf16.mxu0 %v7343_v44  ;;  %v8899_v23 = vld [vmem:[#allocation2 + $0x528] sm:$0xff]   ;;  %v8901_v44 = vld [vmem:[#allocation2 + $0x560] sm:$0xff]   ;;  %v2938_v52 = vrot.slane %v2937_v38, 4 }
 0x125   : > { %8031 = vmatprep.subr.bf16.mxu0 %v8893_v32  ;;  %v2942_v32 = vrot.slane %v2940_v62, 5  ;;  %v2945_v59 = vshrl.u32 %v10301_v0, 16  ;;  %v2948_v49 = vshll.u32 %v10301_v0, 16  ;;  %v7340_v62 = vcombine.low %v11438_v40, %v11437_v48  ;;  %v11441_v38 = vld [vmem:[#allocation49_spill] sm:$0xff]  ;;  %v11443_v40 = vld [vmem:[#allocation60_spill] sm:$0xff] }
 0x126   : > { %8000 = vmatpush3.bf16.msra.mxu1 %v8876_v45  ;;  %v8892_v45 = vld [vmem:[#allocation2 + $0x5b8] sm:$0xff]  }
 0x127   : > { %8001 = vmatprep.subr.bf16.mxu1 %v8882_v26  ;;  %v8905_v26 = vld [vmem:[#allocation2 + $0x558] sm:$0xff]  }
 0x128   : > { %8032 = vmatpush3.bf16.msra.mxu0 %v8895_v28  ;;  %v8907_v48 = vld [vmem:[#allocation2 + $0x518] sm:$0xff]   ;;  %v11448_v28 = vcombine.low %v11411_v31, %v9942_v36 }
 0x129   : > { %2906 = vmatmul.mubr.bf16.gmra.mxu1 %v7300_v58  ;;  %8033 = vmatprep.subr.bf16.mxu0 %v8897_v1  ;;  %v10314_v58 = vsel %vm9512_vm8, %v2938_v52, %v2942_v32  ;;  %v8894_v1 = vld [vmem:[#allocation2 + $0x5f0] sm:$0xff]   ;;  %v8898_v52 = vld [vmem:[#allocation2 + $0x5e8] sm:$0xff]  }
 0x12a   : > { %8002 = vmatpush3.bf16.msra.mxu1 %v8884_v43  ;;  %3348 = vmatprep.mubr.bf16.mxu1 %v7341_v14  ;;  %v11442_v43 = vld [vmem:[#allocation35_spill] sm:$0xff] }
 0x12b   : > { %8003 = vmatprep.subr.bf16.mxu1 %v8886_v56  ;;  %3292 = vmatmul.mubr.bf16.gmra.mxu0 %v7342_v13  ;;  %v7345_v14 = vcombine.high %v11442_v43, %v11441_v38  ;;  %v10320_v56 = vcombine.high %v10292_v16, %v10271_v24  ;;  %v2947_v13 = vrot.slane %v2945_v59, 4  ;;  %v8909_v32 = vld [vmem:[#allocation2 + $0x550] sm:$0xff]  }
 0x12c   : > { %8034 = vmatpush3.bf16.msra.mxu0 %v8899_v23  ;;  %3299 = vmatprep.mubr.bf16.mxu0 %v11439_v63  ;;  %v2950_v23 = vrot.slane %v2948_v49, 5  ;;  %v11444_v63 = vcombine.low %v11410_v10, %v9866_v2  ;;  %v8900_v49 = vld [vmem:[#allocation2 + $0x5a8] sm:$0xff]   ;;  %v7350_v2 = vcombine.low %v11443_v40, %v10314_v58 }
 0x12d   : > { %8035 = vmatprep.subr.bf16.mxu0 %v8901_v44  ;;  %v7351_v44 = vcombine.high %v11443_v40, %v10314_v58  ;;  %v2954_v59 = vshll.u32 %v10320_v56, 16  ;;  %v8915_v10 = vld [vmem:[#allocation2 + $0x508] sm:$0xff]  }
 0x12e   : > { %8004 = vmatpush3.bf16.msra.mxu1 %v8888_v15  ;;  %v8896_v15 = vld [vmem:[#allocation2 + $0x5b0] sm:$0xff]  }
 0x12f   : > { %8069 = vmatprep.subr.bf16.mxu1 %v8890_v61  ;;  %v2951_v61 = vor.u32 %v2950_v23, %v2947_v13  ;;  %v2956_v41 = vrot.slane %v2954_v59, 5  ;;  %v8917_v23 = vld [vmem:[#allocation2 + $0x540] sm:$0xff]   ;;  %v11447_v59 = vld [vmem:[#allocation64_spill] sm:$0xff] }
 0x130   : > { %8036 = vmatpush3.bf16.msra.mxu0 %v8903_v8  ;;  %v8911_v8 = vld [vmem:[#allocation2 + $0x510] sm:$0xff]  }
 0x131   : > { %3349 = vmatmul.mubr.bf16.vlgmr.msra.gmra.mxu1 %v7340_v62  ;;  %8037 = vmatprep.subr.bf16.mxu0 %v8905_v26  ;;  %v7344_v62 = vcombine.low %v11442_v43, %v11441_v38  ;;  %v8902_v26 = vld [vmem:[#allocation2 + $0x5e0] sm:$0xff]   ;;  %v11445_v43 = vcombine.high %v11411_v31, %v9942_v36  ;;  %v11450_v36 = vcombine.high %v10082_v19, %v10007_v51 }
 0x132   : > { %8070 = vmatpush3.bf16.msra.mxu1 %v8892_v45  ;;  %3356 = vmatprep.mubr.bf16.mxu1 %v7345_v14  ;;  %v8913_v45 = vld [vmem:[#allocation2 + $0x548] sm:$0xff]   ;;  %v2952_v14 = vrot.slane %v2951_v61, 4  ;;  %v8904_v38 = vld [vmem:[#allocation2 + $0x5a0] sm:$0xff]   ;;  %v8908_v61 = vld [vmem:[#allocation2 + $0x598] sm:$0xff]  }
 0x133   : > { %8071 = vmatprep.subr.bf16.mxu1 %v8894_v1  ;;  %3300 = vmatmul.mubr.bf16.gmra.mxu0 %v11444_v63  ;;  %v8921_v63 = vld [vmem:[#allocation2 + $0x678] sm:$0xff]  }
 0x134   : > { %8038 = vmatpush3.bf16.msra.mxu0 %v8907_v48  ;;  %3307 = vmatprep.mubr.bf16.mxu0 %v7351_v44  ;;  %v8906_v44 = vld [vmem:[#allocation2 + $0x5d8] sm:$0xff]  }
 0x135   : > { %8039 = vmatprep.subr.bf16.mxu0 %v8909_v32  ;;  %v7645_v1 = vpop.f32.mrf.mxu0  ;;  %v10337_v32 = vsel %vm9512_vm8, %v2952_v14, %v2956_v41  ;;  %v8923_v41 = vld [vmem:[#allocation2 + $0x638] sm:$0xff]   ;;  %v8914_v14 = vld [vmem:[#allocation2 + $0x5c8] sm:$0xff]   ;;  %vm5634_vm8 = vsmask.f32 7448 }
 0x136   : > { %8072 = vmatpush3.bf16.msra.mxu1 %v8896_v15  ;;  %v8919_v15 = vld [vmem:[#allocation2 + $0x500] sm:$0xff]  }
 0x137   : > { %8073 = vmatprep.subr.bf16.mxu1 %v8898_v52  ;;  %v7646_v13 = vpop.f32.mrf.mxu0  ;;  %v11446_v52 = vcombine.high %v10048_v50, %v10041_v34 }
 0x138   : > { %8040 = vmatpush3.bf16.msra.mxu0 %v8911_v8  ;;  %v7647_v48 = vadd.f32 %v7646_v13, %v7645_v1  ;;  %v8910_v8 = vld [vmem:[#allocation2 + $0x5d0] sm:$0xff]  }
 0x139   : > { %3357 = vmatmul.mubr.bf16.gmra.mxu1 %v7344_v62  ;;  %8041 = vmatprep.subr.bf16.mxu0 %v8913_v45  ;;  %v7648_v62 = vpop.f32.mrf.mxu0  ;;  %v8925_v45 = vld [vmem:[#allocation2 + $0x670] sm:$0xff]  }
 0x13a   : > { %8074 = vmatpush3.bf16.msra.mxu1 %v8900_v49  ;;  %3364 = vmatprep.mubr.bf16.mxu1 %v11445_v43  ;;  %v7353_v49 = vcombine.high %v11447_v59, %v10337_v32  ;;  %v8912_v1 = vld [vmem:[#allocation2 + $0x590] sm:$0xff]   ;;  %v8929_v43 = vld [vmem:[#allocation2 + $0x668] sm:$0xff]  }
 0x13b   : > { %8075 = vmatprep.subr.bf16.mxu1 %v8902_v26  ;;  %3308 = vmatmul.mubr.bf16.gmra.mxu0 %v7350_v2  ;;  %v11449_v2 = vcombine.low %v10048_v50, %v10041_v34  ;;  %v7649_v13 = vpop.f32.mrf.mxu0  ;;  %v8918_v50 = vld [vmem:[#allocation2 + $0x5c0] sm:$0xff]  }
 0x13c   : > { %8042 = vmatpush3.bf16.msra.mxu0 %v8915_v10  ;;  %3722 = vmatprep.mubr.bf16.mxu0 %v11446_v52  ;;  %v7650_v34 = vadd.f32 %v7649_v13, %v7648_v62 }
 0x13d   : > { %8043 = vmatprep.subr.bf16.mxu0 %v8917_v23  ;;  %v8927_v23 = vld [vmem:[#allocation2 + $0x630] sm:$0xff]  }
 0x13e   : > { %8076 = vmatpush3.bf16.msra.mxu1 %v8904_v38  ;;  %v7352_v38 = vcombine.low %v11447_v59, %v10337_v32 }
 0x13f   : > { %8077 = vmatprep.subr.bf16.mxu1 %v8906_v44 }
 0x140   : > { %8044 = vmatpush3.bf16.msra.mxu0 %v8919_v15  ;;  %v8916_v15 = vld [vmem:[#allocation2 + $0x588] sm:$0xff]  }
 0x141   : > { %3365 = vmatmul.mubr.bf16.gmra.mxu1 %v11448_v28  ;;  %8109 = vmatprep.subr.bf16.mxu0 %v8921_v63  ;;  %v7685_v26 = vpop.f32.mrf.mxu1  ;;  %v3391_v28 = vrot.slane %v10283_v9, 5  ;;  %v8937_v9 = vld [vmem:[#allocation2 + $0x658] sm:$0xff]  }
 0x142   : > { %8078 = vmatpush3.bf16.msra.mxu1 %v8908_v61  ;;  %3372 = vmatprep.mubr.bf16.mxu1 %v7353_v49  ;;  %v8931_v61 = vld [vmem:[#allocation2 + $0x628] sm:$0xff]   ;;  %v7386_v49 = vrot.slane %v10264_v25, 9  ;;  %v8935_v25 = vld [vmem:[#allocation2 + $0x620] sm:$0xff]  }
 0x143   : > { %8079 = vmatprep.subr.bf16.mxu1 %v8910_v8  ;;  %3723 = vmatmul.mubr.bf16.vlgmr.msra.gmra.mxu0 %v11449_v2  ;;  %v7686_v10 = vpop.f32.mrf.mxu1 }
 0x144   : > { %8110 = vmatpush3.bf16.msra.mxu0 %v8923_v41  ;;  %3730 = vmatprep.mubr.bf16.mxu0 %v11450_v36  ;;  %v7687_v31 = vadd.f32 %v7686_v10, %v7685_v26  ;;  %v8933_v41 = vld [vmem:[#allocation2 + $0x660] sm:$0xff]   ;;  %v8922_v26 = vld [vmem:[#allocation2 + $0x6f8] sm:$0xff]   ;;  %v10372_v2 = vsel %vm9995_vm11, %v7386_v49, %v3391_v28 }
 0x145   : > { %8111 = vmatprep.subr.bf16.mxu0 %v8925_v45  ;;  %v7688_v44 = vpop.f32.mrf.mxu1  ;;  %v8920_v45 = vld [vmem:[#allocation2 + $0x580] sm:$0xff]   ;;  %v8924_v10 = vld [vmem:[#allocation2 + $0x6b8] sm:$0xff]  }
 0x146   : > { %8080 = vmatpush3.bf16.msra.mxu1 %v8912_v1  ;;  %v10355_v52 = vadd.f32 %v7687_v31, %v7647_v48  ;;  %v11451_v48 = vcombine.high %v10078_v4, %v10074_v30  ;;  %v11452_v1 = vcombine.low %v10082_v19, %v10007_v51  ;;  %v8939_v51 = vld [vmem:[#allocation2 + $0x618] sm:$0xff]   ;;  %v7401_v19 = vcombine.high %v10167_v37, %v10372_v2 }
 0x147   : > { %8081 = vmatprep.subr.bf16.mxu1 %v8914_v14  ;;  %v7689_v63 = vpop.f32.mrf.mxu1  ;;  %v11453_v14 = vcombine.high %v10011_v46, %v10125_v35  ;;  %v11454_v31 = vcombine.low %v10078_v4, %v10074_v30  ;;  %v8943_v4 = vld [vmem:[#allocation2 + $0x610] sm:$0xff]  }
 0x148   : > { %8112 = vmatpush3.bf16.msra.mxu0 %v8927_v23  ;;  %v7690_v8 = vadd.f32 %v7689_v63, %v7688_v44  ;;  %v8926_v23 = vld [vmem:[#allocation2 + $0x6f0] sm:$0xff]   ;;  %v8930_v63 = vld [vmem:[#allocation2 + $0x6e8] sm:$0xff]  }
 0x149   : > { %3373 = vmatmul.mubr.bf16.gmra.mxu1 %v7352_v38  ;;  %8113 = vmatprep.subr.bf16.mxu0 %v8929_v43  ;;  %v8941_v38 = vld [vmem:[#allocation2 + $0x650] sm:$0xff]  }
 0x14a   : > { %8082 = vmatpush3.bf16.msra.mxu1 %v8916_v15  ;;  %3787 = vmatprep.mubr.bf16.mxu1 %v11451_v48  ;;  %v10362_v62 = vadd.f32 %v7690_v8, %v7650_v34  ;;  %v8928_v44 = vld [vmem:[#allocation2 + $0x6b0] sm:$0xff]   ;;  %v11455_v15 = vcombine.high %v10086_v21, %v10019_v11  ;;  %v8945_v8 = vld [vmem:[#allocation2 + $0x648] sm:$0xff]   ;;  %v7387_v48 = vrot.slane %v10301_v0, 9 }
 0x14b   : > { %8083 = vmatprep.subr.bf16.mxu1 %v8918_v50  ;;  %3731 = vmatmul.mubr.bf16.gmra.mxu0 %v11452_v1  ;;  %v8934_v1 = vld [vmem:[#allocation2 + $0x6e0] sm:$0xff]  }
 0x14c   : > { %8114 = vmatpush3.bf16.msra.mxu0 %v8931_v61  ;;  %3738 = vmatprep.mubr.bf16.mxu0 %v11453_v14  ;;  %v11456_v61 = vcombine.low %v10011_v46, %v10125_v35  ;;  %v7400_v46 = vcombine.low %v10167_v37, %v10372_v2  ;;  %v8947_v14 = vld [vmem:[#allocation2 + $0x608] sm:$0xff]  }
 0x14d   : > { %8115 = vmatprep.subr.bf16.mxu0 %v8933_v41  ;;  %v7651_v13 = vpop.f32.mrf.mxu0 }
 0x14e   : > { %8084 = vmatpush3.bf16.msra.mxu1 %v8920_v45  ;;  %v8932_v45 = vld [vmem:[#allocation2 + $0x6a8] sm:$0xff]  }
 0x14f   : > { %8149 = vmatprep.subr.bf16.mxu1 %v8922_v26  ;;  %v7652_v36 = vpop.f32.mrf.mxu0 }
 0x150   : > { %8116 = vmatpush3.bf16.msra.mxu0 %v8935_v25  ;;  %v7653_v43 = vadd.f32 %v7652_v36, %v7651_v13  ;;  %v3395_v25 = vrot.slane %v10320_v56, 5  ;;  %v8949_v13 = vld [vmem:[#allocation2 + $0x640] sm:$0xff]   ;;  %v11458_v56 = vcombine.high %v10023_v47, %v10129_v55 }
 0x151   : > { %3788 = vmatmul.mubr.bf16.vlgmr.msra.gmra.mxu1 %v11454_v31  ;;  %8117 = vmatprep.subr.bf16.mxu0 %v8937_v9  ;;  %v7691_v34 = vpop.f32.mrf.mxu1  ;;  %v7654_v50 = vpop.f32.mrf.mxu0  ;;  %v8953_v31 = vld [vmem:[#allocation2 + $0x778] sm:$0xff]  }
 0x152   : > { %8150 = vmatpush3.bf16.msra.mxu1 %v8924_v10  ;;  %3795 = vmatprep.mubr.bf16.mxu1 %v11455_v15  ;;  %v11457_v10 = vcombine.low %v10086_v21, %v10019_v11  ;;  %v8951_v21 = vld [vmem:[#allocation2 + $0x600] sm:$0xff]   ;;  %v11459_v11 = vld [vmem:[#allocation63_spill] sm:$0xff] }
 0x153   : > { %8151 = vmatprep.subr.bf16.mxu1 %v8926_v23  ;;  %3739 = vmatmul.mubr.bf16.gmra.mxu0 %v11456_v61  ;;  %v7692_v30 = vpop.f32.mrf.mxu1  ;;  %v7655_v49 = vpop.f32.mrf.mxu0  ;;  %v8936_v23 = vld [vmem:[#allocation2 + $0x6a0] sm:$0xff]   ;;  %v8944_v61 = vld [vmem:[#allocation2 + $0x690] sm:$0xff]  }
 0x154   : > { %8118 = vmatpush3.bf16.msra.mxu0 %v8939_v51  ;;  %3746 = vmatprep.mubr.bf16.mxu0 %v7401_v19  ;;  %v7693_v41 = vadd.f32 %v7692_v30, %v7691_v34  ;;  %v7656_v28 = vadd.f32 %v7655_v49, %v7654_v50  ;;  %v8938_v51 = vld [vmem:[#allocation2 + $0x6d8] sm:$0xff]   ;;  %v10399_v19 = vsel %vm9995_vm11, %v7387_v48, %v3395_v25  ;;  %v8957_v50 = vld [vmem:[#allocation2 + $0x770] sm:$0xff]   ;;  %v8946_v30 = vld [vmem:[#allocation2 + $0x6c8] sm:$0xff]  }
 0x155   : > { %8119 = vmatprep.subr.bf16.mxu0 %v8941_v38  ;;  %v7694_v26 = vpop.f32.mrf.mxu1  ;;  %v8940_v38 = vld [vmem:[#allocation2 + $0x698] sm:$0xff]   ;;  %v11460_v34 = vcombine.low %v10023_v47, %v10129_v55  ;;  %v11461_v49 = vld [vmem:[#allocation67_spill] sm:$0xff]  ;;  %v7402_v47 = vcombine.low %v10197_v42, %v10399_v19  ;;  %vm10959_vm11 = vmor %vm10941_vm10, %vm5634_vm8 }
 0x156   : > { %8152 = vmatpush3.bf16.msra.mxu1 %v8928_v44  ;;  %v10389_v35 = vadd.f32 %v7693_v41, %v7653_v43  ;;  %v7403_v43 = vcombine.high %v10197_v42, %v10399_v19  ;;  %v8942_v44 = vld [vmem:[#allocation2 + $0x6d0] sm:$0xff]   ;;  %v8961_v55 = vld [vmem:[#allocation2 + $0x768] sm:$0xff]  }
 0x157   : > { %8153 = vmatprep.subr.bf16.mxu1 %v8930_v63  ;;  %v7695_v9 = vpop.f32.mrf.mxu1  ;;  %v8959_v41 = vld [vmem:[#allocation2 + $0x730] sm:$0xff]   ;;  %v8948_v48 = vld [vmem:[#allocation2 + $0x688] sm:$0xff]  }
 0x158   : > { %8120 = vmatpush3.bf16.msra.mxu0 %v8943_v4  ;;  %v7696_v0 = vadd.f32 %v7695_v9, %v7694_v26  ;;  %v8963_v25 = vld [vmem:[#allocation2 + $0x728] sm:$0xff]   ;;  %v11463_v9 = vld [vmem:[#allocation69_spill] sm:$0xff] }
 0x159   : > { %3796 = vmatmul.mubr.bf16.gmra.mxu1 %v11457_v10  ;;  %8121 = vmatprep.subr.bf16.mxu0 %v8945_v8  ;;  %v8954_v10 = vld [vmem:[#allocation2 + $0x7f8] sm:$0xff]  }
 0x15a   : > { %8154 = vmatpush3.bf16.msra.mxu1 %v8932_v45  ;;  %3803 = vmatprep.mubr.bf16.mxu1 %v11458_v56  ;;  %v10401_v36 = vadd.f32 %v7696_v0, %v7656_v28  ;;  %v11462_v28 = vld [vmem:[#allocation68_spill] sm:$0xff]  ;;  %v8967_v0 = vld [vmem:[#allocation2 + $0x720] sm:$0xff]  }
 0x15b   : > { %8155 = vmatprep.subr.bf16.mxu1 %v8934_v1  ;;  %3747 = vmatmul.mubr.bf16.gmra.mxu0 %v7400_v46  ;;  %v8950_v1 = vld [vmem:[#allocation2 + $0x6c0] sm:$0xff]  }
 0x15c   : > { %8122 = vmatpush3.bf16.msra.mxu0 %v8947_v14  ;;  %4125 = vmatprep.mubr.bf16.mxu0 %v11459_v11  ;;  %v8965_v46 = vld [vmem:[#allocation2 + $0x760] sm:$0xff]   ;;  %v8958_v11 = vld [vmem:[#allocation2 + $0x7f0] sm:$0xff]  }
 0x15d   : > { %8123 = vmatprep.subr.bf16.mxu0 %v8949_v13  ;;  %v8952_v14 = vld [vmem:[#allocation2 + $0x680] sm:$0xff]  }
 0x15e   : > { %8156 = vmatpush3.bf16.msra.mxu1 %v8936_v23  ;;  %v7657_v15 = vpop.f32.mrf.mxu0  ;;  %v11464_v13 = vld [vmem:[#allocation70_spill] sm:$0xff]  ;;  %v11465_v23 = vld [vmem:[#allocation71_spill] sm:$0xff] }
 0x15f   : > { %8157 = vmatprep.subr.bf16.mxu1 %v8938_v51  ;;  %v8969_v51 = vld [vmem:[#allocation2 + $0x758] sm:$0xff]  }
 0x160   : > { %8124 = vmatpush3.bf16.msra.mxu0 %v8951_v21  ;;  %v7658_v63 = vpop.f32.mrf.mxu0  ;;  %v8956_v21 = vld [vmem:[#allocation2 + $0x7b8] sm:$0xff]  }
 0x161   : > { %3804 = vmatmul.mubr.bf16.gmra.mxu1 %v11460_v34  ;;  %8189 = vmatprep.subr.bf16.mxu0 %v8953_v31  ;;  %v7659_v4 = vadd.f32 %v7658_v63, %v7657_v15  ;;  %v8960_v34 = vld [vmem:[#allocation2 + $0x7b0] sm:$0xff]   ;;  %v8962_v63 = vld [vmem:[#allocation2 + $0x7e8] sm:$0xff]  }
 0x162   : > { %8158 = vmatpush3.bf16.msra.mxu1 %v8940_v38  ;;  %3811 = vmatprep.mubr.bf16.mxu1 %v7403_v43  ;;  %v7660_v8 = vpop.f32.mrf.mxu0  ;;  %v8971_v38 = vld [vmem:[#allocation2 + $0x718] sm:$0xff]  }
 0x163   : > { %8159 = vmatprep.subr.bf16.mxu1 %v8942_v44  ;;  %4126 = vmatmul.mubr.bf16.vlgmr.msra.gmra.mxu0 %v11461_v49  ;;  %v7437_v44 = vcombine.low %v10235_v12, %v11425_v60  ;;  %v8964_v12 = vld [vmem:[#allocation2 + $0x7a8] sm:$0xff]  }
 0x164   : > { %8190 = vmatpush3.bf16.msra.mxu0 %v8955_v17  ;;  %4133 = vmatprep.mubr.bf16.mxu0 %v11462_v28  ;;  %v7661_v45 = vpop.f32.mrf.mxu0  ;;  %v8973_v17 = vld [vmem:[#allocation2 + $0x750] sm:$0xff]   ;;  %v8970_v28 = vld [vmem:[#allocation2 + $0x7d8] sm:$0xff]  }
 0x165   : > { %8191 = vmatprep.subr.bf16.mxu0 %v8957_v50  ;;  %v7662_v26 = vadd.f32 %v7661_v45, %v7660_v8  ;;  %v8966_v8 = vld [vmem:[#allocation2 + $0x7e0] sm:$0xff]  }
 0x166   : > { %8160 = vmatpush3.bf16.msra.mxu1 %v8944_v61  ;;  %v8983_v45 = vld [vmem:[#allocation2 + $0x700] sm:$0xff]  }
 0x167   : > { %8161 = vmatprep.subr.bf16.mxu1 %v8946_v30  ;;  %v8975_v30 = vld [vmem:[#allocation2 + $0x710] sm:$0xff]  }
 0x168   : > { %8192 = vmatpush3.bf16.msra.mxu0 %v8959_v41  ;;  %v8968_v41 = vld [vmem:[#allocation2 + $0x7a0] sm:$0xff]  }
 0x169   : > { %3812 = vmatmul.mubr.bf16.gmra.mxu1 %v7402_v47  ;;  %8193 = vmatprep.subr.bf16.mxu0 %v8961_v55  ;;  %v8972_v55 = vld [vmem:[#allocation2 + $0x798] sm:$0xff]  }
 0x16a   : > { %8162 = vmatpush3.bf16.msra.mxu1 %v8948_v48  ;;  %4190 = vmatprep.mubr.bf16.mxu1 %v11463_v9  ;;  %v11466_v48 = vld [vmem:[#allocation33_spill] sm:$0xff]  ;;  %v8978_v9 = vld [vmem:[#allocation2 + $0x7c8] sm:$0xff]  }
 0x16b   : > { %8163 = vmatprep.subr.bf16.mxu1 %v8950_v1  ;;  %4134 = vmatmul.mubr.bf16.gmra.mxu0 %v11464_v13 }
 0x16c   : > { %8194 = vmatpush3.bf16.msra.mxu0 %v8963_v25  ;;  %4141 = vmatprep.mubr.bf16.mxu0 %v11465_v23  ;;  %v7697_v56 = vpop.f32.mrf.mxu1  ;;  %v8987_v25 = vld [vmem:[#allocation2 + $0x838] sm:$0xff]  }
 0x16d   : > { %8195 = vmatprep.subr.bf16.mxu0 %v8965_v46  ;;  %v8976_v46 = vld [vmem:[#allocation2 + $0x790] sm:$0xff]  }
 0x16e   : > { %8164 = vmatpush3.bf16.msra.mxu1 %v8952_v14  ;;  %v7698_v31 = vpop.f32.mrf.mxu1  ;;  %v8989_v14 = vld [vmem:[#allocation2 + $0x870] sm:$0xff]  }
 0x16f   : > { %8229 = vmatprep.subr.bf16.mxu1 %v8954_v10  ;;  %v7699_v43 = vadd.f32 %v7698_v31, %v7697_v56  ;;  %v8980_v56 = vld [vmem:[#allocation2 + $0x788] sm:$0xff]  }
 0x170   : > { %8196 = vmatpush3.bf16.msra.mxu0 %v8967_v0  ;;  %v7700_v15 = vpop.f32.mrf.mxu1  ;;  %v8991_v0 = vld [vmem:[#allocation2 + $0x830] sm:$0xff]  }
 0x171   : > { %4191 = vmatmul.mubr.bf16.vlgmr.msra.gmra.mxu1 %v10060_v57  ;;  %8197 = vmatprep.subr.bf16.mxu0 %v8969_v51  ;;  %v10420_v50 = vadd.f32 %v7699_v43, %v7659_v4  ;;  %v8977_v57 = vld [vmem:[#allocation2 + $0x748] sm:$0xff]   ;;  %v11468_v51 = vld [vmem:[#allocation41_spill] sm:$0xff] }
 0x172   : > { %8230 = vmatpush3.bf16.msra.mxu1 %v8956_v21  ;;  %4198 = vmatprep.mubr.bf16.mxu1 %v10064_v18  ;;  %v7701_v61 = vpop.f32.mrf.mxu1  ;;  %v7436_v18 = vcombine.low %v10251_v54, %v11428_v27  ;;  %v8979_v4 = vld [vmem:[#allocation2 + $0x708] sm:$0xff]   ;;  %v8985_v27 = vld [vmem:[#allocation2 + $0x878] sm:$0xff]   ;;  %v8982_v21 = vld [vmem:[#allocation2 + $0x7c0] sm:$0xff]  }
 0x173   : > { %8231 = vmatprep.subr.bf16.mxu1 %v8958_v11  ;;  %4142 = vmatmul.mubr.bf16.gmra.mxu0 %v10068_v3  ;;  %v7702_v49 = vadd.f32 %v7701_v61, %v7700_v15  ;;  %v8981_v3 = vld [vmem:[#allocation2 + $0x740] sm:$0xff]  }
 0x174   : > { %8198 = vmatpush3.bf16.msra.mxu0 %v8971_v38  ;;  %4149 = vmatprep.mubr.bf16.mxu0 %v7437_v44  ;;  %v8995_v38 = vld [vmem:[#allocation2 + $0x828] sm:$0xff]   ;;  %v8997_v44 = vld [vmem:[#allocation2 + $0x860] sm:$0xff]  }
 0x175   : > { %8199 = vmatprep.subr.bf16.mxu0 %v8973_v17  ;;  %v10423_v60 = vadd.f32 %v7702_v49, %v7662_v26  ;;  %v7439_v26 = vcombine.low %v10271_v24, %v9903_v20  ;;  %v11467_v20 = vld [vmem:[#allocation34_spill] sm:$0xff] }
 0x176   : > { %8232 = vmatpush3.bf16.msra.mxu1 %v8960_v34  ;;  %v8993_v24 = vld [vmem:[#allocation2 + $0x868] sm:$0xff]   ;;  %v8984_v15 = vld [vmem:[#allocation2 + $0x780] sm:$0xff]  }
 0x177   : > { %8233 = vmatprep.subr.bf16.mxu1 %v8962_v63  ;;  %v8986_v63 = vld [vmem:[#allocation2 + $0x8f8] sm:$0xff]  }
 0x178   : > { %8200 = vmatpush3.bf16.msra.mxu0 %v8975_v30  ;;  %v8999_v30 = vld [vmem:[#allocation2 + $0x820] sm:$0xff]  }
 0x179   : > { %4199 = vmatmul.mubr.bf16.gmra.mxu1 %v9938_v53  ;;  %8201 = vmatprep.subr.bf16.mxu0 %v8977_v57  ;;  %v8974_v53 = vld [vmem:[#allocation2 + $0x7d0] sm:$0xff]  }
 0x17a   : > { %8234 = vmatpush3.bf16.msra.mxu1 %v8964_v12  ;;  %4206 = vmatprep.mubr.bf16.mxu1 %v10121_v39  ;;  %v11470_v12 = vld [vmem:[#allocation45_spill] sm:$0xff] }
 0x17b   : > { %8235 = vmatprep.subr.bf16.mxu1 %v8966_v8  ;;  %v7663_v47 = vpop.f32.mrf.mxu0  ;;  %4150 = vmatmul.mubr.bf16.gmra.mxu0 %v7436_v18  ;;  %v9001_v8 = vld [vmem:[#allocation2 + $0x858] sm:$0xff]  }
 0x17c   : > { %8202 = vmatpush3.bf16.msra.mxu0 %v8979_v4  ;;  %4528 = vmatprep.mubr.bf16.mxu0 %v11466_v48  ;;  %v8988_v4 = vld [vmem:[#allocation2 + $0x8b8] sm:$0xff]  }
 0x17d   : > { %v7664_v54 = vpop.f32.mrf.mxu0  ;;  %8203 = vmatprep.subr.bf16.mxu0 %v8981_v3  ;;  %v11471_v3 = vld [vmem:[#allocation61_spill] sm:$0xff] }
 0x17e   : > { %8236 = vmatpush3.bf16.msra.mxu1 %v8968_v41  ;;  %v7665_v1 = vadd.f32 %v7664_v54, %v7663_v47  ;;  %v9003_v48 = vld [vmem:[#allocation2 + $0x818] sm:$0xff]  }
 0x17f   : > { %8237 = vmatprep.subr.bf16.mxu1 %v8970_v28  ;;  %v7666_v39 = vpop.f32.mrf.mxu0  ;;  %v8990_v28 = vld [vmem:[#allocation2 + $0x8f0] sm:$0xff]  }
 0x180   : > { %8204 = vmatpush3.bf16.msra.mxu0 %v8983_v45 }
 0x181   : > { %4207 = vmatmul.mubr.bf16.gmra.mxu1 %v10150_v29  ;;  %v7667_v10 = vpop.f32.mrf.mxu0  ;;  %8269 = vmatprep.subr.bf16.mxu0 %v8985_v27  ;;  %v7438_v29 = vcombine.low %v10292_v16, %v9894_v6  ;;  %v11469_v6 = vld [vmem:[#allocation36_spill] sm:$0xff] }
 0x182   : > { %8238 = vmatpush3.bf16.msra.mxu1 %v8972_v55  ;;  %4214 = vmatprep.mubr.bf16.mxu1 %v7439_v26  ;;  %v10433_v13 = vadd.f32 %v7667_v10, %v7666_v39  ;;  %v8992_v39 = vld [vmem:[#allocation2 + $0x8b0] sm:$0xff]  }
 0x183   : > { %8239 = vmatprep.subr.bf16.mxu1 %v8974_v53  ;;  %v7725_v23 = vpop.f32.mrf.mxu0  ;;  %4529 = vmatmul.mubr.bf16.vlgmr.msra.gmra.mxu0 %v11467_v20  ;;  %v9005_v53 = vld [vmem:[#allocation2 + $0x850] sm:$0xff]  }
 0x184   : > { %8270 = vmatpush3.bf16.msra.mxu0 %v8987_v25  ;;  %4536 = vmatprep.mubr.bf16.mxu0 %v11468_v51  ;;  %v7473_v25 = vcombine.high %v10314_v58, %v11443_v40  ;;  %v9007_v20 = vld [vmem:[#allocation2 + $0x810] sm:$0xff]   ;;  %v9009_v51 = vld [vmem:[#allocation2 + $0x848] sm:$0xff]  }
 0x185   : > { %v7726_v11 = vpop.f32.mrf.mxu0  ;;  %8271 = vmatprep.subr.bf16.mxu0 %v8989_v14  ;;  %v11472_v14 = vld [vmem:[#allocation37_spill] sm:$0xff] }
 0x186   : > { %8240 = vmatpush3.bf16.msra.mxu1 %v8976_v46  ;;  %v7727_v31 = vadd.f32 %v7726_v11, %v7725_v23 }
 0x187   : > { %8241 = vmatprep.subr.bf16.mxu1 %v8978_v9  ;;  %v7728_v43 = vpop.f32.mrf.mxu0 }
 0x188   : > { %v1878_v17 = vadd.f32 %v7727_v31, %v10355_v52  ;;  %8272 = vmatpush3.bf16.msra.mxu0 %v8991_v0  ;;  %v11473_v0 = vld [vmem:[#allocation51_spill] sm:$0xff] }
 0x189   : > { %v7703_v34 = vpop.f32.mrf.mxu1  ;;  %4215 = vmatmul.mubr.bf16.gmra.mxu1 %v7438_v29  ;;  %v7729_v61 = vpop.f32.mrf.mxu0  ;;  %8273 = vmatprep.subr.bf16.mxu0 %v8993_v24 }
 0x18a   : > { %8242 = vmatpush3.bf16.msra.mxu1 %v8980_v56  ;;  %4593 = vmatprep.mubr.bf16.mxu1 %v11469_v6  ;;  %v7730_v16 = vadd.f32 %v7729_v61, %v7728_v43  ;;  %v11474_v56 = vld [vmem:[#allocation62_spill] sm:$0xff]  ;;  %v7472_v61 = vcombine.low %v10314_v58, %v11443_v40 }
 0x18b   : > { %v7704_v49 = vpop.f32.mrf.mxu1  ;;  %8243 = vmatprep.subr.bf16.mxu1 %v8982_v21  ;;  %v7731_v57 = vpop.f32.mrf.mxu0  ;;  %4537 = vmatmul.mubr.bf16.gmra.mxu0 %v11470_v12  ;;  %v8996_v21 = vld [vmem:[#allocation2 + $0x8a8] sm:$0xff]   ;;  %v9013_v6 = vld [vmem:[#allocation2 + $0x840] sm:$0xff]  }
 0x18c   : > { %v7705_v18 = vadd.f32 %v7704_v49, %v7703_v34  ;;  %v1881_v52 = vadd.f32 %v7730_v16, %v10362_v62  ;;  %8274 = vmatpush3.bf16.msra.mxu0 %v8995_v38  ;;  %4544 = vmatprep.mubr.bf16.mxu0 %v11471_v3  ;;  %v9015_v3 = vld [vmem:[#allocation2 + $0x800] sm:$0xff]  }
 0x18d   : > { %v7706_v41 = vpop.f32.mrf.mxu1  ;;  %v7732_v47 = vpop.f32.mrf.mxu0  ;;  %8275 = vmatprep.subr.bf16.mxu0 %v8997_v44 }
 0x18e   : > { %v10444_v55 = vadd.f32 %v7705_v18, %v7665_v1  ;;  %8244 = vmatpush3.bf16.msra.mxu1 %v8984_v15  ;;  %v7733_v45 = vadd.f32 %v7732_v47, %v7731_v57  ;;  %v8994_v1 = vld [vmem:[#allocation2 + $0x8e8] sm:$0xff]   ;;  %v11475_v57 = vld [vmem:[#allocation52_spill] sm:$0xff]  ;;  %v11476_v18 = vld [vmem:[#allocation65_spill] sm:$0xff] }
 0x18f   : > { %v7707_v54 = vpop.f32.mrf.mxu1  ;;  %8309 = vmatprep.subr.bf16.mxu1 %v8986_v63  ;;  %v7734_v27 = vpop.f32.mrf.mxu0  ;;  %v9011_v15 = vld [vmem:[#allocation2 + $0x808] sm:$0xff]   ;;  %v11477_v47 = vld [vmem:[#allocation20_spill] sm:$0xff] }
 0x190   : > { %v7708_v26 = vadd.f32 %v7707_v54, %v7706_v41  ;;  %v10447_v62 = vadd.f32 %v7733_v45, %v10389_v35  ;;  %8276 = vmatpush3.bf16.msra.mxu0 %v8999_v30 }
 0x191   : > { %v7765_v46 = vpop.f32.mrf.mxu1  ;;  %4594 = vmatmul.mubr.bf16.vlgmr.msra.gmra.mxu1 %v11472_v14  ;;  %v7735_v9 = vpop.f32.mrf.mxu0  ;;  %8277 = vmatprep.subr.bf16.mxu0 %v9001_v8 }
 0x192   : > { %v10453_v10 = vadd.f32 %v7708_v26, %v10433_v13  ;;  %8310 = vmatpush3.bf16.msra.mxu1 %v8988_v4  ;;  %4601 = vmatprep.mubr.bf16.mxu1 %v11473_v0  ;;  %v7736_v23 = vadd.f32 %v7735_v9, %v7734_v27  ;;  %v8998_v13 = vld [vmem:[#allocation2 + $0x8e0] sm:$0xff]   ;;  %v7475_v27 = vcombine.high %v10337_v32, %v11447_v59  ;;  %v9010_v9 = vld [vmem:[#allocation2 + $0x8c8] sm:$0xff]  }
 0x193   : > { %v7766_v35 = vpop.f32.mrf.mxu1  ;;  %8311 = vmatprep.subr.bf16.mxu1 %v8990_v28  ;;  %v7737_v24 = vpop.f32.mrf.mxu0  ;;  %4545 = vmatmul.mubr.bf16.gmra.mxu0 %v11474_v56  ;;  %v9012_v56 = vld [vmem:[#allocation2 + $0x888] sm:$0xff]  }
 0x194   : > { %v7767_v29 = vadd.f32 %v7766_v35, %v7765_v46  ;;  %v1889_v11 = vadd.f32 %v7736_v23, %v10401_v36  ;;  %8278 = vmatpush3.bf16.msra.mxu0 %v9003_v48  ;;  %4552 = vmatprep.mubr.bf16.mxu0 %v7473_v25  ;;  %v9000_v36 = vld [vmem:[#allocation2 + $0x8a0] sm:$0xff]   ;;  %v9006_v48 = vld [vmem:[#allocation2 + $0x8d0] sm:$0xff]  }
 0x195   : > { %v7768_v31 = vpop.f32.mrf.mxu1  ;;  %v7738_v38 = vpop.f32.mrf.mxu0  ;;  %8279 = vmatprep.subr.bf16.mxu0 %v9005_v53 }
 0x196   : > { %v10458_v43 = vadd.f32 %v7767_v29, %v1878_v17  ;;  %8312 = vmatpush3.bf16.msra.mxu1 %v8992_v39  ;;  %v7739_v44 = vadd.f32 %v7738_v38, %v7737_v24  ;;  %v9002_v17 = vld [vmem:[#allocation2 + $0x8d8] sm:$0xff]   ;;  %v7474_v29 = vcombine.low %v10337_v32, %v11447_v59 }
 0x197   : > { %v7769_v34 = vpop.f32.mrf.mxu1  ;;  %8313 = vmatprep.subr.bf16.mxu1 %v8994_v1  ;;  %v7740_v63 = vpop.f32.mrf.mxu0  ;;  %v11478_v1 = vld [vmem:[#allocation66_spill] sm:$0xff] }
 0x198   : > { %v7770_v16 = vadd.f32 %v7769_v34, %v7768_v31  ;;  %v1894_v30 = vadd.f32 %v7739_v44, %v10420_v50  ;;  %8280 = vmatpush3.bf16.msra.mxu0 %v9007_v20  ;;  %v9004_v50 = vld [vmem:[#allocation2 + $0x898] sm:$0xff]  }
 0x199   : > { %v7771_v49 = vpop.f32.mrf.mxu1  ;;  %4602 = vmatmul.mubr.bf16.gmra.mxu1 %v11475_v57  ;;  %v7741_v12 = vpop.f32.mrf.mxu0  ;;  %8281 = vmatprep.subr.bf16.mxu0 %v9009_v51 }
 0x19a   : > { %v10464_v8 = vadd.f32 %v7770_v16, %v1881_v52  ;;  %8314 = vmatpush3.bf16.msra.mxu1 %v8996_v21  ;;  %4609 = vmatprep.mubr.bf16.mxu1 %v11476_v18  ;;  %v7742_v4 = vadd.f32 %v7741_v12, %v7740_v63  ;;  %v9014_v21 = vld [vmem:[#allocation2 + $0x8c0] sm:$0xff]  }
 0x19b   : > { %v7772_v58 = vpop.f32.mrf.mxu1  ;;  %8315 = vmatprep.subr.bf16.mxu1 %v8998_v13  ;;  %v7743_v40 = vpop.f32.mrf.mxu0  ;;  %4553 = vmatmul.mubr.bf16.gmra.mxu0 %v7472_v61  ;;  %v11480_v61 = vld [vmem:[#allocation47_spill] sm:$0xff]  ;;  %v11481_v16 = vld [vmem:[#allocation22_spill] sm:$0xff] }
 0x19c   : > { %v7773_v41 = vadd.f32 %v7772_v58, %v7771_v49  ;;  %v1897_v28 = vadd.f32 %v7742_v4, %v10423_v60  ;;  %8282 = vmatpush3.bf16.msra.mxu0 %v9011_v15  ;;  %4931 = vmatprep.mubr.bf16.mxu0 %v11477_v47  ;;  %v9008_v60 = vld [vmem:[#allocation2 + $0x890] sm:$0xff]   ;;  %v9016_v15 = vld [vmem:[#allocation2 + $0x880] sm:$0xff]   ;;  %v7509_v4 = vcombine.high %v10372_v2, %v10167_v37 }
 0x19d   : > { %v7774_v45 = vpop.f32.mrf.mxu1  ;;  %v7744_v52 = vpop.f32.mrf.mxu0  ;;  %8283 = vmatprep.subr.bf16.mxu0 %v9013_v6  ;;  %v11483_v47 = vld [vmem:[#allocation23_spill] sm:$0xff] }
 0x19e   : > { %v10470_v54 = vadd.f32 %v7773_v41, %v10447_v62  ;;  %8316 = vmatpush3.bf16.msra.mxu1 %v9000_v36  ;;  %v7745_v53 = vadd.f32 %v7744_v52, %v7743_v40  ;;  %v11482_v41 = vld [vmem:[#allocation48_spill] sm:$0xff] }
 0x19f   : > { %v7775_v26 = vpop.f32.mrf.mxu1  ;;  %8317 = vmatprep.subr.bf16.mxu1 %v9002_v17  ;;  %v7746_v39 = vpop.f32.mrf.mxu0 }
 0x1a0   : > { %v7776_v25 = vadd.f32 %v7775_v26, %v7774_v45  ;;  %v1902_v46 = vadd.f32 %v7745_v53, %v10444_v55  ;;  %8284 = vmatpush3.bf16.msra.mxu0 %v9015_v3 }
 0x1a1   : > { %v7777_v14 = vpop.f32.mrf.mxu1  ;;  %4610 = vmatmul.mubr.bf16.gmra.mxu1 %v11478_v1  ;;  %v7747_v0 = vpop.f32.mrf.mxu0 }
 0x1a2   : > { %v10476_v62 = vadd.f32 %v7776_v25, %v1889_v11  ;;  %8318 = vmatpush3.bf16.msra.mxu1 %v9004_v50  ;;  %4617 = vmatprep.mubr.bf16.mxu1 %v7475_v27  ;;  %v7748_v23 = vadd.f32 %v7747_v0, %v7746_v39  ;;  %v11484_v0 = vld [vmem:[#allocation26_spill] sm:$0xff] }
 0x1a3   : > { %v7778_v20 = vpop.f32.mrf.mxu1  ;;  %8319 = vmatprep.subr.bf16.mxu1 %v9006_v48  ;;  %v7805_v35 = vpop.f32.mrf.mxu0  ;;  %4932 = vmatmul.mubr.bf16.vlgmr.msra.gmra.mxu0 %v10156_v5 }
 0x1a4   : > { %v7779_v24 = vadd.f32 %v7778_v20, %v7777_v14  ;;  %v1905_v55 = vadd.f32 %v7748_v23, %v10453_v10  ;;  %4939 = vmatprep.mubr.bf16.mxu0 %v10015_v33  ;;  %v11479_v33 = vld [vmem:[#allocation21_spill] sm:$0xff] }
 0x1a5   : > { %v7780_v51 = vpop.f32.mrf.mxu1  ;;  %v7806_v11 = vpop.f32.mrf.mxu0 }
 0x1a6   : > { %v10483_v31 = vadd.f32 %v7779_v24, %v1894_v30  ;;  %8320 = vmatpush3.bf16.msra.mxu1 %v9008_v60  ;;  %v7807_v13 = vadd.f32 %v7806_v11, %v7805_v35 }
 0x1a7   : > { %v7781_v38 = vpop.f32.mrf.mxu1  ;;  %8321 = vmatprep.subr.bf16.mxu1 %v9010_v9  ;;  %v7808_v44 = vpop.f32.mrf.mxu0 }
 0x1a8   : > { %v7782_v5 = vadd.f32 %v7781_v38, %v7780_v51  ;;  %v11485_v38 = vld [vmem:[#allocation27_spill] sm:$0xff] }
 0x1a9   : > { %v7783_v34 = vpop.f32.mrf.mxu1  ;;  %4618 = vmatmul.mubr.bf16.gmra.mxu1 %v7474_v29  ;;  %v7809_v10 = vpop.f32.mrf.mxu0 }
 0x1aa   : > { %v10485_v63 = vadd.f32 %v7782_v5, %v1897_v28  ;;  %8322 = vmatpush3.bf16.msra.mxu1 %v9012_v56  ;;  %4996 = vmatprep.mubr.bf16.mxu1 %v11479_v33  ;;  %v7810_v53 = vadd.f32 %v7809_v10, %v7808_v44 }
 0x1ab   : > { %v7784_v32 = vpop.f32.mrf.mxu1  ;;  %8323 = vmatprep.subr.bf16.mxu1 %v9014_v21  ;;  %v7811_v59 = vpop.f32.mrf.mxu0  ;;  %4940 = vmatmul.mubr.bf16.gmra.mxu0 %v11480_v61 }
 0x1ac   : > { %v7785_v6 = vadd.f32 %v7784_v32, %v7783_v34  ;;  %4947 = vmatprep.mubr.bf16.mxu0 %v11481_v16  ;;  %v7510_v32 = vcombine.low %v10399_v19, %v10197_v42 }
 0x1ad   : > { %v7786_v36 = vpop.f32.mrf.mxu1  ;;  %v7812_v30 = vpop.f32.mrf.mxu0 }
 0x1ae   : > { %v10490_v49 = vadd.f32 %v7785_v6, %v1902_v46  ;;  %8324 = vmatpush3.bf16.msra.mxu1 %v9016_v15  ;;  %v7813_v57 = vadd.f32 %v7812_v30, %v7811_v59 }
 0x1af   : > { %v7787_v17 = vpop.f32.mrf.mxu1  ;;  %v7814_v12 = vpop.f32.mrf.mxu0 }
 0x1b0   : > { %v7788_v18 = vadd.f32 %v7787_v17, %v7786_v36 }
 0x1b1   : > { %v7845_v3 = vpop.f32.mrf.mxu1  ;;  %4997 = vmatmul.mubr.bf16.vlgmr.msra.gmra.mxu1 %v10182_v22  ;;  %v7815_v58 = vpop.f32.mrf.mxu0  ;;  %v7508_v22 = vcombine.low %v10372_v2, %v10167_v37 }
 0x1b2   : > { %v10495_v40 = vadd.f32 %v7788_v18, %v1905_v55  ;;  %5004 = vmatprep.mubr.bf16.mxu1 %v11482_v41  ;;  %v7511_v55 = vcombine.high %v10399_v19, %v10197_v42 }
 0x1b3   : > { %v7846_v50 = vpop.f32.mrf.mxu1  ;;  %v7817_v28 = vpop.f32.mrf.mxu0  ;;  %4948 = vmatmul.mubr.bf16.gmra.mxu0 %v11483_v47 }
 0x1b4   : > { %v7847_v45 = vadd.f32 %v7846_v50, %v7845_v3  ;;  %4955 = vmatprep.mubr.bf16.mxu0 %v7509_v4 }
 0x1b5   : > { %v7848_v48 = vpop.f32.mrf.mxu1  ;;  %v7818_v52 = vpop.f32.mrf.mxu0 }
 0x1b6   : > { %v2449_v27 = vadd.f32 %v7847_v45, %v7807_v13  ;;  %v7819_v26 = vadd.f32 %v7818_v52, %v7817_v28 }
 0x1b7   : > { %v7849_v39 = vpop.f32.mrf.mxu1  ;;  %v7820_v25 = vpop.f32.mrf.mxu0 }
 0x1b8   : > { %v10502_v60 = vadd.f32 %v2449_v27, %v10458_v43  ;;  %v7850_v46 = vadd.f32 %v7849_v39, %v7848_v48  ;;  %v7816_v43 = vadd.f32 %v7815_v58, %v7814_v12 }
 0x1b9   : > { %v7851_v14 = vpop.f32.mrf.mxu1  ;;  %5005 = vmatmul.mubr.bf16.gmra.mxu1 %v10037_v7  ;;  %v7821_v1 = vpop.f32.mrf.mxu0 }
 0x1ba   : > { %v2452_v9 = vadd.f32 %v7850_v46, %v7810_v53  ;;  %5012 = vmatprep.mubr.bf16.mxu1 %v11484_v0  ;;  %v7822_v61 = vadd.f32 %v7821_v1, %v7820_v25 }
 0x1bb   : > { %v7852_v23 = vpop.f32.mrf.mxu1  ;;  %v7823_v20 = vpop.f32.mrf.mxu0  ;;  %4956 = vmatmul.mubr.bf16.gmra.mxu0 %v7508_v22 }
 0x1bc   : > { %v10507_v35 = vadd.f32 %v2452_v9, %v10464_v8  ;;  %v7853_v24 = vadd.f32 %v7852_v23, %v7851_v14 }
 0x1bd   : > { %v7854_v56 = vpop.f32.mrf.mxu1  ;;  %v7824_v37 = vpop.f32.mrf.mxu0 }
 0x1be   : > { %v2457_v2 = vadd.f32 %v7853_v24, %v7813_v57  ;;  %v7825_v51 = vadd.f32 %v7824_v37, %v7823_v20 }
 0x1bf   : > { %v7855_v7 = vpop.f32.mrf.mxu1  ;;  %v7826_v29 = vpop.f32.mrf.mxu0 }
 0x1c0   : > { %v10512_v21 = vadd.f32 %v2457_v2, %v10470_v54  ;;  %v7856_v11 = vadd.f32 %v7855_v7, %v7854_v56 }
 0x1c1   : > { %v7857_v13 = vpop.f32.mrf.mxu1  ;;  %5013 = vmatmul.mubr.bf16.gmra.mxu1 %v11485_v38  ;;  %v7827_v8 = vpop.f32.mrf.mxu0 }
 0x1c2   : > { %v2460_v44 = vadd.f32 %v7856_v11, %v7816_v43  ;;  %5020 = vmatprep.mubr.bf16.mxu1 %v7511_v55  ;;  %v7828_v50 = vadd.f32 %v7827_v8, %v7826_v29 }
 0x1c3   : > { %v7858_v5 = vpop.f32.mrf.mxu1  ;;  %v7885_v15 = vpop.f32.mrf.mxu0 }
 0x1c4   : > { %v10516_v34 = vadd.f32 %v2460_v44, %v10476_v62  ;;  %v7859_v10 = vadd.f32 %v7858_v5, %v7857_v13 }
 0x1c5   : > { %v7860_v33 = vpop.f32.mrf.mxu1  ;;  %v7886_v59 = vpop.f32.mrf.mxu0 }
 0x1c6   : > { %v2465_v54 = vadd.f32 %v7859_v10, %v7819_v26  ;;  %v7887_v6 = vadd.f32 %v7886_v59, %v7885_v15 }
 0x1c7   : > { %v7861_v16 = vpop.f32.mrf.mxu1  ;;  %v7888_v36 = vpop.f32.mrf.mxu0 }
 0x1c8   : > { %v10521_v30 = vadd.f32 %v2465_v54, %v10483_v31  ;;  %v7862_v57 = vadd.f32 %v7861_v16, %v7860_v33 }
 0x1c9   : > { %v7863_v17 = vpop.f32.mrf.mxu1  ;;  %5021 = vmatmul.mubr.bf16.gmra.mxu1 %v7510_v32  ;;  %v7889_v12 = vpop.f32.mrf.mxu0 }
 0x1ca   : > { %v2468_v62 = vadd.f32 %v7862_v57, %v7822_v61  ;;  %v7890_v9 = vadd.f32 %v7889_v12, %v7888_v36 }
 0x1cb   : > { %v7864_v18 = vpop.f32.mrf.mxu1  ;;  %v7891_v4 = vpop.f32.mrf.mxu0 }
 0x1cc   : > { %v10524_v3 = vadd.f32 %v2468_v62, %v10485_v63  ;;  %v7865_v42 = vadd.f32 %v7864_v18, %v7863_v17 }
 0x1cd   : > { %v7866_v19 = vpop.f32.mrf.mxu1  ;;  %v7892_v58 = vpop.f32.mrf.mxu0 }
 0x1ce   : > { %v2473_v41 = vadd.f32 %v7865_v42, %v7825_v51  ;;  %v7893_v28 = vadd.f32 %v7892_v58, %v7891_v4 }
 0x1cf   : > { %v7867_v47 = vpop.f32.mrf.mxu1  ;;  %v7894_v45 = vpop.f32.mrf.mxu0 }
 0x1d0   : > { %v10527_v31 = vadd.f32 %v2473_v41, %v10490_v49  ;;  %v7868_v48 = vadd.f32 %v7867_v47, %v7866_v19 }
 0x1d1   : > { %v7925_v52 = vpop.f32.mrf.mxu1  ;;  %v7895_v27 = vpop.f32.mrf.mxu0 }
 0x1d2   : > { %v2476_v53 = vadd.f32 %v7868_v48, %v7828_v50  ;;  %v7896_v26 = vadd.f32 %v7895_v27, %v7894_v45 }
 0x1d3   : > { %v7926_v39 = vpop.f32.mrf.mxu1  ;;  %v7897_v25 = vpop.f32.mrf.mxu0 }
 0x1d4   : > { %v10530_v63 = vadd.f32 %v2476_v53, %v10495_v40  ;;  %v7927_v22 = vadd.f32 %v7926_v39, %v7925_v52 }
 0x1d5   : > { %v7928_v46 = vpop.f32.mrf.mxu1  ;;  %v7898_v14 = vpop.f32.mrf.mxu0 }
 0x1d6   : > { %v2884_v1 = vadd.f32 %v7927_v22, %v7887_v6  ;;  %v7899_v0 = vadd.f32 %v7898_v14, %v7897_v25 }
 0x1d7   : > { %v7929_v23 = vpop.f32.mrf.mxu1  ;;  %v7900_v20 = vpop.f32.mrf.mxu0 }
 0x1d8   : > { %v10533_v49 = vadd.f32 %v2884_v1, %v10502_v60  ;;  %v7930_v24 = vadd.f32 %v7929_v23, %v7928_v46 }
 0x1d9   : > { %v7931_v56 = vpop.f32.mrf.mxu1  ;;  %v7901_v37 = vpop.f32.mrf.mxu0 }
 0x1da   : > { %v2887_v2 = vadd.f32 %v7930_v24, %v7890_v9  ;;  %v7902_v43 = vadd.f32 %v7901_v37, %v7900_v20 }
 0x1db   : > { %v7932_v55 = vpop.f32.mrf.mxu1  ;;  %v7903_v51 = vpop.f32.mrf.mxu0 }
 0x1dc   : > { %v10536_v40 = vadd.f32 %v2887_v2, %v10507_v35  ;;  %v7933_v7 = vadd.f32 %v7932_v55, %v7931_v56 }
 0x1dd   : > { %v7934_v29 = vpop.f32.mrf.mxu1  ;;  %v7904_v11 = vpop.f32.mrf.mxu0 }
 0x1de   : > { %v2892_v13 = vadd.f32 %v7933_v7, %v7893_v28  ;;  %v7905_v38 = vadd.f32 %v7904_v11, %v7903_v51 }
 0x1df   : > { %v7935_v8 = vpop.f32.mrf.mxu1  ;;  %v7906_v44 = vpop.f32.mrf.mxu0 }
 0x1e0   : > { %v10539_v60 = vadd.f32 %v2892_v13, %v10512_v21  ;;  %v7936_v5 = vadd.f32 %v7935_v8, %v7934_v29 }
 0x1e1   : > { %v7937_v15 = vpop.f32.mrf.mxu1  ;;  %v7907_v10 = vpop.f32.mrf.mxu0 }
 0x1e2   : > { %v2895_v33 = vadd.f32 %v7936_v5, %v7896_v26  ;;  %v7908_v32 = vadd.f32 %v7907_v10, %v7906_v44 }
 0x1e3   : > { %v7938_v59 = vpop.f32.mrf.mxu1  ;;  %v7965_v54 = vpop.f32.mrf.mxu0 }
 0x1e4   : > { %v10542_v35 = vadd.f32 %v2895_v33, %v10516_v34  ;;  %v7939_v61 = vadd.f32 %v7938_v59, %v7937_v15 }
 0x1e5   : > { %v7940_v6 = vpop.f32.mrf.mxu1  ;;  %v7966_v16 = vpop.f32.mrf.mxu0 }
 0x1e6   : > { %v2900_v36 = vadd.f32 %v7939_v61, %v7899_v0  ;;  %v7967_v57 = vadd.f32 %v7966_v16, %v7965_v54 }
 0x1e7   : > { %v7941_v17 = vpop.f32.mrf.mxu1  ;;  %v7968_v12 = vpop.f32.mrf.mxu0 }
 0x1e8   : > { %v10545_v21 = vadd.f32 %v2900_v36, %v10521_v30  ;;  %v7942_v62 = vadd.f32 %v7941_v17, %v7940_v6 }
 0x1e9   : > { %v7943_v18 = vpop.f32.mrf.mxu1  ;;  %v7969_v4 = vpop.f32.mrf.mxu0 }
 0x1ea   : > { %v2903_v42 = vadd.f32 %v7942_v62, %v7902_v43  ;;  %v7970_v19 = vadd.f32 %v7969_v4, %v7968_v12 }
 0x1eb   : > { %v7944_v58 = vpop.f32.mrf.mxu1  ;;  %v7971_v41 = vpop.f32.mrf.mxu0 }
 0x1ec   : > { %v10548_v34 = vadd.f32 %v2903_v42, %v10524_v3  ;;  %v7945_v50 = vadd.f32 %v7944_v58, %v7943_v18 }
 0x1ed   : > { %v7946_v28 = vpop.f32.mrf.mxu1  ;;  %v7972_v47 = vpop.f32.mrf.mxu0 }
 0x1ee   : > { %v2908_v45 = vadd.f32 %v7945_v50, %v7905_v38  ;;  %v7973_v48 = vadd.f32 %v7972_v47, %v7971_v41 }
 0x1ef   : > { %v7947_v52 = vpop.f32.mrf.mxu1  ;;  %v7974_v27 = vpop.f32.mrf.mxu0 }
 0x1f0   : > { %v10551_v30 = vadd.f32 %v2908_v45, %v10527_v31  ;;  %v7948_v53 = vadd.f32 %v7947_v52, %v7946_v28 }
 0x1f1   : > { %v8005_v26 = vpop.f32.mrf.mxu1  ;;  %v7975_v39 = vpop.f32.mrf.mxu0 }
 0x1f2   : > { %v2911_v25 = vadd.f32 %v7948_v53, %v7908_v32  ;;  %v7976_v22 = vadd.f32 %v7975_v39, %v7974_v27 }
 0x1f3   : > { %v8006_v46 = vpop.f32.mrf.mxu1  ;;  %v7977_v14 = vpop.f32.mrf.mxu0 }
 0x1f4   : > { %v10554_v3 = vadd.f32 %v2911_v25, %v10530_v63  ;;  %v8007_v1 = vadd.f32 %v8006_v46, %v8005_v26 }
 0x1f5   : > { %v8008_v9 = vpop.f32.mrf.mxu1  ;;  %v7978_v0 = vpop.f32.mrf.mxu0 }
 0x1f6   : > { %v3351_v23 = vadd.f32 %v8007_v1, %v7967_v57  ;;  %v7979_v20 = vadd.f32 %v7978_v0, %v7977_v14 }
 0x1f7   : > { %v8009_v24 = vpop.f32.mrf.mxu1  ;;  %v7980_v56 = vpop.f32.mrf.mxu0 }
 0x1f8   : > { %v10557_v31 = vadd.f32 %v3351_v23, %v10533_v49  ;;  %v8010_v37 = vadd.f32 %v8009_v24, %v8008_v9 }
 0x1f9   : > { %v8011_v2 = vpop.f32.mrf.mxu1  ;;  %v7981_v43 = vpop.f32.mrf.mxu0 }
 0x1fa   : > { %v3354_v55 = vadd.f32 %v8010_v37, %v7970_v19  ;;  %v7982_v51 = vadd.f32 %v7981_v43, %v7980_v56 }
 0x1fb   : > { %v8012_v7 = vpop.f32.mrf.mxu1  ;;  %v7983_v29 = vpop.f32.mrf.mxu0 }
 0x1fc   : > { %v10560_v63 = vadd.f32 %v3354_v55, %v10536_v40  ;;  %v8013_v11 = vadd.f32 %v8012_v7, %v8011_v2 }
 0x1fd   : > { %v8014_v13 = vpop.f32.mrf.mxu1  ;;  %v7984_v38 = vpop.f32.mrf.mxu0 }
 0x1fe   : > { %v3359_v8 = vadd.f32 %v8013_v11, %v7973_v48  ;;  %v7985_v44 = vadd.f32 %v7984_v38, %v7983_v29 }
 0x1ff   : > { %v8015_v5 = vpop.f32.mrf.mxu1  ;;  %v7986_v15 = vpop.f32.mrf.mxu0 }
 0x200   : > { %v10563_v49 = vadd.f32 %v3359_v8, %v10539_v60  ;;  %v8016_v10 = vadd.f32 %v8015_v5, %v8014_v13 }
 0x201   : > { %v8017_v33 = vpop.f32.mrf.mxu1  ;;  %v7987_v32 = vpop.f32.mrf.mxu0 }
 0x202   : > { %v3362_v59 = vadd.f32 %v8016_v10, %v7976_v22  ;;  %v7988_v54 = vadd.f32 %v7987_v32, %v7986_v15 }
 0x203   : > { %v8018_v61 = vpop.f32.mrf.mxu1  ;;  %v8045_v6 = vpop.f32.mrf.mxu0 }
 0x204   : > { %v10566_v40 = vadd.f32 %v3362_v59, %v10542_v35  ;;  %v8019_v16 = vadd.f32 %v8018_v61, %v8017_v33 }
 0x205   : > { %v8020_v36 = vpop.f32.mrf.mxu1  ;;  %v8046_v57 = vpop.f32.mrf.mxu0 }
 0x206   : > { %v3367_v17 = vadd.f32 %v8019_v16, %v7979_v20  ;;  %v8047_v12 = vadd.f32 %v8046_v57, %v8045_v6 }
 0x207   : > { %v8021_v62 = vpop.f32.mrf.mxu1  ;;  %v8048_v18 = vpop.f32.mrf.mxu0 }
 0x208   : > { %v10569_v60 = vadd.f32 %v3367_v17, %v10545_v21  ;;  %v8022_v4 = vadd.f32 %v8021_v62, %v8020_v36 }
 0x209   : > { %v8023_v42 = vpop.f32.mrf.mxu1  ;;  %v8049_v19 = vpop.f32.mrf.mxu0 }
 0x20a   : > { %v3370_v58 = vadd.f32 %v8022_v4, %v7982_v51  ;;  %v8050_v41 = vadd.f32 %v8049_v19, %v8048_v18 }
 0x20b   : > { %v8024_v50 = vpop.f32.mrf.mxu1  ;;  %v8051_v28 = vpop.f32.mrf.mxu0 }
 0x20c   : > { %v10572_v35 = vadd.f32 %v3370_v58, %v10548_v34  ;;  %v8025_v47 = vadd.f32 %v8024_v50, %v8023_v42 }
 0x20d   : > { %v8026_v45 = vpop.f32.mrf.mxu1  ;;  %v8052_v48 = vpop.f32.mrf.mxu0 }
 0x20e   : > { %v3375_v52 = vadd.f32 %v8025_v47, %v7985_v44  ;;  %v8053_v27 = vadd.f32 %v8052_v48, %v8051_v28 }
 0x20f   : > { %v8027_v53 = vpop.f32.mrf.mxu1  ;;  %v8054_v26 = vpop.f32.mrf.mxu0 }
 0x210   : > { %v10575_v21 = vadd.f32 %v3375_v52, %v10551_v30  ;;  %v8028_v39 = vadd.f32 %v8027_v53, %v8026_v45 }
 0x211   : > { %v8085_v25 = vpop.f32.mrf.mxu1  ;;  %v8055_v22 = vpop.f32.mrf.mxu0 }
 0x212   : > { %v3378_v46 = vadd.f32 %v8028_v39, %v7988_v54  ;;  %v8056_v14 = vadd.f32 %v8055_v22, %v8054_v26 }
 0x213   : > { %v8086_v1 = vpop.f32.mrf.mxu1  ;;  %v8057_v9 = vpop.f32.mrf.mxu0 }
 0x214   : > { %v10578_v34 = vadd.f32 %v3378_v46, %v10554_v3  ;;  %v8087_v0 = vadd.f32 %v8086_v1, %v8085_v25 }
 0x215   : > { %v8088_v23 = vpop.f32.mrf.mxu1  ;;  %v8058_v20 = vpop.f32.mrf.mxu0 }
 0x216   : > { %v3790_v24 = vadd.f32 %v8087_v0, %v8047_v12  ;;  %v8059_v56 = vadd.f32 %v8058_v20, %v8057_v9 }
 0x217   : > { %v8089_v37 = vpop.f32.mrf.mxu1  ;;  %v8060_v2 = vpop.f32.mrf.mxu0 }
 0x218   : > { %v10581_v30 = vadd.f32 %v3790_v24, %v10557_v31  ;;  %v8090_v43 = vadd.f32 %v8089_v37, %v8088_v23 }
 0x219   : > { %v8091_v55 = vpop.f32.mrf.mxu1  ;;  %v8061_v51 = vpop.f32.mrf.mxu0 }
 0x21a   : > { %v3793_v7 = vadd.f32 %v8090_v43, %v8050_v41  ;;  %v8062_v29 = vadd.f32 %v8061_v51, %v8060_v2 }
 0x21b   : > { %v8092_v11 = vpop.f32.mrf.mxu1  ;;  %v8063_v13 = vpop.f32.mrf.mxu0 }
 0x21c   : > { %v10584_v3 = vadd.f32 %v3793_v7, %v10560_v63  ;;  %v8093_v38 = vadd.f32 %v8092_v11, %v8091_v55 }
 0x21d   : > { %v8094_v8 = vpop.f32.mrf.mxu1  ;;  %v8064_v44 = vpop.f32.mrf.mxu0 }
 0x21e   : > { %v3798_v5 = vadd.f32 %v8093_v38, %v8053_v27  ;;  %v8065_v15 = vadd.f32 %v8064_v44, %v8063_v13 }
 0x21f   : > { %v8095_v10 = vpop.f32.mrf.mxu1  ;;  %v8066_v33 = vpop.f32.mrf.mxu0 }
 0x220   : > { %v10587_v31 = vadd.f32 %v3798_v5, %v10563_v49  ;;  %v8096_v32 = vadd.f32 %v8095_v10, %v8094_v8 }
 0x221   : > { %v8097_v59 = vpop.f32.mrf.mxu1  ;;  %v8067_v54 = vpop.f32.mrf.mxu0 }
 0x222   : > { %v3801_v61 = vadd.f32 %v8096_v32, %v8056_v14  ;;  %v8068_v6 = vadd.f32 %v8067_v54, %v8066_v33 }
 0x223   : > { %v8098_v16 = vpop.f32.mrf.mxu1  ;;  %v8125_v36 = vpop.f32.mrf.mxu0 }
 0x224   : > { %v10590_v63 = vadd.f32 %v3801_v61, %v10566_v40  ;;  %v8099_v57 = vadd.f32 %v8098_v16, %v8097_v59 }
 0x225   : > { %v8100_v17 = vpop.f32.mrf.mxu1  ;;  %v8126_v12 = vpop.f32.mrf.mxu0 }
 0x226   : > { %v3806_v62 = vadd.f32 %v8099_v57, %v8059_v56  ;;  %v8127_v18 = vadd.f32 %v8126_v12, %v8125_v36 }
 0x227   : > { %v8101_v4 = vpop.f32.mrf.mxu1  ;;  %v8128_v42 = vpop.f32.mrf.mxu0 }
 0x228   : > { %v3824_v49 = vadd.f32 %v3806_v62, %v10569_v60  ;;  %v8102_v19 = vadd.f32 %v8101_v4, %v8100_v17 }
 0x229   : > { %v8103_v58 = vpop.f32.mrf.mxu1  ;;  %v8129_v41 = vpop.f32.mrf.mxu0 }
 0x22a   : > { %v3809_v50 = vadd.f32 %v8102_v19, %v8062_v29  ;;  %v8130_v28 = vadd.f32 %v8129_v41, %v8128_v42  ;;  %v9017_v41 = vld [vmem:[#allocation7 + $0x38] sm:$0xff]  }
 0x22b   : > { %v8104_v47 = vpop.f32.mrf.mxu1  ;;  %v8131_v45 = vpop.f32.mrf.mxu0 }
 0x22c   : > { %v10594_v48 = vadd.f32 %v3809_v50, %v10572_v35  ;;  %v8105_v40 = vadd.f32 %v8104_v47, %v8103_v58 }
 0x22d   : > { %v8106_v52 = vpop.f32.mrf.mxu1  ;;  %v8132_v27 = vpop.f32.mrf.mxu0 }
 0x22e   : > { %v3814_v53 = vadd.f32 %v8105_v40, %v8065_v15  ;;  %v8133_v26 = vadd.f32 %v8132_v27, %v8131_v45 }
 0x22f   : > { %v8107_v39 = vpop.f32.mrf.mxu1  ;;  %v8134_v25 = vpop.f32.mrf.mxu0 }
 0x230   : > { %v10597_v22 = vadd.f32 %v3814_v53, %v10575_v21  ;;  %v8108_v60 = vadd.f32 %v8107_v39, %v8106_v52  ;;  %v9018_v52 = vld [vmem:[#allocation7 + $0x30] sm:$0xff]  }
 0x231   : > { %v8165_v46 = vpop.f32.mrf.mxu1  ;;  %v8135_v14 = vpop.f32.mrf.mxu0 }
 0x232   : > { %v3817_v1 = vadd.f32 %v8108_v60, %v8068_v6  ;;  %v8136_v9 = vadd.f32 %v8135_v14, %v8134_v25  ;;  %v9019_v14 = vld [vmem:[#allocation7 + $0x28] sm:$0xff]  }
 0x233   : > { %v8166_v0 = vpop.f32.mrf.mxu1  ;;  %v8137_v23 = vpop.f32.mrf.mxu0 }
 0x234   : > { %v10600_v35 = vadd.f32 %v3817_v1, %v10578_v34  ;;  %v8167_v20 = vadd.f32 %v8166_v0, %v8165_v46 }
 0x235   : > { %v8168_v24 = vpop.f32.mrf.mxu1  ;;  %v8138_v56 = vpop.f32.mrf.mxu0 }
 0x236   : > { %v4193_v37 = vadd.f32 %v8167_v20, %v8127_v18  ;;  %v8139_v2 = vadd.f32 %v8138_v56, %v8137_v23  ;;  %v9020_v20 = vld [vmem:[#allocation7 + $0x78] sm:$0xff]  }
 0x237   : > { %v8169_v43 = vpop.f32.mrf.mxu1  ;;  %v10602_v55 = vpop.f32.mrf.mxu0 }
 0x238   : > { %v10605_v21 = vadd.f32 %v4193_v37, %v10581_v30  ;;  %v8170_v51 = vadd.f32 %v8169_v43, %v8168_v24  ;;  %v9021_v24 = vld [vmem:[#allocation7 + $0x20] sm:$0xff]   ;;  %v9022_v43 = vld [vmem:[#allocation7 + $0x70] sm:$0xff]  }
 0x239   : > { %v8171_v7 = vpop.f32.mrf.mxu1  ;;  %v10607_v29 = vpop.f32.mrf.mxu0 }
 0x23a   : > { %v4196_v11 = vadd.f32 %v8170_v51, %v8130_v28  ;;  %v9023_v51 = vld [vmem:[#allocation7 + $0x18] sm:$0xff]  }
 0x23b   : > { %v8172_v13 = vpop.f32.mrf.mxu1  ;;  %v8143_v38 = vpop.f32.mrf.mxu0 }
 0x23c   : > { %v10610_v34 = vadd.f32 %v4196_v11, %v10584_v3  ;;  %v8173_v8 = vadd.f32 %v8172_v13, %v8171_v7 }
 0x23d   : > { %v8174_v44 = vpop.f32.mrf.mxu1  ;;  %v8144_v5 = vpop.f32.mrf.mxu0 }
 0x23e   : > { %v4201_v15 = vadd.f32 %v8173_v8, %v8133_v26  ;;  %v8145_v10 = vadd.f32 %v8144_v5, %v8143_v38  ;;  %v9024_v8 = vld [vmem:[#allocation7 + $0x68] sm:$0xff]  }
 0x23f   : > { %v8175_v33 = vpop.f32.mrf.mxu1  ;;  %v8146_v32 = vpop.f32.mrf.mxu0 }
 0x240   : > { %v10613_v30 = vadd.f32 %v4201_v15, %v10587_v31  ;;  %v8176_v59 = vadd.f32 %v8175_v33, %v8174_v44  ;;  %v9025_v44 = vld [vmem:[#allocation7 + $0x10] sm:$0xff]  }
 0x241   : > { %v8177_v54 = vpop.f32.mrf.mxu1  ;;  %v8147_v61 = vpop.f32.mrf.mxu0 }
 0x242   : > { %v4204_v6 = vadd.f32 %v8176_v59, %v8136_v9  ;;  %v8148_v16 = vadd.f32 %v8147_v61, %v8146_v32  ;;  %v9026_v32 = vld [vmem:[#allocation7 + $0x60] sm:$0xff]   ;;  %v9027_v59 = vld [vmem:[#allocation7 + $0x8] sm:$0xff]  }
 0x243   : > { %v8178_v36 = vpop.f32.mrf.mxu1  ;;  %v10615_v57 = vpop.f32.mrf.mxu0 }
 0x244   : > { %v10618_v3 = vadd.f32 %v4204_v6, %v10590_v63  ;;  %v8179_v17 = vadd.f32 %v8178_v36, %v8177_v54  ;;  %v9273_v63 = vmov 0.0   ;;  %v9028_v36 = vld [vmem:[#allocation7 + $0x58] sm:$0xff]  }
 0x245   : > { %v10620_v12 = vpop.f32.mrf.mxu1  ;;  %v10622_v62 = vpop.f32.mrf.mxu0  ;;  %8450 = vmatprep.subr.bf16.mxu1 %v9273_v63  ;;  %8430 = vmatprep.subr.bf16.mxu0 %v9273_v63 }
 0x246   : > { %v4209_v18 = vadd.f32 %v8179_v17, %v8139_v2  ;;  %8451 = vmatpush3.bf16.msra.mxu1 %v9017_v41  ;;  %8431 = vmatpush3.bf16.msra.mxu0 %v9020_v20  ;;  %v9029_v17 = vld [vmem:[#allocation7] sm:$0xff]   ;;  %v9030_v41 = vld [vmem:[#allocation7 + $0x50] sm:$0xff]  }
 0x247   : > { %v10624_v4 = vpop.f32.mrf.mxu1  ;;  %v10626_v31 = vpop.f32.mrf.mxu0  ;;  %8452 = vmatprep.subr.bf16.mxu1 %v9273_v63  ;;  %8432 = vmatprep.subr.bf16.mxu0 %v9273_v63 }
 0x248   : > { %v10628_v42 = vadd.f32 %v4209_v18, %v3824_v49  ;;  %8466 = vmatprep.mubr.msk.bf16.mxu1 %vm9274_vm12, %v9273_v63  ;;  %8446 = vmatprep.mubr.msk.bf16.mxu0 %vm9274_vm12, %v9273_v63 }
 0x249   : > { %v8183_v19 = vpop.f32.mrf.mxu1  ;;  %v10630_v58 = vpop.f32.mrf.mxu0 }
 0x24a   : > { %8453 = vmatpush3.bf16.msra.mxu1 %v9018_v52  ;;  %8433 = vmatpush3.bf16.msra.mxu0 %v9022_v43  ;;  %v9032_v52 = vld [vmem:[#allocation7 + $0x48] sm:$0xff]  }
 0x24b   : > { %v8184_v50 = vpop.f32.mrf.mxu1  ;;  %v10632_v28 = vpop.f32.mrf.mxu0  ;;  %8454 = vmatprep.subr.bf16.mxu1 %v9273_v63  ;;  %8434 = vmatprep.subr.bf16.mxu0 %v9273_v63 }
 0x24c   : > { %v8185_v47 = vadd.f32 %v8184_v50, %v8183_v19 }
 0x24d   : > { %v8186_v45 = vpop.f32.mrf.mxu1  ;;  %v10636_v40 = vpop.f32.mrf.mxu0 }
 0x24e   : > { %v4217_v49 = vadd.f32 %v8185_v47, %v8145_v10  ;;  %8455 = vmatpush3.bf16.msra.mxu1 %v9019_v14  ;;  %8435 = vmatpush3.bf16.msra.mxu0 %v9024_v8  ;;  %v9275_v14 = vmov 1983009808   ;;  %v9034_v8 = vld [vmem:[#allocation7 + $0x40] sm:$0xff]  }
 0x24f   : > { %v8187_v27 = vpop.f32.mrf.mxu1  ;;  %v10639_v53 = vpop.f32.mrf.mxu0  ;;  %8456 = vmatprep.subr.bf16.mxu1 %v9273_v63  ;;  %8436 = vmatprep.subr.bf16.mxu0 %v9273_v63  ;;  %v5062_v20 = vunpack.c.l.s4 %v9275_v14 }
 0x250   : > { %v10642_v26 = vadd.f32 %v4217_v49, %v10597_v22  ;;  %v8188_v39 = vadd.f32 %v8187_v27, %v8186_v45  ;;  %v8207_v27 = vadd.f32 %v10622_v62, %v10615_v57  ;;  %v8182_v57 = vadd.f32 %v10624_v4, %v10620_v12 }
 0x251   : > { %v10644_v25 = vpop.f32.mrf.mxu1  ;;  %v10646_v60 = vpop.f32.mrf.mxu0 }
 0x252   : > { %v4220_v46 = vadd.f32 %v8188_v39, %v8148_v16  ;;  %8457 = vmatpush3.bf16.msra.mxu1 %v9021_v24  ;;  %8437 = vmatpush3.bf16.msra.mxu0 %v9026_v32  ;;  %v8213_v32 = vadd.f32 %v10636_v40, %v10632_v28 }
 0x253   : > { %v10649_v1 = vpop.f32.mrf.mxu1  ;;  %v10651_v9 = vpop.f32.mrf.mxu0  ;;  %8458 = vmatprep.subr.bf16.mxu1 %v9273_v63  ;;  %8438 = vmatprep.subr.bf16.mxu0 %v9273_v63 }
 0x254   : > { %v10654_v0 = vadd.f32 %v4220_v46, %v10600_v35  ;;  %v8247_v39 = vadd.f32 %v10649_v1, %v10644_v25  ;;  %v5064_v25 = vlaneseq  ;;  %v8210_v1 = vadd.f32 %v10630_v58, %v10626_v31 }
 0x255   : > { %v10656_v22 = vpop.f32.mrf.mxu1  ;;  %v10658_v23 = vpop.f32.mrf.mxu0 }
 0x256   : > { %8459 = vmatpush3.bf16.msra.mxu1 %v9023_v51  ;;  %8439 = vmatpush3.bf16.msra.mxu0 %v9028_v36  ;;  %v4596_v62 = vadd.f32 %v8247_v39, %v8207_v27  ;;  %v8219_v12 = vadd.f32 %v10658_v23, %v10651_v9  ;;  %v5065_v27 = vshrl.u32 %v5064_v25, 7 }
 0x257   : > { %v10661_v56 = vpop.f32.mrf.mxu1  ;;  %v10663_v37 = vpop.f32.mrf.mxu0  ;;  %8460 = vmatprep.subr.bf16.mxu1 %v9273_v63  ;;  %8440 = vmatprep.subr.bf16.mxu0 %v9273_v63 }
 0x259   : > { %v10666_v2 = vpop.f32.mrf.mxu1  ;;  %v10668_v35 = vpop.f32.mrf.mxu0 }
 0x25a   : > { %8461 = vmatpush3.bf16.msra.mxu1 %v9025_v44  ;;  %8441 = vmatpush3.bf16.msra.mxu0 %v9030_v41  ;;  %v8142_v44 = vadd.f32 %v10607_v29, %v10602_v55  ;;  %v8250_v55 = vadd.f32 %v10661_v56, %v10656_v22  ;;  %v8222_v28 = vadd.f32 %v10668_v35, %v10663_v37 }
 0x25b   : > { %v10671_v7 = vpop.f32.mrf.mxu1  ;;  %v10673_v11 = vpop.f32.mrf.mxu0  ;;  %8462 = vmatprep.subr.bf16.mxu1 %v9273_v63  ;;  %8442 = vmatprep.subr.bf16.mxu0 %v9273_v63  ;;  %v4626_v22 = vadd.f32 %v4596_v62, %v10605_v21 }
 0x25c   : > { %v8253_v29 = vadd.f32 %v10671_v7, %v10666_v2 }
 0x25d   : > { %v10676_v13 = vpop.f32.mrf.mxu1  ;;  %v10678_v38 = vpop.f32.mrf.mxu0 }
 0x25e   : > { %8463 = vmatpush3.bf16.msra.mxu1 %v9027_v59  ;;  %8443 = vmatpush3.bf16.msra.mxu0 %v9032_v52  ;;  %v8216_v59 = vadd.f32 %v10646_v60, %v10639_v53  ;;  %v4212_v52 = vadd.f32 %v8182_v57, %v8142_v44  ;;  %v8225_v9 = vadd.f32 %v10678_v38, %v10673_v11 }
 0x25f   : > { %v8255_v5 = vpop.f32.mrf.mxu1  ;;  %v10681_v15 = vpop.f32.mrf.mxu0  ;;  %8464 = vmatprep.subr.bf16.mxu1 %v9273_v63  ;;  %8444 = vmatprep.subr.bf16.mxu0 %v9273_v63 }
 0x260   : > { %v8256_v31 = vadd.f32 %v8255_v5, %v10676_v13  ;;  %v4599_v13 = vadd.f32 %v8250_v55, %v8210_v1  ;;  %v4604_v5 = vadd.f32 %v8253_v29, %v8213_v32 }
 0x261   : > { %v8257_v10 = vpop.f32.mrf.mxu1  ;;  %v10684_v33 = vpop.f32.mrf.mxu0 }
 0x262   : > { %8465 = vmatpush3.bf16.msra.mxu1 %v9029_v17  ;;  %v5063_v17 = vunpack.c.0.s8 %v5062_v20  ;;  %8445 = vmatpush3.bf16.msra.mxu0 %v9034_v8  ;;  %v8228_v2 = vadd.f32 %v10684_v33, %v10681_v15  ;;  %v4228_v15 = vadd.f32 %v4212_v52, %v10594_v48 }
 0x263   : > { %v8258_v54 = vpop.f32.mrf.mxu1  ;;  %v8285_v61 = vpop.f32.mrf.mxu0  ;;  %8490 = vmatprep.subr.bf16.mxu1 %v9273_v63  ;;  %8470 = vmatprep.subr.bf16.mxu0 %v9273_v63 }
 0x264   : > { %v8259_v58 = vadd.f32 %v8258_v54, %v8257_v10  ;;  %v10734_v11 = vsub.s32 %v5063_v17, %v5065_v27 }
 0x265   : > { %v8260_v6 = vpop.f32.mrf.mxu1  ;;  %v8286_v16 = vpop.f32.mrf.mxu0 }
 0x266   : > { %v8287_v4 = vadd.f32 %v8286_v16, %v8285_v61  ;;  %v4607_v61 = vadd.f32 %v8256_v31, %v8216_v59  ;;  %v4612_v21 = vadd.f32 %v8259_v58, %v8219_v12  ;;  %v10732_v16 = vld [vmem:[#allocation5] ss:$0 sm:$0xff] }
 0x267   : > { %v8261_v18 = vpop.f32.mrf.mxu1  ;;  %v8288_v19 = vpop.f32.mrf.mxu0 }
 0x268   : > { %v8262_v40 = vadd.f32 %v8261_v18, %v8260_v6  ;;  %v10741_v8 = vadd.f32 %v4607_v61, %v10618_v3  ;;  %v10744_v44 = vadd.f32 %v4612_v21, %v10628_v42 }
 0x269   : > { %v8263_v50 = vpop.f32.mrf.mxu1  ;;  %v8289_v47 = vpop.f32.mrf.mxu0 }
 0x26a   : > { %v8290_v54 = vadd.f32 %v8289_v47, %v8288_v19  ;;  %v4615_v6 = vadd.f32 %v8262_v40, %v8222_v28  ;;  %v4627_v19 = vadd.f32 %v4599_v13, %v10610_v34  ;;  %v4628_v47 = vadd.f32 %v4604_v5, %v10613_v30 }
 0x26b   : > { %v8264_v45 = vpop.f32.mrf.mxu1  ;;  %v10695_v49 = vpop.f32.mrf.mxu0 }
 0x26c   : > { %v8265_v23 = vadd.f32 %v8264_v45, %v8263_v50  ;;  %v10746_v57 = vadd.f32 %v4615_v6, %v4228_v15 }
 0x26d   : > { %v8266_v46 = vpop.f32.mrf.mxu1  ;;  %v10702_v24 = vpop.f32.mrf.mxu0 }
 0x26e   : > { %v4620_v33 = vadd.f32 %v8265_v23, %v8225_v9  ;;  %v8293_v48 = vadd.f32 %v10702_v24, %v10695_v49 }
 0x26f   : > { %v8267_v43 = vpop.f32.mrf.mxu1  ;;  %v10704_v51 = vpop.f32.mrf.mxu0 }
 0x270   : > { %v8268_v7 = vadd.f32 %v8267_v43, %v8266_v46  ;;  %v10752_v59 = vadd.f32 %v4620_v33, %v10642_v26 }
 0x271   : > { %v8325_v36 = vpop.f32.mrf.mxu1  ;;  %v8295_v41 = vpop.f32.mrf.mxu0 }
 0x272   : > { %v4623_v50 = vadd.f32 %v8268_v7, %v8228_v2 }
 0x273   : > { %v8326_v53 = vpop.f32.mrf.mxu1  ;;  %v8297_v60 = vpop.f32.mrf.mxu0 }
 0x274   : > { %v8327_v56 = vadd.f32 %v8326_v53, %v8325_v36  ;;  %v10755_v3 = vadd.f32 %v4623_v50, %v10654_v0  ;;  %v10758_v36 = vadd.f32 %v8295_v41, %v10704_v51 }
 0x275   : > { %v8328_v37 = vpop.f32.mrf.mxu1  ;;  %v8298_v35 = vpop.f32.mrf.mxu0 }
 0x276   : > { %v4999_v10 = vadd.f32 %v8327_v56, %v8287_v4  ;;  %v10760_v17 = vadd.f32 %v8298_v35, %v8297_v60 }
 0x277   : > { %v8329_v18 = vpop.f32.mrf.mxu1  ;;  %v8300_v39 = vpop.f32.mrf.mxu0 }
 0x278   : > { %v5029_v14 = vadd.f32 %v4999_v10, %v4626_v22  ;;  %v8330_v38 = vadd.f32 %v8329_v18, %v8328_v37 }
 0x279   : > { %v8331_v45 = vpop.f32.mrf.mxu1  ;;  %v8301_v46 = vpop.f32.mrf.mxu0 }
 0x27a   : > { %v5044_v20 = vadd.f32 %v10732_v16, %v5029_v14  ;;  %v5002_v43 = vadd.f32 %v8330_v38, %v8290_v54  ;;  %v10765_v58 = vadd.f32 %v8301_v46, %v8300_v39 }
 0x27b   : > { %v8332_v62 = vpop.f32.mrf.mxu1  ;;  %v8303_v25 = vpop.f32.mrf.mxu0 }
 0x27c   : > { %v5060_v1 = vcombine.high %v5044_v20, %v5044_v20  ;;  %v5067_v34 = vrot.slane %v5044_v20, %v10734_v11  ;;  %v5030_v30 = vadd.f32 %v5002_v43, %v4627_v19  ;;  %v8333_v32 = vadd.f32 %v8332_v62, %v8331_v45 }
 0x27d   : > { %v8334_v42 = vpop.f32.mrf.mxu1  ;;  %v8304_v49 = vpop.f32.mrf.mxu0 }
 0x27e   : > { %v5074_v24 = vrot.slane %v5060_v1, %v10734_v11  ;;  %v5075_v55 = vcombine.high %v5067_v34, %v5067_v34  ;;  %v5229_v29 = vsel %vm5228_vm13, %v5067_v34, -inf  ;;  %v5045_v12 = vadd.f32 %v10732_v16, %v5030_v30 }
 0x27f   : > { %v5230_v4 = vrot.slane %v5229_v29, 4  ;;  %v5007_v26 = vadd.f32 %v8333_v32, %v8293_v48  ;;  %v8335_v31 = vpop.f32.mrf.mxu1  ;;  %v10767_v0 = vadd.f32 %v8304_v49, %v8303_v25 }
 0x280   : > { %v5076_v28 = vcombine.high %v5074_v24, %v5074_v24  ;;  %v5236_v51 = vsel %vm5228_vm13, %v5075_v55, -inf  ;;  %v5243_v41 = vsel %vm5228_vm13, %v5074_v24, -inf  ;;  %v5077_v40 = vcombine.high %v5045_v12, %v5045_v12 }
 0x281   : > { %v5231_v53 = vmax.f32 %v5229_v29, %v5230_v4  ;;  %v5237_v60 = vrot.slane %v5236_v51, 4  ;;  %v5244_v52 = vrot.slane %v5243_v41, 4  ;;  %v5084_v22 = vrot.slane %v5045_v12, %v10734_v11 }
 0x282   : > { %v5250_v56 = vsel %vm5228_vm13, %v5076_v28, -inf  ;;  %v5091_v27 = vrot.slane %v5077_v40, %v10734_v11  ;;  %v5031_v9 = vadd.f32 %v5007_v26, %v4628_v47  ;;  %v8336_v23 = vadd.f32 %v8335_v31, %v8334_v42 }
 0x283   : > { %v5232_v2 = vrot.slane %v5231_v53, 2  ;;  %v5238_v7 = vmax.f32 %v5236_v51, %v5237_v60  ;;  %v5245_v37 = vmax.f32 %v5243_v41, %v5244_v52  ;;  %v5251_v35 = vrot.slane %v5250_v56, 4 }
 0x284   : > { %v5092_v13 = vcombine.high %v5084_v22, %v5084_v22  ;;  %v5093_v5 = vcombine.high %v5091_v27, %v5091_v27  ;;  %v5257_v10 = vsel %vm5228_vm13, %v5084_v22, -inf  ;;  %v5271_v54 = vsel %vm5228_vm13, %v5091_v27, -inf }
 0x285   : > { %v5233_v61 = vmax.f32 %v5231_v53, %v5232_v2  ;;  %v5239_v21 = vrot.slane %v5238_v7, 2  ;;  %v5246_v6 = vrot.slane %v5245_v37, 2  ;;  %v5252_v18 = vmax.f32 %v5250_v56, %v5251_v35  ;;  %v8337_v53 = vpop.f32.mrf.mxu1 }
 0x286   : > { %v5258_v39 = vrot.slane %v5257_v10, 4  ;;  %v5264_v14 = vsel %vm5228_vm13, %v5092_v13, -inf  ;;  %v5272_v38 = vrot.slane %v5271_v54, 4  ;;  %v5278_v15 = vsel %vm5228_vm13, %v5093_v5, -inf }
 0x287   : > { %v5234_v33 = vrot.slane %v5233_v61, 1  ;;  %v5240_v50 = vmax.f32 %v5238_v7, %v5239_v21  ;;  %v5247_v45 = vmax.f32 %v5245_v37, %v5246_v6  ;;  %v5253_v46 = vrot.slane %v5252_v18, 2 }
 0x288   : > { %v5259_v19 = vmax.f32 %v5257_v10, %v5258_v39  ;;  %v5265_v47 = vrot.slane %v5264_v14, 4  ;;  %v5273_v20 = vmax.f32 %v5271_v54, %v5272_v38  ;;  %v5279_v43 = vrot.slane %v5278_v15, 4 }
 0x289   : > { %v5235_v48 = vmax.f32 %v5233_v61, %v5234_v33  ;;  %v5241_v62 = vrot.slane %v5240_v50, 1  ;;  %v5248_v25 = vrot.slane %v5247_v45, 1  ;;  %v5254_v1 = vmax.f32 %v5252_v18, %v5253_v46  ;;  %v8338_v61 = vpop.f32.mrf.mxu1 }
 0x28a   : > { %v5260_v34 = vrot.slane %v5259_v19, 2  ;;  %v5266_v30 = vmax.f32 %v5264_v14, %v5265_v47  ;;  %v5274_v32 = vrot.slane %v5273_v20, 2  ;;  %v5280_v42 = vmax.f32 %v5278_v15, %v5279_v43 }
 0x28b   : > { %v5242_v49 = vmax.f32 %v5240_v50, %v5241_v62  ;;  %v5249_v24 = vmax.f32 %v5247_v45, %v5248_v25  ;;  %v5255_v55 = vrot.slane %v5254_v1, 1  ;;  %v5046_v29 = vadd.f32 %v10732_v16, %v5031_v9  ;;  %v8340_v62 = vpop.f32.mrf.mxu1 }
 0x28c   : > { %v5261_v12 = vmax.f32 %v5259_v19, %v5260_v34  ;;  %v5267_v4 = vrot.slane %v5266_v30, 2  ;;  %v5275_v26 = vmax.f32 %v5273_v20, %v5274_v32  ;;  %v5281_v31 = vrot.slane %v5280_v42, 2 }
 0x28d   : > { %v5256_v28 = vmax.f32 %v5254_v1, %v5255_v55  ;;  %v5094_v51 = vcombine.high %v5046_v29, %v5046_v29  ;;  %v5101_v41 = vrot.slane %v5046_v29, %v10734_v11  ;;  %v5010_v40 = vadd.f32 %v8336_v23, %v10758_v36 }
 0x28e   : > { %v5262_v60 = vrot.slane %v5261_v12, 1  ;;  %v5268_v52 = vmax.f32 %v5266_v30, %v5267_v4  ;;  %v5276_v22 = vrot.slane %v5275_v26, 1  ;;  %v5282_v56 = vmax.f32 %v5280_v42, %v5281_v31 }
 0x28f   : > { %v5108_v27 = vrot.slane %v5094_v51, %v10734_v11  ;;  %v5109_v2 = vcombine.high %v5101_v41, %v5101_v41  ;;  %v5285_v9 = vsel %vm5228_vm13, %v5101_v41, -inf  ;;  %v5032_v7 = vadd.f32 %v5010_v40, %v10741_v8  ;;  %v8341_v51 = vpop.f32.mrf.mxu1 }
 0x290   : > { %v5263_v37 = vmax.f32 %v5261_v12, %v5262_v60  ;;  %v5269_v35 = vrot.slane %v5268_v52, 1  ;;  %v5277_v13 = vmax.f32 %v5275_v26, %v5276_v22  ;;  %v5283_v5 = vrot.slane %v5282_v56, 1 }
 0x291   : > { %v5110_v10 = vcombine.high %v5108_v27, %v5108_v27  ;;  %v5286_v54 = vrot.slane %v5285_v9, 4  ;;  %v5292_v36 = vsel %vm5228_vm13, %v5109_v2, -inf  ;;  %v5299_v23 = vsel %vm5228_vm13, %v5108_v27, -inf }
 0x292   : > { %v5270_v21 = vmax.f32 %v5268_v52, %v5269_v35  ;;  %v5284_v6 = vmax.f32 %v5282_v56, %v5283_v5  ;;  %v5453_v18 = vmax.f32 %v5235_v48, %v5263_v37  ;;  %v5455_v39 = vmax.f32 %v5249_v24, %v5277_v13 }
 0x293   : > { %v5287_v14 = vmax.f32 %v5285_v9, %v5286_v54  ;;  %v5293_v8 = vrot.slane %v5292_v36, 4  ;;  %v5300_v38 = vrot.slane %v5299_v23, 4  ;;  %v5306_v15 = vsel %vm5228_vm13, %v5110_v10, -inf }
 0x294   : > { %v5454_v33 = vmax.f32 %v5242_v49, %v5270_v21  ;;  %v5456_v50 = vmax.f32 %v5256_v28, %v5284_v6  ;;  %v5469_v45 = vpack.c.bf16 %v5453_v18, %v5453_v18  ;;  %v5471_v46 = vpack.c.bf16 %v5455_v39, %v5455_v39 }
 0x295   : > { %v5288_v19 = vrot.slane %v5287_v14, 2  ;;  %v5294_v47 = vmax.f32 %v5292_v36, %v5293_v8  ;;  %v5301_v20 = vmax.f32 %v5299_v23, %v5300_v38  ;;  %v5307_v43 = vrot.slane %v5306_v15, 4 }
 0x296   : > { %v5470_v25 = vpack.c.bf16 %v5454_v33, %v5454_v33  ;;  %v5472_v1 = vpack.c.bf16 %v5456_v50, %v5456_v50  ;;  %v5505_v48 = vunpack.c.l.b16 %v5469_v45  ;;  %v5507_v34 = vunpack.c.l.b16 %v5471_v46 }
 0x297   : > { %v5561_v30 = vshll.u32 %v5471_v46, 16  ;;  %v5289_v32 = vmax.f32 %v5287_v14, %v5288_v19  ;;  %v5295_v42 = vrot.slane %v5294_v47, 2  ;;  %v5302_v24 = vrot.slane %v5301_v20, 2 }
 0x298   : > { %v5506_v55 = vunpack.c.l.b16 %v5470_v25  ;;  %v5508_v29 = vunpack.c.l.b16 %v5472_v1  ;;  %v5527_v12 = vrot.slane %v5505_v48, 7  ;;  %v5530_v49 = vrot.slane %v5507_v34, 5 }
 0x299   : > { %v10787_v4 = vrot.slane %v5561_v30, 6  ;;  %v5290_v26 = vrot.slane %v5289_v32, 1  ;;  %v5296_v31 = vmax.f32 %v5294_v47, %v5295_v42  ;;  %v5303_v28 = vmax.f32 %v5301_v20, %v5302_v24 }
 0x29a   : > { %v5528_v41 = vrot.slane %v5506_v55, 6  ;;  %v5532_v40 = vrot.slane %v5508_v29, 4  ;;  %v5308_v60 = vmax.f32 %v5306_v15, %v5307_v43  ;;  %v5047_v52 = vadd.f32 %v10732_v16, %v5032_v7  ;;  %v8343_v7 = vpop.f32.mrf.mxu1 }
 0x29b   : > { %v10790_v22 = vmax.f32 %v5289_v32, %v5290_v26  ;;  %v5297_v56 = vrot.slane %v5296_v31, 1  ;;  %v5304_v27 = vrot.slane %v5303_v28, 1  ;;  %v8339_v2 = vadd.f32 %v8338_v61, %v8337_v53 }
 0x29c   : > { %v5529_v9 = vsel %vm5519_vm14, %v5528_v41, %v5527_v12  ;;  %v5309_v37 = vrot.slane %v5308_v60, 2  ;;  %v5111_v35 = vcombine.high %v5047_v52, %v5047_v52  ;;  %v5118_v13 = vrot.slane %v5047_v52, %v10734_v11  ;;  %v8344_v47 = vpop.f32.mrf.mxu1 }
 0x29d   : > { %v5531_v5 = vsel %vm5522_vm15, %v5530_v49, %v5529_v9  ;;  %v10795_v10 = vmax.f32 %v5296_v31, %v5297_v56  ;;  %v10797_v54 = vmax.f32 %v5303_v28, %v5304_v27  ;;  %v5015_v36 = vadd.f32 %v8339_v2, %v10760_v17 }
 0x29e   : > { %v5533_v23 = vsel %vm5525_vm0, %v5532_v40, %v5531_v5  ;;  %v5310_v21 = vmax.f32 %v5308_v60, %v5309_v37  ;;  %v5125_v53 = vrot.slane %v5111_v35, %v10734_v11  ;;  %v5126_v61 = vcombine.high %v5118_v13, %v5118_v13 }
 0x29f   : > { %v5549_v6 = vpack.c.b16 %v5533_v23, %v5533_v23  ;;  %v5313_v18 = vsel %vm5228_vm13, %v5118_v13, -inf  ;;  %v5033_v39 = vadd.f32 %v5015_v36, %v10744_v44  ;;  %v8342_v14 = vadd.f32 %v8341_v51, %v8340_v62 }
 0x2a0   : > { %v5311_v8 = vrot.slane %v5310_v21, 1  ;;  %v5127_v38 = vcombine.high %v5125_v53, %v5125_v53  ;;  %v5314_v15 = vrot.slane %v5313_v18, 4  ;;  %v5320_v33 = vsel %vm5228_vm13, %v5126_v61, -inf }
 0x2a1   : > { %v10807_v17 = vsel %vm9446_vm4, %v5470_v25, %v5549_v6  ;;  %v5321_v45 = vrot.slane %v5320_v33, 4  ;;  %v5327_v46 = vsel %vm5228_vm13, %v5125_v53, -inf  ;;  %v5048_v19 = vadd.f32 %v10732_v16, %v5033_v39 }
 0x2a2   : > { %v5312_v20 = vmax.f32 %v5310_v21, %v5311_v8  ;;  %v5315_v43 = vmax.f32 %v5313_v18, %v5314_v15  ;;  %v5328_v1 = vrot.slane %v5327_v46, 4  ;;  %v5334_v44 = vsel %vm5228_vm13, %v5127_v38, -inf }
 0x2a3   : > { %v5322_v62 = vmax.f32 %v5320_v33, %v5321_v45  ;;  %v5335_v48 = vrot.slane %v5334_v44, 4  ;;  %v5128_v34 = vcombine.high %v5048_v19, %v5048_v19  ;;  %v5135_v30 = vrot.slane %v5048_v19, %v10734_v11 }
 0x2a4   : > { %v5316_v32 = vrot.slane %v5315_v43, 2  ;;  %v5329_v42 = vmax.f32 %v5327_v46, %v5328_v1  ;;  %v5018_v25 = vadd.f32 %v8342_v14, %v10765_v58  ;;  %v10814_v24 = vadd.f32 %v8344_v47, %v8343_v7 }
 0x2a5   : > { %v5323_v55 = vrot.slane %v5322_v62, 2  ;;  %v5336_v29 = vmax.f32 %v5334_v44, %v5335_v48  ;;  %v5142_v12 = vrot.slane %v5128_v34, %v10734_v11  ;;  %v5143_v49 = vcombine.high %v5135_v30, %v5135_v30  ;;  %v8306_v48 = vpop.f32.mrf.mxu0 }
 0x2a6   : > { %v5317_v26 = vmax.f32 %v5315_v43, %v5316_v32  ;;  %v5330_v31 = vrot.slane %v5329_v42, 2  ;;  %v5341_v28 = vsel %vm5228_vm13, %v5135_v30, -inf  ;;  %v5034_v51 = vadd.f32 %v5018_v25, %v10746_v57 }
 0x2a7   : > { %v5324_v41 = vmax.f32 %v5322_v62, %v5323_v55  ;;  %v5337_v40 = vrot.slane %v5336_v29, 2  ;;  %v5144_v60 = vcombine.high %v5142_v12, %v5142_v12  ;;  %v5342_v52 = vrot.slane %v5341_v28, 4 }
 0x2a8   : > { %v5318_v56 = vrot.slane %v5317_v26, 1  ;;  %v5331_v27 = vmax.f32 %v5329_v42, %v5330_v31  ;;  %v5348_v58 = vsel %vm5228_vm13, %v5143_v49, -inf  ;;  %v5355_v2 = vsel %vm5228_vm13, %v5142_v12, -inf  ;;  %v8346_v42 = vpop.f32.mrf.mxu1 }
 0x2a9   : > { %v5325_v9 = vrot.slane %v5324_v41, 1  ;;  %v5338_v37 = vmax.f32 %v5336_v29, %v5337_v40  ;;  %v5343_v35 = vmax.f32 %v5341_v28, %v5342_v52  ;;  %v5349_v13 = vrot.slane %v5348_v58, 4  ;;  %v8307_v40 = vpop.f32.mrf.mxu0 }
 0x2aa   : > { %v5319_v5 = vmax.f32 %v5317_v26, %v5318_v56  ;;  %v5332_v36 = vrot.slane %v5331_v27, 1  ;;  %v5356_v7 = vrot.slane %v5355_v2, 4  ;;  %v5362_v23 = vsel %vm5228_vm13, %v5144_v60, -inf }
 0x2ab   : > { %v5326_v57 = vmax.f32 %v5324_v41, %v5325_v9  ;;  %v5339_v21 = vrot.slane %v5338_v37, 1  ;;  %v5344_v53 = vrot.slane %v5343_v35, 2  ;;  %v5350_v61 = vmax.f32 %v5348_v58, %v5349_v13  ;;  %v8347_v58 = vpop.f32.mrf.mxu1 }
 0x2ac   : > { %v5333_v6 = vmax.f32 %v5331_v27, %v5332_v36  ;;  %v5457_v18 = vmax.f32 %v10790_v22, %v5319_v5  ;;  %v5357_v39 = vmax.f32 %v5355_v2, %v5356_v7  ;;  %v5363_v14 = vrot.slane %v5362_v23, 4 }
 0x2ad   : > { %v5340_v8 = vmax.f32 %v5338_v37, %v5339_v21  ;;  %v5458_v38 = vmax.f32 %v10795_v10, %v5326_v57  ;;  %v5345_v15 = vmax.f32 %v5343_v35, %v5344_v53  ;;  %v5351_v33 = vrot.slane %v5350_v61, 2 }
 0x2ae   : > { %v5459_v45 = vmax.f32 %v10797_v54, %v5333_v6  ;;  %v5473_v46 = vpack.c.bf16 %v5457_v18, %v5457_v18  ;;  %v5358_v19 = vrot.slane %v5357_v39, 2  ;;  %v5364_v47 = vmax.f32 %v5362_v23, %v5363_v14 }
 0x2af   : > { %v5460_v43 = vmax.f32 %v5312_v20, %v5340_v8  ;;  %v5474_v1 = vpack.c.bf16 %v5458_v38, %v5458_v38  ;;  %v5346_v44 = vrot.slane %v5345_v15, 1  ;;  %v5352_v62 = vmax.f32 %v5350_v61, %v5351_v33 }
 0x2b0   : > { %v5475_v34 = vpack.c.bf16 %v5459_v45, %v5459_v45  ;;  %v5501_v30 = vunpack.c.l.b16 %v5473_v46  ;;  %v5359_v22 = vmax.f32 %v5357_v39, %v5358_v19  ;;  %v5365_v32 = vrot.slane %v5364_v47, 2 }
 0x2b1   : > { %v5476_v25 = vpack.c.bf16 %v5460_v43, %v5460_v43  ;;  %v5502_v55 = vunpack.c.l.b16 %v5474_v1  ;;  %v10825_v10 = vmax.f32 %v5345_v15, %v5346_v44  ;;  %v5353_v29 = vrot.slane %v5352_v62, 1 }
 0x2b2   : > { %v5503_v12 = vunpack.c.l.b16 %v5475_v34  ;;  %v5517_v54 = vrot.slane %v5501_v30, 7  ;;  %v5557_v49 = vshll.u32 %v5475_v34, 16  ;;  %v5360_v26 = vrot.slane %v5359_v22, 1 }
 0x2b3   : > { %v5504_v31 = vunpack.c.l.b16 %v5476_v25  ;;  %v5518_v20 = vrot.slane %v5502_v55, 6  ;;  %v10827_v28 = vmax.f32 %v5352_v62, %v5353_v29  ;;  %v5366_v41 = vmax.f32 %v5364_v47, %v5365_v32 }
 0x2b4   : > { %v5521_v60 = vrot.slane %v5503_v12, 5  ;;  %v5559_v52 = vrot.slane %v5557_v49, 6  ;;  %v10829_v56 = vmax.f32 %v5359_v22, %v5360_v26  ;;  %v5049_v27 = vadd.f32 %v10732_v16, %v5034_v51 }
 0x2b5   : > { %v5520_v2 = vsel %vm5519_vm14, %v5518_v20, %v5517_v54  ;;  %v5524_v9 = vrot.slane %v5504_v31, 4  ;;  %v5367_v37 = vrot.slane %v5366_v41, 1  ;;  %v5023_v35 = vadd.f32 %v10814_v24, %v10767_v0 }
 0x2b6   : > { %v5523_v13 = vsel %vm5522_vm15, %v5521_v60, %v5520_v2  ;;  %v5145_v5 = vcombine.high %v5049_v27, %v5049_v27  ;;  %v5152_v36 = vrot.slane %v5049_v27, %v10734_v11  ;;  %v8308_v7 = vadd.f32 %v8307_v40, %v8306_v48 }
 0x2b7   : > { %v5526_v51 = vsel %vm5525_vm0, %v5524_v9, %v5523_v13  ;;  %v10844_v57 = vmax.f32 %v5366_v41, %v5367_v37  ;;  %v5035_v21 = vadd.f32 %v5023_v35, %v10752_v59  ;;  %v8348_v53 = vadd.f32 %v8347_v58, %v8346_v42 }
 0x2b8   : > { %v5548_v0 = vpack.c.b16 %v5526_v51, %v5526_v51  ;;  %v5159_v24 = vrot.slane %v5145_v5, %v10734_v11  ;;  %v5160_v61 = vcombine.high %v5152_v36, %v5152_v36  ;;  %v5369_v6 = vsel %vm5228_vm13, %v5152_v36, -inf }
 0x2b9   : > { %v5370_v18 = vrot.slane %v5369_v6, 4  ;;  %v5050_v39 = vadd.f32 %v10732_v16, %v5035_v21  ;;  %v5026_v14 = vadd.f32 %v8348_v53, %v8308_v7  ;;  %v10854_v8 = vsel %vm10839_vm3, %v10807_v17, %v10787_v4 }
 0x2ba   : > { %v5576_v59 = vsel %vm9446_vm4, %v5474_v1, %v5548_v0  ;;  %v5161_v38 = vcombine.high %v5159_v24, %v5159_v24  ;;  %v5376_v15 = vsel %vm5228_vm13, %v5160_v61, -inf  ;;  %v5383_v33 = vsel %vm5228_vm13, %v5159_v24, -inf }
 0x2bb   : > { %v5371_v45 = vmax.f32 %v5369_v6, %v5370_v18  ;;  %v5377_v46 = vrot.slane %v5376_v15, 4  ;;  %v5384_v19 = vrot.slane %v5383_v33, 4  ;;  %v5162_v47 = vcombine.high %v5050_v39, %v5050_v39 }
 0x2bc   : > { %v5390_v43 = vsel %vm5228_vm13, %v5161_v38, -inf  ;;  %v5169_v44 = vrot.slane %v5050_v39, %v10734_v11  ;;  %v5036_v62 = vadd.f32 %v5026_v14, %v10755_v3  ;;  %v10865_v4 = vsel %vm10839_vm3, %v5576_v59, %v5559_v52 }
 0x2bd   : > { %v5372_v17 = vrot.slane %v5371_v45, 2  ;;  %v5378_v1 = vmax.f32 %v5376_v15, %v5377_v46  ;;  %v5385_v48 = vmax.f32 %v5383_v33, %v5384_v19  ;;  %v5391_v34 = vrot.slane %v5390_v43, 4 }
 0x2be   : > { %v5176_v30 = vrot.slane %v5162_v47, %v10734_v11  ;;  %v5177_v22 = vcombine.high %v5169_v44, %v5169_v44  ;;  %v5397_v32 = vsel %vm5228_vm13, %v5169_v44, -inf  ;;  %v10870_v42 = vadd.f32 %v10732_v16, %v5036_v62 }
 0x2bf   : > { %v5373_v25 = vmax.f32 %v5371_v45, %v5372_v17  ;;  %v5379_v55 = vrot.slane %v5378_v1, 2  ;;  %v5386_v29 = vrot.slane %v5385_v48, 2  ;;  %v5392_v3 = vmax.f32 %v5390_v43, %v5391_v34 }
 0x2c0   : > { %v5178_v12 = vcombine.high %v5176_v30, %v5176_v30  ;;  %v5398_v54 = vrot.slane %v5397_v32, 4  ;;  %v5404_v49 = vsel %vm5228_vm13, %v5177_v22, -inf  ;;  %v5411_v26 = vsel %vm5228_vm13, %v5176_v30, -inf }
 0x2c1   : > { %v5374_v31 = vrot.slane %v5373_v25, 1  ;;  %v5380_v20 = vmax.f32 %v5378_v1, %v5379_v55  ;;  %v5387_v41 = vmax.f32 %v5385_v48, %v5386_v29  ;;  %v5393_v40 = vrot.slane %v5392_v3, 2 }
 0x2c2   : > { %v5399_v60 = vmax.f32 %v5397_v32, %v5398_v54  ;;  %v5405_v52 = vrot.slane %v5404_v49, 4  ;;  %v5412_v27 = vrot.slane %v5411_v26, 4  ;;  %v5418_v16 = vsel %vm5228_vm13, %v5178_v12, -inf }
 0x2c3   : > { %v5375_v58 = vmax.f32 %v5373_v25, %v5374_v31  ;;  %v5381_v2 = vrot.slane %v5380_v20, 1  ;;  %v5388_v9 = vrot.slane %v5387_v41, 1  ;;  %v5394_v37 = vmax.f32 %v5392_v3, %v5393_v40 }
 0x2c4   : > { %v5400_v35 = vrot.slane %v5399_v60, 2  ;;  %v5406_v13 = vmax.f32 %v5404_v49, %v5405_v52  ;;  %v5413_v5 = vmax.f32 %v5411_v26, %v5412_v27  ;;  %v5419_v36 = vrot.slane %v5418_v16, 4 }
 0x2c5   : > { %v5382_v7 = vmax.f32 %v5380_v20, %v5381_v2  ;;  %v5389_v51 = vmax.f32 %v5387_v41, %v5388_v9  ;;  %v5395_v21 = vrot.slane %v5394_v37, 1  ;;  %v5461_v53 = vmax.f32 %v10825_v10, %v5375_v58 }
 0x2c6   : > { %v5401_v0 = vmax.f32 %v5399_v60, %v5400_v35  ;;  %v5407_v24 = vrot.slane %v5406_v13, 2  ;;  %v5414_v61 = vrot.slane %v5413_v5, 2  ;;  %v5420_v6 = vmax.f32 %v5418_v16, %v5419_v36 }
 0x2c7   : > { %v5396_v18 = vmax.f32 %v5394_v37, %v5395_v21  ;;  %v5462_v39 = vmax.f32 %v10827_v28, %v5382_v7  ;;  %v5463_v14 = vmax.f32 %v10829_v56, %v5389_v51  ;;  %v5477_v59 = vpack.c.bf16 %v5461_v53, %v5461_v53 }
 0x2c8   : > { %v5402_v38 = vrot.slane %v5401_v0, 1  ;;  %v5408_v15 = vmax.f32 %v5406_v13, %v5407_v24  ;;  %v5415_v33 = vmax.f32 %v5413_v5, %v5414_v61  ;;  %v5421_v45 = vrot.slane %v5420_v6, 2 }
 0x2c9   : > { %v5464_v46 = vmax.f32 %v10844_v57, %v5396_v18  ;;  %v5478_v19 = vpack.c.bf16 %v5462_v39, %v5462_v39  ;;  %v5479_v47 = vpack.c.bf16 %v5463_v14, %v5463_v14  ;;  %v5509_v43 = vunpack.c.l.b16 %v5477_v59 }
 0x2ca   : > { %v5409_v10 = vrot.slane %v5408_v15, 1  ;;  %v5416_v44 = vrot.slane %v5415_v33, 1  ;;  %v5422_v62 = vmax.f32 %v5420_v6, %v5421_v45  ;;  %v10879_v34 = vmax.f32 %v5401_v0, %v5402_v38 }
 0x2cb   : > { %v5480_v17 = vpack.c.bf16 %v5464_v46, %v5464_v46  ;;  %v5510_v1 = vunpack.c.l.b16 %v5478_v19  ;;  %v5511_v48 = vunpack.c.l.b16 %v5479_v47  ;;  %v5534_v28 = vrot.slane %v5509_v43, 7 }
 0x2cc   : > { %v5565_v56 = vshll.u32 %v5479_v47, 16  ;;  %v10881_v30 = vmax.f32 %v5408_v15, %v5409_v10  ;;  %v5423_v22 = vrot.slane %v5422_v62, 1  ;;  %v5179_v57 = vcombine.high %v10870_v42, %v10870_v42 }
 0x2cd   : > { %v5512_v32 = vunpack.c.l.b16 %v5480_v17  ;;  %v5535_v25 = vrot.slane %v5510_v1, 6  ;;  %v5537_v55 = vrot.slane %v5511_v48, 5  ;;  %v10885_v3 = vmax.f32 %v5415_v33, %v5416_v44  ;;  %v9031_v17 = vld [vmem:[#allocation7 + $0xf8] sm:$0xff]  }
 0x2ce   : > { %v5567_v29 = vrot.slane %v5565_v56, 6  ;;  %v10887_v12 = vmax.f32 %v5422_v62, %v5423_v22  ;;  %v5186_v54 = vrot.slane %v10870_v42, %v10734_v11  ;;  %v5193_v31 = vrot.slane %v5179_v57, %v10734_v11 }
 0x2cf   : > { %v5536_v49 = vsel %vm5519_vm14, %v5535_v25, %v5534_v28  ;;  %v5539_v26 = vrot.slane %v5512_v32, 4  ;;  %v10895_v20 = vrot.slane %v10865_v4, %v10734_v11  ;;  %v5802_v52 = vcombine.low %v10865_v4, %v10854_v8 }
 0x2d0   : > { %v5538_v41 = vsel %vm5522_vm15, %v5537_v55, %v5536_v49  ;;  %v5194_v40 = vcombine.high %v5186_v54, %v5186_v54  ;;  %v5425_v60 = vsel %vm5228_vm13, %v5186_v54, -inf  ;;  %v5195_v27 = vcombine.high %v5193_v31, %v5193_v31 }
 0x2d1   : > { %v5540_v42 = vsel %vm5525_vm0, %v5539_v26, %v5538_v41  ;;  %v5426_v16 = vrot.slane %v5425_v60, 4  ;;  %v5439_v58 = vsel %vm5228_vm13, %v5193_v31, -inf  ;;  %v10906_v35 = vrot.slane %v10854_v8, %v10734_v11 }
 0x2d2   : > { %v5550_v2 = vpack.c.b16 %v5540_v42, %v5540_v42  ;;  %v5432_v9 = vsel %vm5228_vm13, %v5194_v40, -inf  ;;  %v5440_v37 = vrot.slane %v5439_v58, 4  ;;  %v5446_v36 = vsel %vm5228_vm13, %v5195_v27, -inf }
 0x2d3   : > { %v5427_v13 = vmax.f32 %v5425_v60, %v5426_v16  ;;  %v5433_v5 = vrot.slane %v5432_v9, 4  ;;  %v5810_v7 = vrot.slane %v5802_v52, %v10734_v11  ;;  %v5447_v53 = vrot.slane %v5446_v36, 4  ;;  %v9033_v52 = vld [vmem:[#allocation7 + $0xf0] sm:$0xff]  }
 0x2d4   : > { %v5578_v51 = vsel %vm9446_vm4, %v5478_v19, %v5550_v2  ;;  %v5441_v21 = vmax.f32 %v5439_v58, %v5440_v37  ;;  %v10914_v0 = vcombine.high %v10895_v20, %v10895_v20  ;;  %v5637_v18 = vshrl.u32 %v10895_v20, 16 }
 0x2d5   : > { %v5428_v24 = vrot.slane %v5427_v13, 2  ;;  %v5434_v61 = vmax.f32 %v5432_v9, %v5433_v5  ;;  %v10918_v6 = vsel %vm10839_vm3, %v5578_v51, %v5567_v29  ;;  %v5448_v14 = vmax.f32 %v5446_v36, %v5447_v53  ;;  %v9035_v53 = vld [vmem:[#allocation7 + $0xe8] sm:$0xff]  }
 0x2d6   : > { %v5442_v39 = vrot.slane %v5441_v21, 2  ;;  %v5803_v59 = vcombine.low %v10865_v4, %v10918_v6  ;;  %v10925_v38 = vcombine.high %v10906_v35, %v10906_v35  ;;  %v5639_v45 = vrot.slane %v5637_v18, 6 }
 0x2d7   : > { %v5429_v15 = vmax.f32 %v5427_v13, %v5428_v24  ;;  %v5435_v33 = vrot.slane %v5434_v61, 2  ;;  %v5640_v46 = vshll.u32 %v10895_v20, 16  ;;  %v5449_v47 = vrot.slane %v5448_v14, 2 }
 0x2d8   : > { %v5443_v19 = vmax.f32 %v5441_v21, %v5442_v39  ;;  %v10930_v43 = vrot.slane %v10918_v6, %v10734_v11  ;;  %v10933_v10 = vrot.slane %v5803_v59, %v10734_v11  ;;  %v5646_v48 = vshll.u32 %v10914_v0, 16 }
 0x2d9   : > { %v5430_v44 = vrot.slane %v5429_v15, 1  ;;  %v5436_v62 = vmax.f32 %v5434_v61, %v5435_v33  ;;  %v5642_v1 = vrot.slane %v5640_v46, 7  ;;  %v5450_v56 = vmax.f32 %v5448_v14, %v5449_v47 }
 0x2da   : > { %v5444_v28 = vrot.slane %v5443_v19, 1  ;;  %v5818_v22 = vcombine.low %v5810_v7, %v10933_v10  ;;  %v5651_v32 = vshrl.u32 %v10906_v35, 16  ;;  %v5648_v29 = vrot.slane %v5646_v48, 7  ;;  %v9037_v48 = vld [vmem:[#allocation7 + $0xe0] sm:$0xff]  }
 0x2db   : > { %v5431_v25 = vmax.f32 %v5429_v15, %v5430_v44  ;;  %v5437_v55 = vrot.slane %v5436_v62, 1  ;;  %v5643_v57 = vor.u32 %v5642_v1, %v5639_v45  ;;  %v5451_v49 = vrot.slane %v5450_v56, 1 }
 0x2dc   : > { %v5445_v54 = vmax.f32 %v5443_v19, %v5444_v28  ;;  %8467 = vmatmul.mubr.bf16.vlgmr.msra.gmra.mxu1 %v5818_v22  ;;  %v5653_v31 = vrot.slane %v5651_v32, 6  ;;  %v5654_v41 = vshll.u32 %v10906_v35, 16  ;;  %v5660_v27 = vshll.u32 %v10925_v38, 16 }
 0x2dd   : > { %v5438_v40 = vmax.f32 %v5436_v62, %v5437_v55  ;;  %v5465_v60 = vmax.f32 %v10879_v34, %v5431_v25  ;;  %8491 = vmatpush3.bf16.msra.mxu1 %v9031_v17  ;;  %v5644_v42 = vrot.slane %v5643_v57, 2  ;;  %8506 = vmatprep.mubr.msk.bf16.mxu1 %vm9274_vm12, %v9273_v63  ;;  %v5452_v16 = vmax.f32 %v5450_v56, %v5451_v49 }
 0x2de   : > { %v5467_v58 = vmax.f32 %v10885_v3, %v5445_v54  ;;  %8492 = vmatprep.subr.bf16.mxu1 %v9273_v63  ;;  %v5656_v2 = vrot.slane %v5654_v41, 7  ;;  %v5665_v9 = vshrl.u32 %v10930_v43, 16  ;;  %v5628_v34 = vcombine.high %v10930_v43, %v10930_v43  ;;  %v9042_v54 = vld [vmem:[#allocation7 + $0xa0] sm:$0xff]  }
 0x2df   : > { %v5466_v37 = vmax.f32 %v10881_v30, %v5438_v40  ;;  %v5481_v13 = vpack.c.bf16 %v5465_v60, %v5465_v60  ;;  %v5468_v3 = vmax.f32 %v10887_v12, %v5452_v16  ;;  %v10966_v7 = vsel %vm10959_vm11, %v5644_v42, %v5648_v29 }
 0x2e0   : > { %v5483_v36 = vpack.c.bf16 %v5467_v58, %v5467_v58  ;;  %v5657_v51 = vor.u32 %v5656_v2, %v5653_v31  ;;  %v5667_v24 = vrot.slane %v5665_v9, 6  ;;  %v5668_v61 = vshll.u32 %v10930_v43, 16  ;;  %v9039_v31 = vld [vmem:[#allocation7 + $0xd8] sm:$0xff]  }
 0x2e1   : > { %v5482_v30 = vpack.c.bf16 %v5466_v37, %v5466_v37  ;;  %v5513_v21 = vunpack.c.l.b16 %v5481_v13  ;;  %8493 = vmatpush3.bf16.msra.mxu1 %v9033_v52  ;;  %v5484_v18 = vpack.c.bf16 %v5468_v3, %v5468_v3  ;;  %v5662_v14 = vrot.slane %v5660_v27, 7  ;;  %v9036_v13 = vld [vmem:[#allocation7 + $0xb8] sm:$0xff]  }
 0x2e2   : > { %v5515_v39 = vunpack.c.l.b16 %v5483_v36  ;;  %8494 = vmatprep.subr.bf16.mxu1 %v9273_v63  ;;  %v5658_v12 = vrot.slane %v5657_v51, 2  ;;  %v5670_v15 = vrot.slane %v5668_v61, 7  ;;  %v5674_v33 = vshll.u32 %v5628_v34, 16 }
 0x2e3   : > { %v5514_v59 = vunpack.c.l.b16 %v5482_v30  ;;  %v5516_v45 = vunpack.c.l.b16 %v5484_v18  ;;  %v5541_v46 = vrot.slane %v5513_v21, 7  ;;  %v6071_v28 = vcombine.low %v10854_v8, %v10865_v4 }
 0x2e4   : > { %v5544_v19 = vrot.slane %v5515_v39, 5  ;;  %v10974_v47 = vsel %vm10959_vm11, %v5658_v12, %v5662_v14  ;;  %v5671_v17 = vor.u32 %v5670_v15, %v5667_v24  ;;  %v5569_v22 = vshll.u32 %v5483_v36, 16  ;;  %v9038_v39 = vld [vmem:[#allocation7 + $0xb0] sm:$0xff]   ;;  %v9043_v12 = vld [vmem:[#allocation7 + $0xc8] sm:$0xff]  }
 0x2e5   : > { %v5542_v62 = vrot.slane %v5514_v59, 6  ;;  %8495 = vmatpush3.bf16.msra.mxu1 %v9035_v53  ;;  %v5695_v1 = vcombine.low %v10966_v7, %v10974_v47  ;;  %v5546_v56 = vrot.slane %v5516_v45, 4  ;;  %v7561_v32 = vrot.slane %v10895_v20, 9 }
 0x2e6   : > { %8496 = vmatprep.subr.bf16.mxu1 %v9273_v63  ;;  %v5917_v25 = vrot.slane %v10914_v0, 7  ;;  %v5672_v57 = vrot.slane %v5671_v17, 2  ;;  %v5676_v29 = vrot.slane %v5674_v33, 7  ;;  %v7562_v8 = vrot.slane %v10906_v35, 9 }
 0x2e7   : > { %v5543_v55 = vsel %vm5519_vm14, %v5542_v62, %v5541_v46  ;;  %v5921_v0 = vrot.slane %v10925_v38, 7  ;;  %v7563_v49 = vrot.slane %v10930_v43, 9  ;;  %v5925_v40 = vrot.slane %v5628_v34, 7  ;;  %v9041_v34 = vld [vmem:[#allocation7 + $0xd0] sm:$0xff]  }
 0x2e8   : > { %v5545_v4 = vsel %vm5522_vm15, %v5544_v19, %v5543_v55  ;;  %v11000_v20 = vsel %vm10992_vm1, %v7561_v32, %v5917_v25  ;;  %v11006_v26 = vsel %vm10959_vm11, %v5672_v57, %v5676_v29  ;;  %v6219_v35 = vcombine.low %v10974_v47, %v10966_v7  ;;  %v9046_v47 = vld [vmem:[#allocation7 + $0x90] sm:$0xff]  }
 0x2e9   : > { %8497 = vmatpush3.bf16.msra.mxu1 %v9037_v48  ;;  %v5547_v41 = vsel %vm5525_vm0, %v5546_v56, %v5545_v4  ;;  %v5696_v60 = vcombine.low %v10966_v7, %v11006_v26  ;;  %v5922_v43 = vsel %vm10992_vm1, %v7562_v8, %v5921_v0  ;;  %v5571_v52 = vrot.slane %v5569_v22, 6  ;;  %v9045_v48 = vld [vmem:[#allocation7 + $0xc0] sm:$0xff]   ;;  %v9047_v8 = vld [vmem:[#allocation7 + $0x178] sm:$0xff]  }
 0x2ea   : > { %8498 = vmatprep.subr.bf16.mxu1 %v9273_v63  ;;  %v5551_v38 = vpack.c.b16 %v5547_v41, %v5547_v41  ;;  %v5926_v42 = vsel %vm10992_vm1, %v7563_v49, %v5925_v40  ;;  %v5944_v27 = vcombine.low %v11000_v20, %v5922_v43  ;;  %v6349_v16 = vcombine.low %v5922_v43, %v11000_v20  ;;  %v9048_v43 = vld [vmem:[#allocation7 + $0x88] sm:$0xff]  }
 0x2eb   : > { %v5703_v58 = vrot.slane %v5695_v1, %v10734_v11  ;;  %v11022_v2 = vrot.slane %v5696_v60, %v10734_v11  ;;  %v5945_v37 = vcombine.low %v11000_v20, %v5926_v42  ;;  %v6079_v23 = vrot.slane %v6071_v28, %v10734_v11  ;;  %v9040_v1 = vld [vmem:[#allocation7 + $0xa8] sm:$0xff]   ;;  %v9044_v60 = vld [vmem:[#allocation7 + $0x98] sm:$0xff]  }
 0x2ec   : > { %v5579_v9 = vsel %vm9446_vm4, %v5482_v30, %v5551_v38  ;;  %v11030_v36 = vrot.slane %v5944_v27, %v10734_v11  ;;  %v11058_v32 = vrot.slane %v6349_v16, %v10734_v11  ;;  %v11080_v41 = vrot.slane %v6219_v35, %v10734_v11  ;;  %v9049_v38 = vld [vmem:[#allocation7 + $0x170] sm:$0xff]   ;;  %v9051_v35 = vld [vmem:[#allocation7 + $0x168] sm:$0xff]   ;;  %v9055_v27 = vld [vmem:[#allocation7 + $0x158] sm:$0xff]  }
 0x2ed   : > { %8499 = vmatpush3.bf16.msra.mxu1 %v9039_v31  ;;  %v5585_v3 = vsel %vm10839_vm3, %v5579_v9, %v5571_v52  ;;  %v5711_v51 = vcombine.low %v5703_v58, %v11022_v2  ;;  %v11037_v30 = vrot.slane %v5945_v37, %v10734_v11  ;;  %v9053_v52 = vld [vmem:[#allocation7 + $0x160] sm:$0xff]   ;;  %v9052_v16 = vld [vmem:[#allocation7 + $0x138] sm:$0xff]   ;;  %v9057_v58 = vld [vmem:[#allocation7 + $0x150] sm:$0xff]   ;;  %vm6929_vm4 = vcmask 1041409  }
 0x2ee   : > { %8500 = vmatprep.subr.bf16.mxu1 %v9273_v63  ;;  %v6072_v21 = vcombine.low %v10918_v6, %v5585_v3  ;;  %v6186_v50 = vrot.slane %v5585_v3, %v10734_v11  ;;  %v6475_v53 = vcombine.low %v5585_v3, %v10918_v6  ;;  %v9054_v9 = vld [vmem:[#allocation7 + $0x130] sm:$0xff]   ;;  %v9059_v37 = vld [vmem:[#allocation7 + $0x148] sm:$0xff]   ;;  %v9058_v3 = vld [vmem:[#allocation7 + $0x120] sm:$0xff]  }
 0x2ef   : > { %8447 = vmatmul.mubr.bf16.vlgmr.msra.gmra.mxu0 %v5711_v51  ;;  %v5960_v61 = vcombine.low %v11030_v36, %v11037_v30  ;;  %v9063_v36 = vld [vmem:[#allocation7 + $0x1f8] sm:$0xff]  }
 0x2f0   : > { %v6086_v24 = vrot.slane %v6072_v21, %v10734_v11  ;;  %v6187_v18 = vcombine.high %v6186_v50, %v6186_v50  ;;  %8471 = vmatpush3.bf16.msra.mxu0 %v9036_v13  ;;  %v6189_v14 = vshrl.u32 %v6186_v50, 16  ;;  %v6192_v59 = vshll.u32 %v6186_v50, 16  ;;  %8486 = vmatprep.mubr.msk.bf16.mxu0 %vm9274_vm12, %v9273_v63  ;;  %v9056_v13 = vld [vmem:[#allocation7 + $0x128] sm:$0xff]   ;;  %v9060_v51 = vld [vmem:[#allocation7 + $0x118] sm:$0xff]   ;;  %v9065_v21 = vld [vmem:[#allocation7 + $0x1f0] sm:$0xff]  }
 0x2f1   : > { %8501 = vmatpush3.bf16.msra.mxu1 %v9041_v34  ;;  %v11045_v15 = vrot.slane %v6475_v53, %v10734_v11  ;;  %8472 = vmatprep.subr.bf16.mxu0 %v9273_v63  ;;  %v7588_v33 = vrot.slane %v6186_v50, 9  ;;  %v9061_v34 = vld [vmem:[#allocation7 + $0x140] sm:$0xff]   ;;  %v9062_v50 = vld [vmem:[#allocation7 + $0x110] sm:$0xff]   ;;  %v9067_v53 = vld [vmem:[#allocation7 + $0x1e8] sm:$0xff]  }
 0x2f2   : > { %8502 = vmatprep.subr.bf16.mxu1 %v9273_v63  ;;  %v6087_v6 = vcombine.low %v6079_v23, %v6086_v24  ;;  %v6330_v45 = vrot.slane %v6187_v18, 7  ;;  %v6191_v46 = vrot.slane %v6189_v14, 6  ;;  %v6194_v19 = vrot.slane %v6192_v59, 7  ;;  %v9064_v23 = vld [vmem:[#allocation7 + $0x108] sm:$0xff]   ;;  %v9069_v24 = vld [vmem:[#allocation7 + $0x1e0] sm:$0xff]   ;;  %v9070_v14 = vld [vmem:[#allocation7 + $0x1b0] sm:$0xff]  }
 0x2f3   : > { %v6198_v44 = vshll.u32 %v6187_v18, 16  ;;  %v6483_v62 = vcombine.low %v10933_v10, %v11045_v15  ;;  %v9071_v18 = vld [vmem:[#allocation7 + $0x1d8] sm:$0xff]   ;;  %v9075_v59 = vld [vmem:[#allocation7 + $0x1c8] sm:$0xff]   ;;  %v9086_v10 = vld [vmem:[#allocation7 + $0x210] sm:$0xff]  }
 0x2f4   : > { %v6331_v17 = vsel %vm10992_vm1, %v7588_v33, %v6330_v45  ;;  %8473 = vmatpush3.bf16.msra.mxu0 %v9038_v39  ;;  %v6195_v56 = vor.u32 %v6194_v19, %v6191_v46  ;;  %v9068_v39 = vld [vmem:[#allocation7 + $0x1b8] sm:$0xff]   ;;  %v9077_v33 = vld [vmem:[#allocation7 + $0x1c0] sm:$0xff]   ;;  %v9078_v19 = vld [vmem:[#allocation7 + $0x190] sm:$0xff]  }
 0x2f5   : > { %8503 = vmatpush3.bf16.msra.mxu1 %v9043_v12  ;;  %v6350_v28 = vcombine.low %v5926_v42, %v6331_v17  ;;  %v6711_v22 = vcombine.low %v6331_v17, %v5926_v42  ;;  %8474 = vmatprep.subr.bf16.mxu0 %v9273_v63  ;;  %v6200_v57 = vrot.slane %v6198_v44, 7  ;;  %v9050_v42 = vld [vmem:[#allocation7 + $0x80] sm:$0xff]   ;;  %v9073_v12 = vld [vmem:[#allocation7 + $0x1d0] sm:$0xff]   ;;  %v9076_v46 = vld [vmem:[#allocation7 + $0x198] sm:$0xff]  }
 0x2f6   : > { %8504 = vmatprep.subr.bf16.mxu1 %v9273_v63  ;;  %v6196_v55 = vrot.slane %v6195_v56, 2  ;;  %v9074_v45 = vld [vmem:[#allocation7 + $0x1a0] sm:$0xff]   ;;  %v9079_v44 = vld [vmem:[#allocation7 + $0x188] sm:$0xff]   ;;  %v9085_v56 = vld [vmem:[#allocation7 + $0x218] sm:$0xff]  }
 0x2f7   : > { %v11061_v25 = vrot.slane %v6350_v28, %v10734_v11  ;;  %v11064_v29 = vrot.slane %v6711_v22, %v10734_v11  ;;  %v9080_v17 = vld [vmem:[#allocation7 + $0x180] sm:$0xff]   ;;  %v9087_v15 = vld [vmem:[#allocation7 + $0x208] sm:$0xff]  }
 0x2f8   : > { %8475 = vmatpush3.bf16.msra.mxu0 %v9040_v1  ;;  %v6201_v20 = vsel %vm10959_vm11, %v6196_v55, %v6200_v57  ;;  %v9081_v1 = vld [vmem:[#allocation7 + $0x238] sm:$0xff]   ;;  %v9084_v28 = vld [vmem:[#allocation7 + $0x220] sm:$0xff]  }
 0x2f9   : > { %8505 = vmatpush3.bf16.msra.mxu1 %v9045_v48  ;;  %v6365_v4 = vcombine.low %v11058_v32, %v11061_v25  ;;  %v6719_v0 = vcombine.low %v11037_v30, %v11064_v29  ;;  %8476 = vmatprep.subr.bf16.mxu0 %v9273_v63  ;;  %v6220_v49 = vcombine.low %v11006_v26, %v6201_v20  ;;  %v9083_v48 = vld [vmem:[#allocation7 + $0x228] sm:$0xff]  }
 0x2fa   : > { %8530 = vmatprep.subr.bf16.mxu1 %v9273_v63  ;;  %v6593_v31 = vcombine.low %v6201_v20, %v11006_v26 }
 0x2fb   : > { %v11083_v5 = vrot.slane %v6220_v49, %v10734_v11 }
 0x2fc   : > { %8507 = vmatmul.mubr.bf16.vlgmr.msra.gmra.mxu1 %v6087_v6  ;;  %v11086_v40 = vrot.slane %v6593_v31, %v10734_v11  ;;  %8477 = vmatpush3.bf16.msra.mxu0 %v9042_v54  ;;  %v9072_v6 = vld [vmem:[#allocation7 + $0x1a8] sm:$0xff]  }
 0x2fd   : > { %8531 = vmatpush3.bf16.msra.mxu1 %v9047_v8  ;;  %8478 = vmatprep.subr.bf16.mxu0 %v9273_v63  ;;  %v6235_v26 = vcombine.low %v11080_v41, %v11083_v5 }
 0x2fe   : > { %8532 = vmatprep.subr.bf16.mxu1 %v9273_v63  ;;  %v6601_v7 = vcombine.low %v11022_v2, %v11086_v40  ;;  %8546 = vmatprep.mubr.msk.bf16.mxu1 %vm9274_vm12, %v9273_v63  ;;  %v9082_v2 = vld [vmem:[#allocation7 + $0x230] sm:$0xff]  }
 0x300   : > { %8479 = vmatpush3.bf16.msra.mxu0 %v9044_v60 }
 0x301   : > { %8533 = vmatpush3.bf16.msra.mxu1 %v9049_v38  ;;  %8480 = vmatprep.subr.bf16.mxu0 %v9273_v63 }
 0x302   : > { %8534 = vmatprep.subr.bf16.mxu1 %v9273_v63 }
 0x304   : > { %8481 = vmatpush3.bf16.msra.mxu0 %v9046_v47 }
 0x305   : > { %8535 = vmatpush3.bf16.msra.mxu1 %v9051_v35  ;;  %8482 = vmatprep.subr.bf16.mxu0 %v9273_v63 }
 0x306   : > { %8536 = vmatprep.subr.bf16.mxu1 %v9273_v63 }
 0x308   : > { %8483 = vmatpush3.bf16.msra.mxu0 %v9048_v43 }
 0x309   : > { %8537 = vmatpush3.bf16.msra.mxu1 %v9053_v52  ;;  %8484 = vmatprep.subr.bf16.mxu0 %v9273_v63 }
 0x30a   : > { %8538 = vmatprep.subr.bf16.mxu1 %v9273_v63 }
 0x30c   : > { %8485 = vmatpush3.bf16.msra.mxu0 %v9050_v42 }
 0x30d   : > { %8539 = vmatpush3.bf16.msra.mxu1 %v9055_v27  ;;  %8510 = vmatprep.subr.bf16.mxu0 %v9273_v63 }
 0x30e   : > { %8540 = vmatprep.subr.bf16.mxu1 %v9273_v63 }
 0x30f   : > { %8487 = vmatmul.mubr.bf16.vlgmr.msra.gmra.mxu0 %v5960_v61  ;;  %v9066_v61 = vld [vmem:[#allocation7 + $0x100] sm:$0xff]  }
 0x310   : > { %8511 = vmatpush3.bf16.msra.mxu0 %v9052_v16  ;;  %8526 = vmatprep.mubr.msk.bf16.mxu0 %vm9274_vm12, %v9273_v63 }
 0x311   : > { %8541 = vmatpush3.bf16.msra.mxu1 %v9057_v58  ;;  %8512 = vmatprep.subr.bf16.mxu0 %v9273_v63 }
 0x312   : > { %8542 = vmatprep.subr.bf16.mxu1 %v9273_v63 }
 0x314   : > { %8513 = vmatpush3.bf16.msra.mxu0 %v9054_v9 }
 0x315   : > { %8543 = vmatpush3.bf16.msra.mxu1 %v9059_v37  ;;  %8514 = vmatprep.subr.bf16.mxu0 %v9273_v63 }
 0x316   : > { %8544 = vmatprep.subr.bf16.mxu1 %v9273_v63 }
 0x318   : > { %8515 = vmatpush3.bf16.msra.mxu0 %v9056_v13 }
 0x319   : > { %8545 = vmatpush3.bf16.msra.mxu1 %v9061_v34  ;;  %8516 = vmatprep.subr.bf16.mxu0 %v9273_v63 }
 0x31a   : > { %8570 = vmatprep.subr.bf16.mxu1 %v9273_v63 }
 0x31c   : > { %8547 = vmatmul.mubr.bf16.vlgmr.msra.gmra.mxu1 %v6365_v4  ;;  %8517 = vmatpush3.bf16.msra.mxu0 %v9058_v3 }
 0x31d   : > { %8571 = vmatpush3.bf16.msra.mxu1 %v9063_v36  ;;  %8518 = vmatprep.subr.bf16.mxu0 %v9273_v63 }
 0x31e   : > { %8572 = vmatprep.subr.bf16.mxu1 %v9273_v63  ;;  %8586 = vmatprep.mubr.msk.bf16.mxu1 %vm9274_vm12, %v9273_v63 }
 0x320   : > { %8519 = vmatpush3.bf16.msra.mxu0 %v9060_v51 }
 0x321   : > { %8573 = vmatpush3.bf16.msra.mxu1 %v9065_v21  ;;  %8520 = vmatprep.subr.bf16.mxu0 %v9273_v63 }
 0x322   : > { %8574 = vmatprep.subr.bf16.mxu1 %v9273_v63 }
 0x324   : > { %8521 = vmatpush3.bf16.msra.mxu0 %v9062_v50 }
 0x325   : > { %8575 = vmatpush3.bf16.msra.mxu1 %v9067_v53  ;;  %8522 = vmatprep.subr.bf16.mxu0 %v9273_v63 }
 0x326   : > { %8576 = vmatprep.subr.bf16.mxu1 %v9273_v63 }
 0x328   : > { %8523 = vmatpush3.bf16.msra.mxu0 %v9064_v23 }
 0x329   : > { %8577 = vmatpush3.bf16.msra.mxu1 %v9069_v24  ;;  %8524 = vmatprep.subr.bf16.mxu0 %v9273_v63 }
 0x32a   : > { %8578 = vmatprep.subr.bf16.mxu1 %v9273_v63 }
 0x32c   : > { %8525 = vmatpush3.bf16.msra.mxu0 %v9066_v61 }
 0x32d   : > { %8579 = vmatpush3.bf16.msra.mxu1 %v9071_v18  ;;  %8550 = vmatprep.subr.bf16.mxu0 %v9273_v63 }
 0x32e   : > { %8580 = vmatprep.subr.bf16.mxu1 %v9273_v63 }
 0x32f   : > { %8527 = vmatmul.mubr.bf16.vlgmr.msra.gmra.mxu0 %v6235_v26 }
 0x330   : > { %8551 = vmatpush3.bf16.msra.mxu0 %v9068_v39  ;;  %8566 = vmatprep.mubr.msk.bf16.mxu0 %vm9274_vm12, %v9273_v63 }
 0x331   : > { %8581 = vmatpush3.bf16.msra.mxu1 %v9073_v12  ;;  %8552 = vmatprep.subr.bf16.mxu0 %v9273_v63 }
 0x332   : > { %8582 = vmatprep.subr.bf16.mxu1 %v9273_v63 }
 0x334   : > { %8553 = vmatpush3.bf16.msra.mxu0 %v9070_v14  ;;  %v7621_v14 = vld [vmem:[#allocation8] ss:$0 sm:$0xff] }
 0x335   : > { %8583 = vmatpush3.bf16.msra.mxu1 %v9075_v59  ;;  %8554 = vmatprep.subr.bf16.mxu0 %v9273_v63 }
 0x336   : > { %8584 = vmatprep.subr.bf16.mxu1 %v9273_v63 }
 0x338   : > { %8555 = vmatpush3.bf16.msra.mxu0 %v9072_v6 }
 0x339   : > { %8585 = vmatpush3.bf16.msra.mxu1 %v9077_v33  ;;  %8556 = vmatprep.subr.bf16.mxu0 %v9273_v63 }
 0x33c   : > { %8587 = vmatmul.mubr.bf16.vlgmr.msra.gmra.mxu1 %v6601_v7  ;;  %8557 = vmatpush3.bf16.msra.mxu0 %v9074_v45 }
 0x33d   : > { %8558 = vmatprep.subr.bf16.mxu0 %v9273_v63 }
 0x340   : > { %8559 = vmatpush3.bf16.msra.mxu0 %v9076_v46 }
 0x341   : > { %8560 = vmatprep.subr.bf16.mxu0 %v9273_v63 }
 0x344   : > { %8561 = vmatpush3.bf16.msra.mxu0 %v9078_v19 }
 0x345   : > { %8562 = vmatprep.subr.bf16.mxu0 %v9273_v63 }
 0x348   : > { %8563 = vmatpush3.bf16.msra.mxu0 %v9079_v44 }
 0x349   : > { %8564 = vmatprep.subr.bf16.mxu0 %v9273_v63 }
 0x34c   : > { %8565 = vmatpush3.bf16.msra.mxu0 %v9080_v17 }
 0x34d   : > { %8590 = vmatprep.subr.bf16.mxu0 %v9273_v63 }
 0x34f   : > { %8567 = vmatmul.mubr.bf16.vlgmr.msra.gmra.mxu0 %v6483_v62  ;;  %v9088_v62 = vld [vmem:[#allocation7 + $0x200] sm:$0xff]  }
 0x350   : > { %8591 = vmatpush3.bf16.msra.mxu0 %v9081_v1  ;;  %8606 = vmatprep.mubr.msk.bf16.mxu0 %vm9274_vm12, %v9273_v63 }
 0x351   : > { %8592 = vmatprep.subr.bf16.mxu0 %v9273_v63 }
 0x354   : > { %8593 = vmatpush3.bf16.msra.mxu0 %v9082_v2 }
 0x355   : > { %8594 = vmatprep.subr.bf16.mxu0 %v9273_v63 }
 0x358   : > { %8595 = vmatpush3.bf16.msra.mxu0 %v9083_v48 }
 0x359   : > { %8596 = vmatprep.subr.bf16.mxu0 %v9273_v63 }
 0x35c   : > { %8597 = vmatpush3.bf16.msra.mxu0 %v9084_v28 }
 0x35d   : > { %8598 = vmatprep.subr.bf16.mxu0 %v9273_v63 }
 0x360   : > { %8599 = vmatpush3.bf16.msra.mxu0 %v9085_v56 }
 0x361   : > { %8600 = vmatprep.subr.bf16.mxu0 %v9273_v63 }
 0x364   : > { %8601 = vmatpush3.bf16.msra.mxu0 %v9086_v10 }
 0x365   : > { %8602 = vmatprep.subr.bf16.mxu0 %v9273_v63 }
 0x368   : > { %8603 = vmatpush3.bf16.msra.mxu0 %v9087_v15 }
 0x369   : > { %8604 = vmatprep.subr.bf16.mxu0 %v9273_v63 }
 0x36c   : > { %8605 = vmatpush3.bf16.msra.mxu0 %v9088_v62 }
 0x36f   : > { %8607 = vmatmul.mubr.bf16.vlgmr.msra.gmra.mxu0 %v6719_v0 }
 0x39c   : > { %v5902_v22 = vpop.f32.mrf.mxu1 }
 0x39e   : > { %v8468_v32 = vpop.f32.mrf.mxu1 }
 0x3a0   : > { %v5905_v25 = vpop.f32.mrf.mxu1 }
 0x3a2   : > { %v8469_v55 = vpop.f32.mrf.mxu1 }
 0x3af   : > { %v5795_v57 = vpop.f32.mrf.mxu0 }
 0x3b0   : > { %v5903_v54 = vadd.f32 %v5902_v22, %v5795_v57 }
 0x3b1   : > { %v8448_v8 = vpop.f32.mrf.mxu0 }
 0x3b3   : > { %v5798_v4 = vpop.f32.mrf.mxu0 }
 0x3b4   : > { %v5906_v20 = vadd.f32 %v5905_v25, %v5798_v4 }
 0x3b5   : > { %v8449_v49 = vpop.f32.mrf.mxu0 }
 0x3bc   : > { %v6171_v31 = vpop.f32.mrf.mxu1 }
 0x3be   : > { %v8508_v41 = vpop.f32.mrf.mxu1 }
 0x3c0   : > { %v6174_v5 = vpop.f32.mrf.mxu1 }
 0x3c2   : > { %v8509_v40 = vpop.f32.mrf.mxu1 }
 0x3cf   : > { %v6044_v63 = vpop.f32.mrf.mxu0 }
 0x3d0   : > { %v6051_v60 = vadd.f32 %v6044_v63, %v5903_v54 }
 0x3d1   : > { %v8488_v38 = vpop.f32.mrf.mxu0 }
 0x3d2   : > { %v6178_v26 = vadd.f32 %v6171_v31, %v6051_v60 }
 0x3d3   : > { %v6047_v30 = vpop.f32.mrf.mxu0 }
 0x3d4   : > { %v6052_v29 = vadd.f32 %v6047_v30, %v5906_v20 }
 0x3d5   : > { %v8489_v0 = vpop.f32.mrf.mxu0 }
 0x3d6   : > { %v6179_v7 = vadd.f32 %v6174_v5, %v6052_v29 }
 0x3dc   : > { %v6449_v47 = vpop.f32.mrf.mxu1 }
 0x3de   : > { %v8548_v35 = vpop.f32.mrf.mxu1 }
 0x3e0   : > { %v6452_v43 = vpop.f32.mrf.mxu1 }
 0x3e2   : > { %v8549_v52 = vpop.f32.mrf.mxu1 }
 0x3ef   : > { %v6319_v42 = vpop.f32.mrf.mxu0 }
 0x3f0   : > { %v6326_v27 = vadd.f32 %v6319_v42, %v6178_v26 }
 0x3f1   : > { %v8528_v16 = vpop.f32.mrf.mxu0 }
 0x3f2   : > { %v6456_v58 = vadd.f32 %v6449_v47, %v6326_v27 }
 0x3f3   : > { %v6322_v9 = vpop.f32.mrf.mxu0 }
 0x3f4   : > { %v6327_v37 = vadd.f32 %v6322_v9, %v6179_v7 }
 0x3f5   : > { %v8529_v13 = vpop.f32.mrf.mxu0 }
 0x3f6   : > { %v6457_v34 = vadd.f32 %v6452_v43, %v6327_v37 }
 0x3fc   : > { %v6685_v3 = vpop.f32.mrf.mxu1 }
 0x3fe   : > { %v8588_v36 = vpop.f32.mrf.mxu1 }
 0x400   : > { %v6688_v51 = vpop.f32.mrf.mxu1 }
 0x402   : > { %v8589_v21 = vpop.f32.mrf.mxu1 }
 0x40f   : > { %v6567_v50 = vpop.f32.mrf.mxu0 }
 0x410   : > { %v6574_v61 = vadd.f32 %v6567_v50, %v6456_v58 }
 0x411   : > { %v8568_v53 = vpop.f32.mrf.mxu0 }
 0x412   : > { %v6692_v39 = vadd.f32 %v6685_v3, %v6574_v61 }
 0x413   : > { %v6570_v23 = vpop.f32.mrf.mxu0 }
 0x414   : > { %v6575_v18 = vadd.f32 %v6570_v23, %v6457_v34 }
 0x415   : > { %v8569_v24 = vpop.f32.mrf.mxu0 }
 0x416   : > { %v6693_v45 = vadd.f32 %v6688_v51, %v6575_v18 }
 0x42f   : > { %v6803_v12 = vpop.f32.mrf.mxu0 }
 0x430   : > { %v6810_v59 = vadd.f32 %v6803_v12, %v6692_v39 }
 0x431   : > { %v8608_v6 = vpop.f32.mrf.mxu0 }
 0x432   : > { %v6819_v33 = vadd.f32 %v7621_v14, %v6810_v59 }
 0x433   : > { %v6806_v46 = vpop.f32.mrf.mxu0 }
 0x434   : > { %v6823_v19 = vcombine.high %v6819_v33, %v6819_v33  ;;  %v6830_v44 = vrot.slane %v6819_v33, %v10734_v11  ;;  %v6811_v17 = vadd.f32 %v6806_v46, %v6693_v45 }
 0x435   : > { %v8609_v1 = vpop.f32.mrf.mxu0 }
 0x436   : > { %v6837_v2 = vrot.slane %v6823_v19, %v10734_v11  ;;  %v6838_v48 = vcombine.high %v6830_v44, %v6830_v44  ;;  %v6865_v28 = vsel %vm5228_vm13, %v6830_v44, -inf  ;;  %v6820_v56 = vadd.f32 %v7621_v14, %v6811_v17 }
 0x437   : > { %v6866_v10 = vrot.slane %v6865_v28, 4 }
 0x438   : > { %v6839_v15 = vcombine.high %v6837_v2, %v6837_v2  ;;  %v6872_v62 = vsel %vm5228_vm13, %v6838_v48, -inf  ;;  %v6879_v22 = vsel %vm5228_vm13, %v6837_v2, -inf  ;;  %v6840_v32 = vcombine.high %v6820_v56, %v6820_v56 }
 0x439   : > { %v6867_v25 = vmax.f32 %v6865_v28, %v6866_v10  ;;  %v6873_v55 = vrot.slane %v6872_v62, 4  ;;  %v6880_v57 = vrot.slane %v6879_v22, 4  ;;  %v6847_v54 = vrot.slane %v6820_v56, %v10734_v11 }
 0x43a   : > { %v6886_v8 = vsel %vm5228_vm13, %v6839_v15, -inf  ;;  %v6854_v4 = vrot.slane %v6840_v32, %v10734_v11 }
 0x43b   : > { %v6868_v20 = vrot.slane %v6867_v25, 2  ;;  %v6874_v49 = vmax.f32 %v6872_v62, %v6873_v55  ;;  %v6881_v31 = vmax.f32 %v6879_v22, %v6880_v57  ;;  %v6887_v41 = vrot.slane %v6886_v8, 4 }
 0x43c   : > { %v6855_v5 = vcombine.high %v6847_v54, %v6847_v54  ;;  %v6856_v40 = vcombine.high %v6854_v4, %v6854_v4  ;;  %v6893_v63 = vsel %vm5228_vm13, %v6847_v54, -inf  ;;  %v6907_v60 = vsel %vm5228_vm13, %v6854_v4, -inf }
 0x43d   : > { %v6869_v38 = vmax.f32 %v6867_v25, %v6868_v20  ;;  %v6875_v26 = vrot.slane %v6874_v49, 2  ;;  %v6882_v30 = vrot.slane %v6881_v31, 2  ;;  %v6888_v29 = vmax.f32 %v6886_v8, %v6887_v41 }
 0x43e   : > { %v6894_v0 = vrot.slane %v6893_v63, 4  ;;  %v6900_v7 = vsel %vm5228_vm13, %v6855_v5, -inf  ;;  %v6908_v47 = vrot.slane %v6907_v60, 4  ;;  %v6914_v11 = vsel %vm5228_vm13, %v6856_v40, -inf }
 0x43f   : > { %v6876_v35 = vmax.f32 %v6874_v49, %v6875_v26  ;;  %v6883_v43 = vmax.f32 %v6881_v31, %v6882_v30  ;;  %v6889_v52 = vrot.slane %v6888_v29, 2  ;;  %v6901_v27 = vrot.slane %v6900_v7, 4 }
 0x440   : > { %v6895_v42 = vmax.f32 %v6893_v63, %v6894_v0  ;;  %v6909_v16 = vmax.f32 %v6907_v60, %v6908_v47  ;;  %v6915_v58 = vrot.slane %v6914_v11, 4  ;;  %v6870_v9 = vrot.slane %v6869_v38, 1 }
 0x441   : > { %v6877_v37 = vrot.slane %v6876_v35, 1  ;;  %v6884_v13 = vrot.slane %v6883_v43, 1  ;;  %v6890_v34 = vmax.f32 %v6888_v29, %v6889_v52  ;;  %v6902_v36 = vmax.f32 %v6900_v7, %v6901_v27 }
 0x442   : > { %v6896_v3 = vrot.slane %v6895_v42, 2  ;;  %v6910_v51 = vrot.slane %v6909_v16, 2  ;;  %v6916_v21 = vmax.f32 %v6914_v11, %v6915_v58  ;;  %v6871_v39 = vmax.f32 %v6869_v38, %v6870_v9 }
 0x443   : > { %v6885_v50 = vmax.f32 %v6883_v43, %v6884_v13  ;;  %v6891_v53 = vrot.slane %v6890_v34, 1  ;;  %v6903_v24 = vrot.slane %v6902_v36, 2  ;;  %v6878_v12 = vmax.f32 %v6876_v35, %v6877_v37 }
 0x444   : > { %v6897_v23 = vmax.f32 %v6895_v42, %v6896_v3  ;;  %v6911_v61 = vmax.f32 %v6909_v16, %v6910_v51  ;;  %v6917_v18 = vrot.slane %v6916_v21, 2 }
 0x445   : > { %v6892_v14 = vmax.f32 %v6890_v34, %v6891_v53  ;;  %v6904_v6 = vmax.f32 %v6902_v36, %v6903_v24  ;;  %v6921_v46 = vmax.f32 %v6871_v39, %v6885_v50 }
 0x446   : > { %v6898_v59 = vrot.slane %v6897_v23, 1  ;;  %v6912_v33 = vrot.slane %v6911_v61, 1  ;;  %v6918_v45 = vmax.f32 %v6916_v21, %v6917_v18 }
 0x447   : > { %v6922_v19 = vmax.f32 %v6878_v12, %v6892_v14  ;;  %v6905_v44 = vrot.slane %v6904_v6, 1 }
 0x448   : > { %v6913_v17 = vmax.f32 %v6911_v61, %v6912_v33  ;;  %v6919_v1 = vrot.slane %v6918_v45, 1  ;;  %v6899_v48 = vmax.f32 %v6897_v23, %v6898_v59 }
 0x449   : > { %v6930_v2 = vsel %vm6929_vm4, %v6922_v19, %v6921_v46  ;;  %v6906_v28 = vmax.f32 %v6904_v6, %v6905_v44 }
 0x44a   : > { %v6920_v56 = vmax.f32 %v6918_v45, %v6919_v1  ;;  %6934 = vst [vmem:[%s272_s8] sm:$0x3] %v6930_v2  ;;  %v6923_v10 = vmax.f32 %v6899_v48, %v6913_v17 }
 0x44c   : > { %v6924_v15 = vmax.f32 %v6906_v28, %v6920_v56 }
 0x44e   : > { %v6931_v62 = vsel %vm6929_vm4, %v6924_v15, %v6923_v10 }
 0x44f   : > { %6935 = vst [vmem:[%s272_s8 + $0x2] sm:$0x3] %v6931_v62 }
 0x450   : > { %9206 = shalt.err (!%p9203_p11)
}
 0x451   : > { %s9207_s10 = scalar_lea.hbm %s11183_s14, 64  ;;  %s9211_s25 = scalar_lea.hbm %s11235_s5, 128 }
 0x452   : > { %p9208_p3 = scmp.ne.s32.totalorder %s11183_s14, %s9207_s10  ;;  %p9212_p2 = scmp.lt.s32.totalorder %s11183_s14, %s11235_s5 }
 0x453   : > { %p9213_p9 = scmp.lt.s32.totalorder %s9211_s25, %s9207_s10 }
 0x454   : > { %p9209_p0 = pnand %p9208_p3, %p9347_p5 }
 0x455   : > { %p9214_p10 = por %p9213_p9, %p9212_p2 }
 0x456   : > { %p9210_p1 = pneg %p9209_p0 }
 0x458   : > { %p9215_p12 = pnand %p9214_p10, %p9210_p1 }
 0x45a   : > { %9218 = shalt.err (!%p9215_p12)
}
 0x45b   : > { %s9277_s7 = smov 32   ;;  %s9278_s8 = smov 2  }
 0x45c   : > { %8626 = dma.vmem_to_hbm [thread:$0]  (%p9347_p5), %s11185_s11, 64, %s11183_s14, %s11190_s22, %s9277_s7, %s9277_s7, %s9278_s8  }
 0x45d PF: > { %p8653_p13 = scmp.ge.s32.totalorder %s9265_s21, 2  ;;  %s6965_s9 = sand.u32 1, %s9253_s18  }
 0x45e   : > { %s6966_s13 = scalar_lea.sflag [#allocation4], %s6965_s9 }
 0x45f   : > { %p8642_p4 = pnand %p8653_p13, %p9351_p6 }
 0x461   : > { %p8643_p7 = pneg %p8642_p4 }
 0x463   : > { %9248 = dma.done.wait (%p8643_p7), %s6966_s13, 64  }
 0x464   : > { %9250 = vsyncadd (%p8643_p7), %s6966_s13, 4294967232  ;;  %p18_p8 = scmp.ge.s32.totalorder %s9334_s24, 4   ;;  %s11497_s18 = smov %s9257_s19 }
 0x465   : > { %s11498_s19 = smov %s9261_s20  ;;  %s11499_s20 = smov %s9345_s27 }
 0x466   : > { %s11500_s21 = smov %s9334_s24  ;;  %20 = sbr.rel (!%p18_p8) target bundleno = 6 (0x6), region = 108 }
 0x46b   :  { %6971 = vsyncpa [#allocation3], 1 }
 0x46c   :  { %6973 = vsyncpa [#allocation3 + $0x1], 1 }
 0x46d   :  { %6974 = vsyncpa [#allocation6], 1 }
 0x46e   :  { %6975 = vsyncpa [#allocation9], 1 }
 0x46f   :  { %6976 = vsyncpa [#allocation4], 1 }
 0x470   :  { %6978 = vsyncpa [#allocation4 + $0x1], 1 }

</bundles_post_ra>
